<compile_context>
chip_gen: v7x
topology: tpu7x:2x2x1
jax: 0.10.0
libtpu: 0.0.40
codegen_flags: <defaults>
</compile_context>

<pallas_src>
import functools

import jax
import jax.numpy as jnp
from jax.experimental import pallas as pl
from jax.experimental.pallas import tpu as pltpu


def _sep_conv_bn_relu_kernel(x_ref, w_ref, g_ref, b_ref, o_ref, xp_ref, *,
                             n, h, w, k, pad, dil, ho, wo, cb, eps,
                             use_bn, use_relu):
    # Fused zero padding: build the haloed tile directly in VMEM scratch.
    if pad > 0:
        xp_ref[...] = jnp.zeros_like(xp_ref)
    xp_ref[:, pad:pad + h, pad:pad + w, :] = x_ref[...].astype(jnp.float32)

    # Depthwise conv: each tap is a shifted read of the padded tile
    # (H shift = row offset, W shift = sublane offset; C stays lane-aligned)
    # scaled by a (1, CB) per-channel weight vector -> full-width VPU FMAs.
    acc = jnp.zeros((n, ho, wo, cb), jnp.float32)
    for kh in range(k):
        for kw in range(k):
            hs, ws = kh * dil, kw * dil
            idx = kh * k + kw
            tap = w_ref[idx:idx + 1, :].astype(jnp.float32)      # (1, cb)
            acc = acc + xp_ref[:, hs:hs + ho, ws:ws + wo, :] * tap

    y = acc
    if use_bn:
        # Training-mode BatchNorm2d: per-channel batch stats over (N, H, W)
        # (per-lane reductions), biased variance, then affine (gamma, beta).
        mean = jnp.mean(y, axis=(0, 1, 2), keepdims=True)        # (1,1,1,cb)
        var = jnp.mean((y - mean) * (y - mean), axis=(0, 1, 2), keepdims=True)
        y = (y - mean) * jax.lax.rsqrt(var + eps)
        y = y * g_ref[...].astype(jnp.float32) + b_ref[...].astype(jnp.float32)
    if use_relu:
        y = jnp.maximum(y, 0.0)

    o_ref[...] = y.astype(o_ref.dtype)


def _pick_channel_block(c, n, h, w, pad, vmem_budget_bytes=28 << 20):
    """Largest channel block (all of C, or a multiple of 128 dividing C) whose
    working set (double-buffered in/out blocks + padded scratch + accumulator)
    fits a VMEM budget that is safe on every TPU generation (v7x: 64 MiB)."""
    if c <= 128 or c % 128 != 0:
        return c
    hp, wp = h + 2 * pad, w + 2 * pad
    bytes_per_chan = 4 * (2 * n * h * w          # double-buffered input block
                          + 2 * n * h * w        # double-buffered output block
                          + n * hp * wp          # padded VMEM scratch
                          + n * h * w)           # accumulator live values
    cb = 128
    while (cb * 2 <= c and c % (cb * 2) == 0
           and (cb * 2) * bytes_per_chan <= vmem_budget_bytes):
        cb *= 2
    return cb


def basic_sep_conv(x, weight, gamma, beta, *, stride=1, padding=1, dilation=1,
                   eps=1e-5, bn=True, relu=True):
    """x: (N, C, H, W) f32; weight: (C, K, K) depthwise filters; gamma/beta: (C,)."""
    N, C, H, W = x.shape
    Cw, K, K2 = weight.shape
    assert Cw == C and K == K2
    if stride != 1:
        raise NotImplementedError("stride > 1 not implemented")  # TODO(synk)

    Ho = H + 2 * padding - dilation * (K - 1)
    Wo = W + 2 * padding - dilation * (K - 1)

    # Channels-last so the channel axis lands on the 128-lane dimension.
    x_cl = jnp.transpose(x, (0, 2, 3, 1))                      # (N, H, W, C)
    w_cl = jnp.transpose(weight, (1, 2, 0)).reshape(K * K, C)  # (K*K, C)
    g2 = gamma.reshape(1, C)
    b2 = beta.reshape(1, C)

    CB = _pick_channel_block(C, N, H, W, padding)
    assert C % CB == 0
    grid = (C // CB,)

    kernel = functools.partial(
        _sep_conv_bn_relu_kernel,
        n=N, h=H, w=W, k=K, pad=padding, dil=dilation,
        ho=Ho, wo=Wo, cb=CB, eps=eps, use_bn=bn, use_relu=relu)

    out_cl = pl.pallas_call(
        kernel,
        out_shape=jax.ShapeDtypeStruct((N, Ho, Wo, C), x.dtype),
        grid=grid,
        in_specs=[
            pl.BlockSpec((N, H, W, CB), lambda c: (0, 0, 0, c)),   # x (unpadded)
            pl.BlockSpec((K * K, CB), lambda c: (0, c)),           # weights (VMEM)
            pl.BlockSpec((1, CB), lambda c: (0, c)),               # gamma
            pl.BlockSpec((1, CB), lambda c: (0, c)),               # beta
        ],
        out_specs=pl.BlockSpec((N, Ho, Wo, CB), lambda c: (0, 0, 0, c)),
        scratch_shapes=[
            pltpu.VMEM((N, H + 2 * padding, W + 2 * padding, CB), jnp.float32),
        ],
        compiler_params=pltpu.CompilerParams(
            dimension_semantics=("parallel",),   # channel blocks independent
            vmem_limit_bytes=48 * 1024 * 1024),  # > scoped default, < v7x physical
    )(x_cl, w_cl, g2, b2)

    return jnp.transpose(out_cl, (0, 3, 1, 2))                  # back to NCHW


def _reference(x, weight, gamma, beta, *, padding, dilation, eps):
    """Pure-JAX reference (depthwise conv + train-mode BN + ReLU), NCHW."""
    C, K, _ = weight.shape
    w = weight.reshape(C, 1, K, K)
    conv = jax.lax.conv_general_dilated(
        x, w, window_strides=(1, 1),
        padding=[(padding, padding), (padding, padding)],
        rhs_dilation=(dilation, dilation),
        dimension_numbers=("NCHW", "OIHW", "NCHW"),
        feature_group_count=C)
    mean = jnp.mean(conv, axis=(0, 2, 3), keepdims=True)
    var = jnp.mean((conv - mean) ** 2, axis=(0, 2, 3), keepdims=True)
    y = (conv - mean) * jax.lax.rsqrt(var + eps)
    y = y * gamma[None, :, None, None] + beta[None, :, None, None]
    return jnp.maximum(y, 0.0)


if __name__ == "__main__":
    key = jax.random.PRNGKey(0)
    kx, kw = jax.random.split(key)

    # Module config: BasicSepConv(in_planes=4, kernel_size=3, padding=1)
    N, C, H, W = 2, 4, 16, 16
    K, padding, dilation, eps = 3, 1, 1, 1e-5

    x = jax.random.normal(kx, (N, C, H, W), dtype=jnp.float32)

    # Conv2d default init (kaiming uniform, a=sqrt(5)) -> U(-1/sqrt(fan_in), +),
    # fan_in = (in_planes/groups) * K * K = K * K for a depthwise conv.
    bound = 1.0 / (K * K) ** 0.5
    weight = jax.random.uniform(kw, (C, K, K), jnp.float32, -bound, bound)

    # BatchNorm2d default affine init.
    gamma = jnp.ones((C,), jnp.float32)
    beta = jnp.zeros((C,), jnp.float32)

    out = basic_sep_conv(x, weight, gamma, beta,
                         padding=padding, dilation=dilation, eps=eps)
    out = jax.block_until_ready(out)

    ref = _reference(x, weight, gamma, beta,
                     padding=padding, dilation=dilation, eps=eps)
    assert out.shape == (N, C, H, W)
    assert jnp.allclose(out, ref, atol=1e-4, rtol=1e-4), "mismatch vs reference"

    print("KERNEL_OK")
</pallas_src>

<mosaic_0001>
module attributes {stable_mosaic.version = 11 : i64} {
  func.func @_sep_conv_bn_relu_kernel(%arg0: i32, %arg1: memref<2x16x16x4xf32, #tpu.memory_space<vmem>>, %arg2: memref<9x4xf32, #tpu.memory_space<vmem>>, %arg3: memref<1x4xf32, #tpu.memory_space<vmem>>, %arg4: memref<1x4xf32, #tpu.memory_space<vmem>>, %arg5: memref<2x16x16x4xf32, #tpu.memory_space<vmem>>, %arg6: memref<2x18x18x4xf32, #tpu.memory_space<vmem>>) attributes {dimension_semantics = [#tpu.dimension_semantics<parallel>], iteration_bounds = array<i64: 1>, scalar_prefetch = 0 : i64, scratch_operands = 1 : i64, tpu.core_type = #tpu.core_type<tc>, window_params = [{transform_indices = @transform_0, window_bounds = array<i64: 2, 16, 16, 4>}, {transform_indices = @transform_1, window_bounds = array<i64: 9, 4>}, {transform_indices = @transform_2, window_bounds = array<i64: 1, 4>}, {transform_indices = @transform_3, window_bounds = array<i64: 1, 4>}, {transform_indices = @transform_4, window_bounds = array<i64: 2, 16, 16, 4>}]} {
    %cst = arith.constant 0.000000e+00 : f32
    %0 = vector.broadcast %cst : f32 to vector<2x18x18x4xf32>
    %c0 = arith.constant 0 : index
    %c0_0 = arith.constant 0 : index
    %c0_1 = arith.constant 0 : index
    %c0_2 = arith.constant 0 : index
    %1 = vector.load %arg6[%c0, %c0_0, %c0_1, %c0_2] : memref<2x18x18x4xf32, #tpu.memory_space<vmem>>, vector<2x18x18x4xf32>
    tpu.vector_store %arg6[%c0, %c0_0, %c0_1, %c0_2], %0 {strides = array<i32>} : memref<2x18x18x4xf32, #tpu.memory_space<vmem>>, vector<2x18x18x4xf32>,
    %c0_3 = arith.constant 0 : index
    %c0_4 = arith.constant 0 : index
    %c0_5 = arith.constant 0 : index
    %c0_6 = arith.constant 0 : index
    %2 = vector.load %arg1[%c0_3, %c0_4, %c0_5, %c0_6] : memref<2x16x16x4xf32, #tpu.memory_space<vmem>>, vector<2x16x16x4xf32>
    %c0_7 = arith.constant 0 : index
    %c1 = arith.constant 1 : index
    %c1_8 = arith.constant 1 : index
    %c0_9 = arith.constant 0 : index
    %3 = vector.load %arg6[%c0_7, %c1, %c1_8, %c0_9] : memref<2x18x18x4xf32, #tpu.memory_space<vmem>>, vector<2x16x16x4xf32>
    tpu.vector_store %arg6[%c0_7, %c1, %c1_8, %c0_9], %2 {strides = array<i32>} : memref<2x18x18x4xf32, #tpu.memory_space<vmem>>, vector<2x16x16x4xf32>,
    %cst_10 = arith.constant 0.000000e+00 : f32
    %4 = vector.broadcast %cst_10 : f32 to vector<2x16x16x4xf32>
    %c0_11 = arith.constant 0 : index
    %c0_12 = arith.constant 0 : index
    %5 = vector.load %arg2[%c0_11, %c0_12] : memref<9x4xf32, #tpu.memory_space<vmem>>, vector<1x4xf32>
    %c0_13 = arith.constant 0 : index
    %c0_14 = arith.constant 0 : index
    %c0_15 = arith.constant 0 : index
    %c0_16 = arith.constant 0 : index
    %6 = vector.load %arg6[%c0_13, %c0_14, %c0_15, %c0_16] : memref<2x18x18x4xf32, #tpu.memory_space<vmem>>, vector<2x16x16x4xf32>
    %7 = vector.shape_cast %5 : vector<1x4xf32> to vector<1x1x1x4xf32>
    %8 = vector.broadcast %7 : vector<1x1x1x4xf32> to vector<2x16x16x4xf32>
    %9 = arith.mulf %6, %8 : vector<2x16x16x4xf32>
    %10 = arith.addf %4, %9 : vector<2x16x16x4xf32>
    %c1_17 = arith.constant 1 : index
    %c0_18 = arith.constant 0 : index
    %11 = vector.load %arg2[%c1_17, %c0_18] : memref<9x4xf32, #tpu.memory_space<vmem>>, vector<1x4xf32>
    %c0_19 = arith.constant 0 : index
    %c0_20 = arith.constant 0 : index
    %c1_21 = arith.constant 1 : index
    %c0_22 = arith.constant 0 : index
    %12 = vector.load %arg6[%c0_19, %c0_20, %c1_21, %c0_22] : memref<2x18x18x4xf32, #tpu.memory_space<vmem>>, vector<2x16x16x4xf32>
    %13 = vector.shape_cast %11 : vector<1x4xf32> to vector<1x1x1x4xf32>
    %14 = vector.broadcast %13 : vector<1x1x1x4xf32> to vector<2x16x16x4xf32>
    %15 = arith.mulf %12, %14 : vector<2x16x16x4xf32>
    %16 = arith.addf %10, %15 : vector<2x16x16x4xf32>
    %c2 = arith.constant 2 : index
    %c0_23 = arith.constant 0 : index
    %17 = vector.load %arg2[%c2, %c0_23] : memref<9x4xf32, #tpu.memory_space<vmem>>, vector<1x4xf32>
    %c0_24 = arith.constant 0 : index
    %c0_25 = arith.constant 0 : index
    %c2_26 = arith.constant 2 : index
    %c0_27 = arith.constant 0 : index
    %18 = vector.load %arg6[%c0_24, %c0_25, %c2_26, %c0_27] : memref<2x18x18x4xf32, #tpu.memory_space<vmem>>, vector<2x16x16x4xf32>
    %19 = vector.shape_cast %17 : vector<1x4xf32> to vector<1x1x1x4xf32>
    %20 = vector.broadcast %19 : vector<1x1x1x4xf32> to vector<2x16x16x4xf32>
    %21 = arith.mulf %18, %20 : vector<2x16x16x4xf32>
    %22 = arith.addf %16, %21 : vector<2x16x16x4xf32>
    %c3 = arith.constant 3 : index
    %c0_28 = arith.constant 0 : index
    %23 = vector.load %arg2[%c3, %c0_28] : memref<9x4xf32, #tpu.memory_space<vmem>>, vector<1x4xf32>
    %c0_29 = arith.constant 0 : index
    %c1_30 = arith.constant 1 : index
    %c0_31 = arith.constant 0 : index
    %c0_32 = arith.constant 0 : index
    %24 = vector.load %arg6[%c0_29, %c1_30, %c0_31, %c0_32] : memref<2x18x18x4xf32, #tpu.memory_space<vmem>>, vector<2x16x16x4xf32>
    %25 = vector.shape_cast %23 : vector<1x4xf32> to vector<1x1x1x4xf32>
    %26 = vector.broadcast %25 : vector<1x1x1x4xf32> to vector<2x16x16x4xf32>
    %27 = arith.mulf %24, %26 : vector<2x16x16x4xf32>
    %28 = arith.addf %22, %27 : vector<2x16x16x4xf32>
    %c4 = arith.constant 4 : index
    %c0_33 = arith.constant 0 : index
    %29 = vector.load %arg2[%c4, %c0_33] : memref<9x4xf32, #tpu.memory_space<vmem>>, vector<1x4xf32>
    %c0_34 = arith.constant 0 : index
    %c1_35 = arith.constant 1 : index
    %c1_36 = arith.constant 1 : index
    %c0_37 = arith.constant 0 : index
    %30 = vector.load %arg6[%c0_34, %c1_35, %c1_36, %c0_37] : memref<2x18x18x4xf32, #tpu.memory_space<vmem>>, vector<2x16x16x4xf32>
    %31 = vector.shape_cast %29 : vector<1x4xf32> to vector<1x1x1x4xf32>
    %32 = vector.broadcast %31 : vector<1x1x1x4xf32> to vector<2x16x16x4xf32>
    %33 = arith.mulf %30, %32 : vector<2x16x16x4xf32>
    %34 = arith.addf %28, %33 : vector<2x16x16x4xf32>
    %c5 = arith.constant 5 : index
    %c0_38 = arith.constant 0 : index
    %35 = vector.load %arg2[%c5, %c0_38] : memref<9x4xf32, #tpu.memory_space<vmem>>, vector<1x4xf32>
    %c0_39 = arith.constant 0 : index
    %c1_40 = arith.constant 1 : index
    %c2_41 = arith.constant 2 : index
    %c0_42 = arith.constant 0 : index
    %36 = vector.load %arg6[%c0_39, %c1_40, %c2_41, %c0_42] : memref<2x18x18x4xf32, #tpu.memory_space<vmem>>, vector<2x16x16x4xf32>
    %37 = vector.shape_cast %35 : vector<1x4xf32> to vector<1x1x1x4xf32>
    %38 = vector.broadcast %37 : vector<1x1x1x4xf32> to vector<2x16x16x4xf32>
    %39 = arith.mulf %36, %38 : vector<2x16x16x4xf32>
    %40 = arith.addf %34, %39 : vector<2x16x16x4xf32>
    %c6 = arith.constant 6 : index
    %c0_43 = arith.constant 0 : index
    %41 = vector.load %arg2[%c6, %c0_43] : memref<9x4xf32, #tpu.memory_space<vmem>>, vector<1x4xf32>
    %c0_44 = arith.constant 0 : index
    %c2_45 = arith.constant 2 : index
    %c0_46 = arith.constant 0 : index
    %c0_47 = arith.constant 0 : index
    %42 = vector.load %arg6[%c0_44, %c2_45, %c0_46, %c0_47] : memref<2x18x18x4xf32, #tpu.memory_space<vmem>>, vector<2x16x16x4xf32>
    %43 = vector.shape_cast %41 : vector<1x4xf32> to vector<1x1x1x4xf32>
    %44 = vector.broadcast %43 : vector<1x1x1x4xf32> to vector<2x16x16x4xf32>
    %45 = arith.mulf %42, %44 : vector<2x16x16x4xf32>
    %46 = arith.addf %40, %45 : vector<2x16x16x4xf32>
    %c7 = arith.constant 7 : index
    %c0_48 = arith.constant 0 : index
    %47 = vector.load %arg2[%c7, %c0_48] : memref<9x4xf32, #tpu.memory_space<vmem>>, vector<1x4xf32>
    %c0_49 = arith.constant 0 : index
    %c2_50 = arith.constant 2 : index
    %c1_51 = arith.constant 1 : index
    %c0_52 = arith.constant 0 : index
    %48 = vector.load %arg6[%c0_49, %c2_50, %c1_51, %c0_52] : memref<2x18x18x4xf32, #tpu.memory_space<vmem>>, vector<2x16x16x4xf32>
    %49 = vector.shape_cast %47 : vector<1x4xf32> to vector<1x1x1x4xf32>
    %50 = vector.broadcast %49 : vector<1x1x1x4xf32> to vector<2x16x16x4xf32>
    %51 = arith.mulf %48, %50 : vector<2x16x16x4xf32>
    %52 = arith.addf %46, %51 : vector<2x16x16x4xf32>
    %c8 = arith.constant 8 : index
    %c0_53 = arith.constant 0 : index
    %53 = vector.load %arg2[%c8, %c0_53] : memref<9x4xf32, #tpu.memory_space<vmem>>, vector<1x4xf32>
    %c0_54 = arith.constant 0 : index
    %c2_55 = arith.constant 2 : index
    %c2_56 = arith.constant 2 : index
    %c0_57 = arith.constant 0 : index
    %54 = vector.load %arg6[%c0_54, %c2_55, %c2_56, %c0_57] : memref<2x18x18x4xf32, #tpu.memory_space<vmem>>, vector<2x16x16x4xf32>
    %55 = vector.shape_cast %53 : vector<1x4xf32> to vector<1x1x1x4xf32>
    %56 = vector.broadcast %55 : vector<1x1x1x4xf32> to vector<2x16x16x4xf32>
    %57 = arith.mulf %54, %56 : vector<2x16x16x4xf32>
    %58 = arith.addf %52, %57 : vector<2x16x16x4xf32>
    %cst_58 = arith.constant dense<0.000000e+00> : vector<4xf32>
    %59 = vector.multi_reduction <add>, %58, %cst_58 [0, 1, 2] : vector<2x16x16x4xf32> to vector<4xf32>
    %60 = vector.shape_cast %59 : vector<4xf32> to vector<1x1x1x4xf32>
    %cst_59 = arith.constant 5.120000e+02 : f32
    %61 = vector.broadcast %cst_59 : f32 to vector<1x1x1x4xf32>
    %62 = arith.divf %60, %61 : vector<1x1x1x4xf32>
    %63 = vector.broadcast %62 : vector<1x1x1x4xf32> to vector<2x16x16x4xf32>
    %64 = arith.subf %58, %63 : vector<2x16x16x4xf32>
    %65 = vector.broadcast %62 : vector<1x1x1x4xf32> to vector<2x16x16x4xf32>
    %66 = arith.subf %58, %65 : vector<2x16x16x4xf32>
    %67 = arith.mulf %64, %66 : vector<2x16x16x4xf32>
    %cst_60 = arith.constant dense<0.000000e+00> : vector<4xf32>
    %68 = vector.multi_reduction <add>, %67, %cst_60 [0, 1, 2] : vector<2x16x16x4xf32> to vector<4xf32>
    %69 = vector.shape_cast %68 : vector<4xf32> to vector<1x1x1x4xf32>
    %cst_61 = arith.constant 5.120000e+02 : f32
    %70 = vector.broadcast %cst_61 : f32 to vector<1x1x1x4xf32>
    %71 = arith.divf %69, %70 : vector<1x1x1x4xf32>
    %72 = vector.broadcast %62 : vector<1x1x1x4xf32> to vector<2x16x16x4xf32>
    %73 = arith.subf %58, %72 : vector<2x16x16x4xf32>
    %cst_62 = arith.constant 9.99999974E-6 : f32
    %74 = vector.broadcast %cst_62 : f32 to vector<1x1x1x4xf32>
    %75 = arith.addf %71, %74 : vector<1x1x1x4xf32>
    %76 = math.rsqrt %75 : vector<1x1x1x4xf32>
    %77 = vector.broadcast %76 : vector<1x1x1x4xf32> to vector<2x16x16x4xf32>
    %78 = arith.mulf %73, %77 : vector<2x16x16x4xf32>
    %c0_63 = arith.constant 0 : index
    %c0_64 = arith.constant 0 : index
    %79 = vector.load %arg3[%c0_63, %c0_64] : memref<1x4xf32, #tpu.memory_space<vmem>>, vector<1x4xf32>
    %80 = vector.shape_cast %79 : vector<1x4xf32> to vector<1x1x1x4xf32>
    %81 = vector.broadcast %80 : vector<1x1x1x4xf32> to vector<2x16x16x4xf32>
    %82 = arith.mulf %78, %81 : vector<2x16x16x4xf32>
    %c0_65 = arith.constant 0 : index
    %c0_66 = arith.constant 0 : index
    %83 = vector.load %arg4[%c0_65, %c0_66] : memref<1x4xf32, #tpu.memory_space<vmem>>, vector<1x4xf32>
    %84 = vector.shape_cast %83 : vector<1x4xf32> to vector<1x1x1x4xf32>
    %85 = vector.broadcast %84 : vector<1x1x1x4xf32> to vector<2x16x16x4xf32>
    %86 = arith.addf %82, %85 : vector<2x16x16x4xf32>
    %cst_67 = arith.constant 0.000000e+00 : f32
    %87 = vector.broadcast %cst_67 : f32 to vector<2x16x16x4xf32>
    %88 = arith.maximumf %86, %87 : vector<2x16x16x4xf32>
    %c0_68 = arith.constant 0 : index
    %c0_69 = arith.constant 0 : index
    %c0_70 = arith.constant 0 : index
    %c0_71 = arith.constant 0 : index
    %89 = vector.load %arg5[%c0_68, %c0_69, %c0_70, %c0_71] : memref<2x16x16x4xf32, #tpu.memory_space<vmem>>, vector<2x16x16x4xf32>
    tpu.vector_store %arg5[%c0_68, %c0_69, %c0_70, %c0_71], %88 {strides = array<i32>} : memref<2x16x16x4xf32, #tpu.memory_space<vmem>>, vector<2x16x16x4xf32>,
    return
  }
  func.func @transform_0(%arg0: i32) -> (i32, i32, i32, i32) {
    %c0_i32 = arith.constant 0 : i32
    %c0_i32_0 = arith.constant 0 : i32
    %c0_i32_1 = arith.constant 0 : i32
    %c0_i32_2 = arith.constant 0 : i32
    return %c0_i32, %c0_i32_0, %c0_i32_1, %arg0 : i32, i32, i32, i32
  }
  func.func @transform_1(%arg0: i32) -> (i32, i32) {
    %c0_i32 = arith.constant 0 : i32
    %c0_i32_0 = arith.constant 0 : i32
    return %c0_i32, %arg0 : i32, i32
  }
  func.func @transform_2(%arg0: i32) -> (i32, i32) {
    %c0_i32 = arith.constant 0 : i32
    %c0_i32_0 = arith.constant 0 : i32
    return %c0_i32, %arg0 : i32, i32
  }
  func.func @transform_3(%arg0: i32) -> (i32, i32) {
    %c0_i32 = arith.constant 0 : i32
    %c0_i32_0 = arith.constant 0 : i32
    return %c0_i32, %arg0 : i32, i32
  }
  func.func @transform_4(%arg0: i32) -> (i32, i32, i32, i32) {
    %c0_i32 = arith.constant 0 : i32
    %c0_i32_0 = arith.constant 0 : i32
    %c0_i32_1 = arith.constant 0 : i32
    %c0_i32_2 = arith.constant 0 : i32
    return %c0_i32, %c0_i32_0, %c0_i32_1, %arg0 : i32, i32, i32, i32
  }
}

</mosaic_0001>

<bundles_post_ra>
// kernel: tpu_custom_call.1
= control target key start
LH: loop header
LB: loop body
LE: loop exit
PB: predicated region body
PF: predicated region fallthrough
CT: control target
= control target key end

     0   :  { %vm17_vm0 = vcmask 31744   ;;  %vm20_vm1 = vcmask 25600   ;;  %v2805_v0 = vmov 0.0   ;;  %s5535_s0 = inlined_call_operand.vmem [shape: f32[2,16,16,4], index: 0, kind: input, shape index: {}]   ;;  %s5536_s1 = inlined_call_operand.vmem [shape: f32[9,4], index: 1, kind: input, shape index: {}]   ;;  %s5537_s2 = inlined_call_operand.vmem [shape: f32[1,4], index: 2, kind: input, shape index: {}]   ;;  %s5538_s3 = inlined_call_operand.vmem [shape: f32[1,4], index: 3, kind: input, shape index: {}]   ;;  %s5539_s4 = inlined_call_operand.vmem [shape: f32[2,16,16,4], index: 4, kind: output, shape index: {}]  }
   0x1   :  { %18 = vst.msk [vmem:[#allocation2] sm:$0xff] %vm17_vm0, %v2805_v0  ;;  %19 = vst.msk [vmem:[#allocation2 + $0x8] sm:$0xff] %vm17_vm0, %v2805_v0  ;;  %v127_v1 = vld [vmem:[%s5535_s0] sm:$0xff]  ;;  %v128_v2 = vld [vmem:[%s5535_s0 + $0x8] sm:$0xff] }
   0x2   :  { %22 = vst.msk [vmem:[#allocation2 + $0x18] sm:$0xff] %vm17_vm0, %v2805_v0  ;;  %23 = vst.msk [vmem:[#allocation2 + $0x20] sm:$0xff] %vm17_vm0, %v2805_v0  ;;  %v129_v3 = vld [vmem:[%s5535_s0 + $0x10] sm:$0xff]  ;;  %v130_v4 = vld [vmem:[%s5535_s0 + $0x18] sm:$0xff] }
   0x3   :  { %25 = vst.msk [vmem:[#allocation2 + $0x30] sm:$0xff] %vm17_vm0, %v2805_v0  ;;  %26 = vst.msk [vmem:[#allocation2 + $0x38] sm:$0xff] %vm17_vm0, %v2805_v0  ;;  %v131_v5 = vld [vmem:[%s5535_s0 + $0x20] sm:$0xff]  ;;  %v132_v6 = vld [vmem:[%s5535_s0 + $0x28] sm:$0xff] }
   0x4   :  { %28 = vst.msk [vmem:[#allocation2 + $0x48] sm:$0xff] %vm17_vm0, %v2805_v0  ;;  %29 = vst.msk [vmem:[#allocation2 + $0x50] sm:$0xff] %vm17_vm0, %v2805_v0  ;;  %v133_v7 = vld [vmem:[%s5535_s0 + $0x30] sm:$0xff]  ;;  %v134_v8 = vld [vmem:[%s5535_s0 + $0x38] sm:$0xff] }
   0x5   :  { %31 = vst.msk [vmem:[#allocation2 + $0x60] sm:$0xff] %vm17_vm0, %v2805_v0  ;;  %32 = vst.msk [vmem:[#allocation2 + $0x68] sm:$0xff] %vm17_vm0, %v2805_v0  ;;  %v135_v9 = vld [vmem:[%s5535_s0 + $0x40] sm:$0xff]  ;;  %v136_v10 = vld [vmem:[%s5535_s0 + $0x48] sm:$0xff] }
   0x6   :  { %34 = vst.msk [vmem:[#allocation2 + $0x78] sm:$0xff] %vm17_vm0, %v2805_v0  ;;  %35 = vst.msk [vmem:[#allocation2 + $0x80] sm:$0xff] %vm17_vm0, %v2805_v0  ;;  %v137_v11 = vld [vmem:[%s5535_s0 + $0x50] sm:$0xff]  ;;  %v138_v12 = vld [vmem:[%s5535_s0 + $0x58] sm:$0xff] }
   0x7   :  { %37 = vst.msk [vmem:[#allocation2 + $0x90] sm:$0xff] %vm17_vm0, %v2805_v0  ;;  %38 = vst.msk [vmem:[#allocation2 + $0x98] sm:$0xff] %vm17_vm0, %v2805_v0  ;;  %v139_v13 = vld [vmem:[%s5535_s0 + $0x60] sm:$0xff]  ;;  %v140_v14 = vld [vmem:[%s5535_s0 + $0x68] sm:$0xff] }
   0x8   :  { %40 = vst.msk [vmem:[#allocation2 + $0xa8] sm:$0xff] %vm17_vm0, %v2805_v0  ;;  %41 = vst.msk [vmem:[#allocation2 + $0xb0] sm:$0xff] %vm17_vm0, %v2805_v0  ;;  %v141_v15 = vld [vmem:[%s5535_s0 + $0x70] sm:$0xff]  ;;  %v142_v16 = vld [vmem:[%s5535_s0 + $0x78] sm:$0xff] }
   0x9   :  { %43 = vst.msk [vmem:[#allocation2 + $0xc0] sm:$0xff] %vm17_vm0, %v2805_v0  ;;  %44 = vst.msk [vmem:[#allocation2 + $0xc8] sm:$0xff] %vm17_vm0, %v2805_v0  ;;  %v143_v17 = vld [vmem:[%s5535_s0 + $0x80] sm:$0xff]  ;;  %v144_v18 = vld [vmem:[%s5535_s0 + $0x88] sm:$0xff] }
   0xa   :  { %46 = vst.msk [vmem:[#allocation2 + $0xd8] sm:$0xff] %vm17_vm0, %v2805_v0  ;;  %47 = vst.msk [vmem:[#allocation2 + $0xe0] sm:$0xff] %vm17_vm0, %v2805_v0  ;;  %v145_v19 = vld [vmem:[%s5535_s0 + $0x90] sm:$0xff]  ;;  %v146_v20 = vld [vmem:[%s5535_s0 + $0x98] sm:$0xff] }
   0xb   :  { %49 = vst.msk [vmem:[#allocation2 + $0xf0] sm:$0xff] %vm17_vm0, %v2805_v0  ;;  %50 = vst.msk [vmem:[#allocation2 + $0xf8] sm:$0xff] %vm17_vm0, %v2805_v0  ;;  %v147_v21 = vld [vmem:[%s5535_s0 + $0xa0] sm:$0xff]  ;;  %v148_v22 = vld [vmem:[%s5535_s0 + $0xa8] sm:$0xff] }
   0xc   :  { %52 = vst.msk [vmem:[#allocation2 + $0x108] sm:$0xff] %vm17_vm0, %v2805_v0  ;;  %53 = vst.msk [vmem:[#allocation2 + $0x110] sm:$0xff] %vm17_vm0, %v2805_v0  ;;  %v149_v23 = vld [vmem:[%s5535_s0 + $0xb0] sm:$0xff]  ;;  %v150_v24 = vld [vmem:[%s5535_s0 + $0xb8] sm:$0xff] }
   0xd   :  { %55 = vst.msk [vmem:[#allocation2 + $0x120] sm:$0xff] %vm17_vm0, %v2805_v0  ;;  %56 = vst.msk [vmem:[#allocation2 + $0x128] sm:$0xff] %vm17_vm0, %v2805_v0  ;;  %v151_v25 = vld [vmem:[%s5535_s0 + $0xc0] sm:$0xff]  ;;  %v152_v26 = vld [vmem:[%s5535_s0 + $0xc8] sm:$0xff] }
   0xe   :  { %58 = vst.msk [vmem:[#allocation2 + $0x138] sm:$0xff] %vm17_vm0, %v2805_v0  ;;  %59 = vst.msk [vmem:[#allocation2 + $0x140] sm:$0xff] %vm17_vm0, %v2805_v0  ;;  %v153_v27 = vld [vmem:[%s5535_s0 + $0xd0] sm:$0xff]  ;;  %v154_v28 = vld [vmem:[%s5535_s0 + $0xd8] sm:$0xff] }
   0xf   :  { %61 = vst.msk [vmem:[#allocation2 + $0x150] sm:$0xff] %vm17_vm0, %v2805_v0  ;;  %62 = vst.msk [vmem:[#allocation2 + $0x158] sm:$0xff] %vm17_vm0, %v2805_v0  ;;  %v155_v29 = vld [vmem:[%s5535_s0 + $0xe0] sm:$0xff]  ;;  %v156_v30 = vld [vmem:[%s5535_s0 + $0xe8] sm:$0xff] }
  0x10   :  { %64 = vst.msk [vmem:[#allocation2 + $0x168] sm:$0xff] %vm17_vm0, %v2805_v0  ;;  %65 = vst.msk [vmem:[#allocation2 + $0x170] sm:$0xff] %vm17_vm0, %v2805_v0  ;;  %v157_v31 = vld [vmem:[%s5535_s0 + $0xf0] sm:$0xff]  ;;  %v158_v32 = vld [vmem:[%s5535_s0 + $0xf8] sm:$0xff] }
  0x11   :  { %67 = vst.msk [vmem:[#allocation2 + $0x180] sm:$0xff] %vm17_vm0, %v2805_v0  ;;  %68 = vst.msk [vmem:[#allocation2 + $0x188] sm:$0xff] %vm17_vm0, %v2805_v0  ;;  %v159_v33 = vld [vmem:[%s5535_s0 + $0x100] sm:$0xff]  ;;  %v160_v34 = vld [vmem:[%s5535_s0 + $0x108] sm:$0xff] }
  0x12   :  { %70 = vst.msk [vmem:[#allocation2 + $0x198] sm:$0xff] %vm17_vm0, %v2805_v0  ;;  %71 = vst.msk [vmem:[#allocation2 + $0x1a0] sm:$0xff] %vm17_vm0, %v2805_v0  ;;  %v161_v35 = vld [vmem:[%s5535_s0 + $0x110] sm:$0xff]  ;;  %v162_v36 = vld [vmem:[%s5535_s0 + $0x118] sm:$0xff] }
  0x13   :  { %73 = vst.msk [vmem:[#allocation2 + $0x1b0] sm:$0xff] %vm17_vm0, %v2805_v0  ;;  %74 = vst.msk [vmem:[#allocation2 + $0x1b8] sm:$0xff] %vm17_vm0, %v2805_v0  ;;  %v163_v37 = vld [vmem:[%s5535_s0 + $0x120] sm:$0xff]  ;;  %v164_v38 = vld [vmem:[%s5535_s0 + $0x128] sm:$0xff] }
  0x14   :  { %76 = vst.msk [vmem:[#allocation2 + $0x1c8] sm:$0xff] %vm17_vm0, %v2805_v0  ;;  %77 = vst.msk [vmem:[#allocation2 + $0x1d0] sm:$0xff] %vm17_vm0, %v2805_v0  ;;  %v165_v39 = vld [vmem:[%s5535_s0 + $0x130] sm:$0xff]  ;;  %v166_v40 = vld [vmem:[%s5535_s0 + $0x138] sm:$0xff] }
  0x15   :  { %79 = vst.msk [vmem:[#allocation2 + $0x1e0] sm:$0xff] %vm17_vm0, %v2805_v0  ;;  %80 = vst.msk [vmem:[#allocation2 + $0x1e8] sm:$0xff] %vm17_vm0, %v2805_v0  ;;  %v167_v41 = vld [vmem:[%s5535_s0 + $0x140] sm:$0xff]  ;;  %v168_v42 = vld [vmem:[%s5535_s0 + $0x148] sm:$0xff] }
  0x16   :  { %82 = vst.msk [vmem:[#allocation2 + $0x1f8] sm:$0xff] %vm17_vm0, %v2805_v0  ;;  %83 = vst.msk [vmem:[#allocation2 + $0x200] sm:$0xff] %vm17_vm0, %v2805_v0  ;;  %v169_v43 = vld [vmem:[%s5535_s0 + $0x150] sm:$0xff]  ;;  %v170_v44 = vld [vmem:[%s5535_s0 + $0x158] sm:$0xff] }
  0x17   :  { %85 = vst.msk [vmem:[#allocation2 + $0x210] sm:$0xff] %vm17_vm0, %v2805_v0  ;;  %86 = vst.msk [vmem:[#allocation2 + $0x218] sm:$0xff] %vm17_vm0, %v2805_v0  ;;  %v171_v45 = vld [vmem:[%s5535_s0 + $0x160] sm:$0xff]  ;;  %v172_v46 = vld [vmem:[%s5535_s0 + $0x168] sm:$0xff] }
  0x18   :  { %88 = vst.msk [vmem:[#allocation2 + $0x228] sm:$0xff] %vm17_vm0, %v2805_v0  ;;  %89 = vst.msk [vmem:[#allocation2 + $0x230] sm:$0xff] %vm17_vm0, %v2805_v0  ;;  %v173_v47 = vld [vmem:[%s5535_s0 + $0x170] sm:$0xff]  ;;  %v174_v48 = vld [vmem:[%s5535_s0 + $0x178] sm:$0xff] }
  0x19   :  { %91 = vst.msk [vmem:[#allocation2 + $0x240] sm:$0xff] %vm17_vm0, %v2805_v0  ;;  %92 = vst.msk [vmem:[#allocation2 + $0x248] sm:$0xff] %vm17_vm0, %v2805_v0  ;;  %v175_v49 = vld [vmem:[%s5535_s0 + $0x180] sm:$0xff]  ;;  %v176_v50 = vld [vmem:[%s5535_s0 + $0x188] sm:$0xff] }
  0x1a   :  { %94 = vst.msk [vmem:[#allocation2 + $0x258] sm:$0xff] %vm17_vm0, %v2805_v0  ;;  %95 = vst.msk [vmem:[#allocation2 + $0x260] sm:$0xff] %vm17_vm0, %v2805_v0  ;;  %v177_v51 = vld [vmem:[%s5535_s0 + $0x190] sm:$0xff]  ;;  %v178_v52 = vld [vmem:[%s5535_s0 + $0x198] sm:$0xff] }
  0x1b   :  { %97 = vst.msk [vmem:[#allocation2 + $0x270] sm:$0xff] %vm17_vm0, %v2805_v0  ;;  %98 = vst.msk [vmem:[#allocation2 + $0x278] sm:$0xff] %vm17_vm0, %v2805_v0  ;;  %v179_v53 = vld [vmem:[%s5535_s0 + $0x1a0] sm:$0xff]  ;;  %v180_v54 = vld [vmem:[%s5535_s0 + $0x1a8] sm:$0xff] }
  0x1c   :  { %100 = vst.msk [vmem:[#allocation2 + $0x288] sm:$0xff] %vm17_vm0, %v2805_v0  ;;  %101 = vst.msk [vmem:[#allocation2 + $0x290] sm:$0xff] %vm17_vm0, %v2805_v0  ;;  %v181_v55 = vld [vmem:[%s5535_s0 + $0x1b0] sm:$0xff]  ;;  %v182_v56 = vld [vmem:[%s5535_s0 + $0x1b8] sm:$0xff] }
  0x1d   :  { %103 = vst.msk [vmem:[#allocation2 + $0x2a0] sm:$0xff] %vm17_vm0, %v2805_v0  ;;  %104 = vst.msk [vmem:[#allocation2 + $0x2a8] sm:$0xff] %vm17_vm0, %v2805_v0  ;;  %v183_v57 = vld [vmem:[%s5535_s0 + $0x1c0] sm:$0xff]  ;;  %v184_v58 = vld [vmem:[%s5535_s0 + $0x1c8] sm:$0xff] }
  0x1e   :  { %106 = vst.msk [vmem:[#allocation2 + $0x2b8] sm:$0xff] %vm17_vm0, %v2805_v0  ;;  %107 = vst.msk [vmem:[#allocation2 + $0x2c0] sm:$0xff] %vm17_vm0, %v2805_v0  ;;  %v185_v59 = vld [vmem:[%s5535_s0 + $0x1d0] sm:$0xff]  ;;  %v186_v60 = vld [vmem:[%s5535_s0 + $0x1d8] sm:$0xff] }
  0x1f   :  { %109 = vst.msk [vmem:[#allocation2 + $0x2d0] sm:$0xff] %vm17_vm0, %v2805_v0  ;;  %110 = vst.msk [vmem:[#allocation2 + $0x2d8] sm:$0xff] %vm17_vm0, %v2805_v0  ;;  %v289_v61 = vld [vmem:[#allocation2 + $0x1b0] sm:$0xff]  ;;  %v187_v63 = vld [vmem:[%s5535_s0 + $0x1e0] sm:$0xff] }
  0x20   :  { %112 = vst.msk [vmem:[#allocation2 + $0x2e8] sm:$0xff] %vm17_vm0, %v2805_v0  ;;  %113 = vst.msk [vmem:[#allocation2 + $0x2f0] sm:$0xff] %vm17_vm0, %v2805_v0  ;;  %v486_v62 = vld [vmem:[#allocation2 + $0x1b1] sm:$0xff] }
  0x21   :  { %115 = vst.msk [vmem:[#allocation2 + $0x300] sm:$0xff] %vm17_vm0, %v2805_v0  ;;  %116 = vst.msk [vmem:[#allocation2 + $0x308] sm:$0xff] %vm17_vm0, %v2805_v0 }
  0x22   :  { %118 = vst.msk [vmem:[#allocation2 + $0x318] sm:$0xff] %vm17_vm0, %v2805_v0  ;;  %119 = vst.msk [vmem:[#allocation2 + $0x320] sm:$0xff] %vm17_vm0, %v2805_v0 }
  0x23   :  { %121 = vst.msk [vmem:[#allocation2 + $0x330] sm:$0xff] %vm17_vm0, %v2805_v0  ;;  %122 = vst.msk [vmem:[#allocation2 + $0x338] sm:$0xff] %vm17_vm0, %v2805_v0 }
  0x24   :  { %124 = vst.msk [vmem:[#allocation2 + $0x348] sm:$0xff] %vm17_vm0, %v2805_v0  ;;  %125 = vst.msk [vmem:[#allocation2 + $0x350] sm:$0xff] %vm17_vm0, %v2805_v0 }
  0x25   :  { %21 = vst.msk [vmem:[#allocation2 + $0x10] sm:$0x3] %vm20_vm1, %v2805_v0  ;;  %24 = vst.msk [vmem:[#allocation2 + $0x28] sm:$0x3] %vm20_vm1, %v2805_v0 }
  0x26   :  { %27 = vst.msk [vmem:[#allocation2 + $0x40] sm:$0x3] %vm20_vm1, %v2805_v0  ;;  %30 = vst.msk [vmem:[#allocation2 + $0x58] sm:$0x3] %vm20_vm1, %v2805_v0 }
  0x27   :  { %33 = vst.msk [vmem:[#allocation2 + $0x70] sm:$0x3] %vm20_vm1, %v2805_v0  ;;  %36 = vst.msk [vmem:[#allocation2 + $0x88] sm:$0x3] %vm20_vm1, %v2805_v0 }
  0x28   :  { %39 = vst.msk [vmem:[#allocation2 + $0xa0] sm:$0x3] %vm20_vm1, %v2805_v0  ;;  %42 = vst.msk [vmem:[#allocation2 + $0xb8] sm:$0x3] %vm20_vm1, %v2805_v0 }
  0x29   :  { %45 = vst.msk [vmem:[#allocation2 + $0xd0] sm:$0x3] %vm20_vm1, %v2805_v0  ;;  %48 = vst.msk [vmem:[#allocation2 + $0xe8] sm:$0x3] %vm20_vm1, %v2805_v0 }
  0x2a   :  { %51 = vst.msk [vmem:[#allocation2 + $0x100] sm:$0x3] %vm20_vm1, %v2805_v0  ;;  %54 = vst.msk [vmem:[#allocation2 + $0x118] sm:$0x3] %vm20_vm1, %v2805_v0 }
  0x2b   :  { %57 = vst.msk [vmem:[#allocation2 + $0x130] sm:$0x3] %vm20_vm1, %v2805_v0  ;;  %60 = vst.msk [vmem:[#allocation2 + $0x148] sm:$0x3] %vm20_vm1, %v2805_v0 }
  0x2c   :  { %63 = vst.msk [vmem:[#allocation2 + $0x160] sm:$0x3] %vm20_vm1, %v2805_v0  ;;  %66 = vst.msk [vmem:[#allocation2 + $0x178] sm:$0x3] %vm20_vm1, %v2805_v0 }
  0x2d   :  { %69 = vst.msk [vmem:[#allocation2 + $0x190] sm:$0x3] %vm20_vm1, %v2805_v0  ;;  %72 = vst.msk [vmem:[#allocation2 + $0x1a8] sm:$0x3] %vm20_vm1, %v2805_v0 }
  0x2e   :  { %75 = vst.msk [vmem:[#allocation2 + $0x1c0] sm:$0x3] %vm20_vm1, %v2805_v0  ;;  %78 = vst.msk [vmem:[#allocation2 + $0x1d8] sm:$0x3] %vm20_vm1, %v2805_v0 }
  0x2f   :  { %81 = vst.msk [vmem:[#allocation2 + $0x1f0] sm:$0x3] %vm20_vm1, %v2805_v0  ;;  %84 = vst.msk [vmem:[#allocation2 + $0x208] sm:$0x3] %vm20_vm1, %v2805_v0 }
  0x30   :  { %87 = vst.msk [vmem:[#allocation2 + $0x220] sm:$0x3] %vm20_vm1, %v2805_v0  ;;  %90 = vst.msk [vmem:[#allocation2 + $0x238] sm:$0x3] %vm20_vm1, %v2805_v0 }
  0x31   :  { %93 = vst.msk [vmem:[#allocation2 + $0x250] sm:$0x3] %vm20_vm1, %v2805_v0  ;;  %96 = vst.msk [vmem:[#allocation2 + $0x268] sm:$0x3] %vm20_vm1, %v2805_v0 }
  0x32   :  { %99 = vst.msk [vmem:[#allocation2 + $0x280] sm:$0x3] %vm20_vm1, %v2805_v0  ;;  %102 = vst.msk [vmem:[#allocation2 + $0x298] sm:$0x3] %vm20_vm1, %v2805_v0 }
  0x33   :  { %105 = vst.msk [vmem:[#allocation2 + $0x2b0] sm:$0x3] %vm20_vm1, %v2805_v0  ;;  %108 = vst.msk [vmem:[#allocation2 + $0x2c8] sm:$0x3] %vm20_vm1, %v2805_v0 }
  0x34   :  { %111 = vst.msk [vmem:[#allocation2 + $0x2e0] sm:$0x3] %vm20_vm1, %v2805_v0  ;;  %114 = vst.msk [vmem:[#allocation2 + $0x2f8] sm:$0x3] %vm20_vm1, %v2805_v0 }
  0x35   :  { %117 = vst.msk [vmem:[#allocation2 + $0x310] sm:$0x3] %vm20_vm1, %v2805_v0  ;;  %120 = vst.msk [vmem:[#allocation2 + $0x328] sm:$0x3] %vm20_vm1, %v2805_v0 }
  0x36   :  { %123 = vst.msk [vmem:[#allocation2 + $0x340] sm:$0x3] %vm20_vm1, %v2805_v0  ;;  %126 = vst.msk [vmem:[#allocation2 + $0x358] sm:$0x3] %vm20_vm1, %v2805_v0  ;;  %v3294_v0 = vld [vmem:[%s5536_s1] ss:$0 sm:$0xff] }
  0x37   :  { %192 = vst.msk [vmem:[#allocation2 + $0x19] sm:$0xff] %vm17_vm0, %v127_v1  ;;  %193 = vst.msk [vmem:[#allocation2 + $0x21] sm:$0xff] %vm17_vm0, %v128_v2  ;;  %v3299_v1 = vld [vmem:[%s5536_s1 + $0x1] ss:$0 sm:$0xff]  ;;  %v357_v2 = vmul.f32 %v3294_v0, %v289_v61 }
  0x38   :  { %194 = vst.msk [vmem:[#allocation2 + $0x31] sm:$0xff] %vm17_vm0, %v129_v3  ;;  %195 = vst.msk [vmem:[#allocation2 + $0x39] sm:$0xff] %vm17_vm0, %v130_v4  ;;  %v554_v3 = vmul.f32 %v3299_v1, %v486_v62  ;;  %v188_v4 = vld [vmem:[%s5535_s0 + $0x1e8] sm:$0xff] }
  0x39   :  { %196 = vst.msk [vmem:[#allocation2 + $0x49] sm:$0xff] %vm17_vm0, %v131_v5  ;;  %197 = vst.msk [vmem:[#allocation2 + $0x51] sm:$0xff] %vm17_vm0, %v132_v6  ;;  %v290_v5 = vld [vmem:[#allocation2 + $0x1b8] sm:$0xff] }
  0x3a   :  { %198 = vst.msk [vmem:[#allocation2 + $0x61] sm:$0xff] %vm17_vm0, %v133_v7  ;;  %199 = vst.msk [vmem:[#allocation2 + $0x69] sm:$0xff] %vm17_vm0, %v134_v8  ;;  %v683_v6 = vld [vmem:[#allocation2 + $0x1b2] sm:$0xff]  ;;  %v3309_v8 = vld [vmem:[%s5536_s1 + $0x2] ss:$0 sm:$0xff] }
  0x3b   :  { %200 = vst.msk [vmem:[#allocation2 + $0x79] sm:$0xff] %vm17_vm0, %v135_v9  ;;  %201 = vst.msk [vmem:[#allocation2 + $0x81] sm:$0xff] %vm17_vm0, %v136_v10  ;;  %v487_v7 = vld [vmem:[#allocation2 + $0x1b9] sm:$0xff]  ;;  %v258_v9 = vld [vmem:[#allocation2 + $0x8] sm:$0xff] }
  0x3c   :  { %202 = vst.msk [vmem:[#allocation2 + $0x91] sm:$0xff] %vm17_vm0, %v137_v11  ;;  %203 = vst.msk [vmem:[#allocation2 + $0x99] sm:$0xff] %vm17_vm0, %v138_v12  ;;  %v1470_v10 = vld [vmem:[#allocation2 + $0x198] sm:$0xff]  ;;  %v1471_v11 = vld [vmem:[#allocation2 + $0x1a0] sm:$0xff] }
  0x3d   :  { %204 = vst.msk [vmem:[#allocation2 + $0xa9] sm:$0xff] %vm17_vm0, %v139_v13  ;;  %205 = vst.msk [vmem:[#allocation2 + $0xb1] sm:$0xff] %vm17_vm0, %v140_v14  ;;  %v1667_v12 = vld [vmem:[#allocation2 + $0x199] sm:$0xff]  ;;  %v455_v14 = vld [vmem:[#allocation2 + $0x9] sm:$0xff] }
  0x3e   :  { %206 = vst.msk [vmem:[#allocation2 + $0xc1] sm:$0xff] %vm17_vm0, %v141_v15  ;;  %207 = vst.msk [vmem:[#allocation2 + $0xc9] sm:$0xff] %vm17_vm0, %v142_v16  ;;  %v1864_v13 = vld [vmem:[#allocation2 + $0x19a] sm:$0xff]  ;;  %v3315_v15 = vld [vmem:[%s5536_s1 + $0x6] ss:$0 sm:$0xff]  ;;  %v358_v16 = vmul.f32 %v3294_v0, %v290_v5 }
  0x3f   :  { %208 = vst.msk [vmem:[#allocation2 + $0xd9] sm:$0xff] %vm17_vm0, %v143_v17  ;;  %209 = vst.msk [vmem:[#allocation2 + $0xe1] sm:$0xff] %vm17_vm0, %v144_v18  ;;  %v555_v17 = vmul.f32 %v3299_v1, %v487_v7  ;;  %v618_v18 = vadd.f32 %v554_v3, %v357_v2 }
  0x40   :  { %210 = vst.msk [vmem:[#allocation2 + $0xf1] sm:$0xff] %vm17_vm0, %v145_v19  ;;  %211 = vst.msk [vmem:[#allocation2 + $0xf9] sm:$0xff] %vm17_vm0, %v146_v20  ;;  %v684_v19 = vld [vmem:[#allocation2 + $0x1ba] sm:$0xff]  ;;  %v657_v62 = vld [vmem:[#allocation2 + $0x4a] sm:$0xff] }
  0x41   :  { %212 = vst.msk [vmem:[#allocation2 + $0x109] sm:$0xff] %vm17_vm0, %v147_v21  ;;  %213 = vst.msk [vmem:[#allocation2 + $0x111] sm:$0xff] %vm17_vm0, %v148_v22  ;;  %v1668_v20 = vld [vmem:[#allocation2 + $0x1a1] sm:$0xff]  ;;  %v751_v22 = vmul.f32 %v3309_v8, %v683_v6 }
  0x42   :  { %214 = vst.msk [vmem:[#allocation2 + $0x121] sm:$0xff] %vm17_vm0, %v149_v23  ;;  %215 = vst.msk [vmem:[#allocation2 + $0x129] sm:$0xff] %vm17_vm0, %v150_v24  ;;  %v1865_v21 = vld [vmem:[#allocation2 + $0x1a2] sm:$0xff] }
  0x43   :  { %216 = vst.msk [vmem:[#allocation2 + $0x139] sm:$0xff] %vm17_vm0, %v151_v25  ;;  %217 = vst.msk [vmem:[#allocation2 + $0x141] sm:$0xff] %vm17_vm0, %v152_v26  ;;  %v3323_v23 = vld [vmem:[%s5536_s1 + $0x7] ss:$0 sm:$0xff]  ;;  %v3328_v24 = vld [vmem:[%s5536_s1 + $0x8] ss:$0 sm:$0xff] }
  0x44   :  { %218 = vst.msk [vmem:[#allocation2 + $0x151] sm:$0xff] %vm17_vm0, %v153_v27  ;;  %219 = vst.msk [vmem:[#allocation2 + $0x159] sm:$0xff] %vm17_vm0, %v154_v28  ;;  %v260_v25 = vld [vmem:[#allocation2 + $0x20] sm:$0xff]  ;;  %v261_v27 = vld [vmem:[#allocation2 + $0x30] sm:$0xff] }
  0x45   :  { %220 = vst.msk [vmem:[#allocation2 + $0x169] sm:$0xff] %vm17_vm0, %v155_v29  ;;  %221 = vst.msk [vmem:[#allocation2 + $0x171] sm:$0xff] %vm17_vm0, %v156_v30  ;;  %v457_v26 = vld [vmem:[#allocation2 + $0x21] sm:$0xff]  ;;  %v3333_v29 = vmul.f32 %v3294_v0, %v258_v9  ;;  %v3335_v30 = vld [vmem:[#allocation2 + $0x49] sm:$0xff] }
  0x46   :  { %222 = vst.msk [vmem:[#allocation2 + $0x181] sm:$0xff] %vm17_vm0, %v157_v31  ;;  %223 = vst.msk [vmem:[#allocation2 + $0x189] sm:$0xff] %vm17_vm0, %v158_v32  ;;  %v3330_v28 = vld [vmem:[#allocation2 + $0x48] sm:$0xff]  ;;  %v3337_v31 = vld [vmem:[#allocation2 + $0x50] sm:$0xff] }
  0x47   :  { %224 = vst.msk [vmem:[#allocation2 + $0x1c9] sm:$0xff] %vm17_vm0, %v159_v33  ;;  %225 = vst.msk [vmem:[#allocation2 + $0x1d1] sm:$0xff] %vm17_vm0, %v160_v34  ;;  %v3339_v32 = vld [vmem:[#allocation2 + $0x51] sm:$0xff]  ;;  %v3342_v33 = vmul.f32 %v3315_v15, %v1470_v10  ;;  %v3345_v34 = vmul.f32 %v3315_v15, %v1471_v11 }
  0x48   :  { %226 = vst.msk [vmem:[#allocation2 + $0x1e1] sm:$0xff] %vm17_vm0, %v161_v35  ;;  %227 = vst.msk [vmem:[#allocation2 + $0x1e9] sm:$0xff] %vm17_vm0, %v162_v36  ;;  %v3348_v35 = vmul.f32 %v3299_v1, %v455_v14  ;;  %v259_v36 = vld [vmem:[#allocation2 + $0x18] sm:$0xff] }
  0x49   :  { %228 = vst.msk [vmem:[#allocation2 + $0x1f9] sm:$0xff] %vm17_vm0, %v163_v37  ;;  %229 = vst.msk [vmem:[#allocation2 + $0x201] sm:$0xff] %vm17_vm0, %v164_v38  ;;  %v456_v37 = vld [vmem:[#allocation2 + $0x19] sm:$0xff]  ;;  %v752_v38 = vmul.f32 %v3309_v8, %v684_v19  ;;  %v3393_v7 = vmul.f32 %v3294_v0, %v259_v36  ;;  %v266_v19 = vld [vmem:[#allocation2 + $0x68] sm:$0xff] }
  0x4a   :  { %230 = vst.msk [vmem:[#allocation2 + $0x211] sm:$0xff] %vm17_vm0, %v165_v39  ;;  %231 = vst.msk [vmem:[#allocation2 + $0x219] sm:$0xff] %vm17_vm0, %v166_v40  ;;  %v458_v39 = vld [vmem:[#allocation2 + $0x31] sm:$0xff]  ;;  %v3396_v9 = vmul.f32 %v3299_v1, %v456_v37  ;;  %v3415_v37 = vld [vmem:[%s5536_s1 + $0x3] ss:$0 sm:$0xff] }
  0x4b   :  { %232 = vst.msk [vmem:[#allocation2 + $0x229] sm:$0xff] %vm17_vm0, %v167_v41  ;;  %233 = vst.msk [vmem:[#allocation2 + $0x231] sm:$0xff] %vm17_vm0, %v168_v42  ;;  %v262_v40 = vld [vmem:[#allocation2 + $0x38] sm:$0xff]  ;;  %v3352_v42 = vmul.f32 %v3323_v23, %v1667_v12  ;;  %v526_v61 = vmul.f32 %v3299_v1, %v458_v39 }
  0x4c   :  { %234 = vst.msk [vmem:[#allocation2 + $0x241] sm:$0xff] %vm17_vm0, %v169_v43  ;;  %235 = vst.msk [vmem:[#allocation2 + $0x249] sm:$0xff] %vm17_vm0, %v170_v44  ;;  %v459_v41 = vld [vmem:[#allocation2 + $0x39] sm:$0xff]  ;;  %v3355_v43 = vmul.f32 %v3328_v24, %v1864_v13  ;;  %v619_v44 = vadd.f32 %v555_v17, %v358_v16  ;;  %v330_v2 = vmul.f32 %v3294_v0, %v262_v40  ;;  %v659_v13 = vld [vmem:[#allocation2 + $0x62] sm:$0xff] }
  0x4d   :  { %236 = vst.msk [vmem:[#allocation2 + $0x259] sm:$0xff] %vm17_vm0, %v171_v45  ;;  %237 = vst.msk [vmem:[#allocation2 + $0x261] sm:$0xff] %vm17_vm0, %v172_v46  ;;  %v3357_v45 = vadd.f32 %v751_v22, %v618_v18  ;;  %v265_v46 = vld [vmem:[#allocation2 + $0x60] sm:$0xff]  ;;  %v527_v3 = vmul.f32 %v3299_v1, %v459_v41  ;;  %v725_v17 = vmul.f32 %v3309_v8, %v657_v62 }
  0x4e   :  { %238 = vst.msk [vmem:[#allocation2 + $0x271] sm:$0xff] %vm17_vm0, %v173_v47  ;;  %239 = vst.msk [vmem:[#allocation2 + $0x279] sm:$0xff] %vm17_vm0, %v174_v48  ;;  %v3359_v47 = vld [vmem:[#allocation2 + $0x61] sm:$0xff]  ;;  %v3362_v48 = vmul.f32 %v3323_v23, %v1668_v20  ;;  %v333_v5 = vmul.f32 %v3294_v0, %v265_v46  ;;  %v463_v20 = vld [vmem:[#allocation2 + $0x69] sm:$0xff]  ;;  %v727_v41 = vmul.f32 %v3309_v8, %v659_v13 }
  0x4f   :  { %240 = vst.msk [vmem:[#allocation2 + $0x289] sm:$0xff] %vm17_vm0, %v175_v49  ;;  %241 = vst.msk [vmem:[#allocation2 + $0x291] sm:$0xff] %vm17_vm0, %v176_v50  ;;  %v3365_v49 = vmul.f32 %v3328_v24, %v1865_v21  ;;  %v189_v50 = vld [vmem:[%s5535_s0 + $0x1f0] sm:$0xff]  ;;  %v530_v6 = vmul.f32 %v3299_v1, %v3359_v47  ;;  %v656_v12 = vld [vmem:[#allocation2 + $0x3a] sm:$0xff] }
  0x50   :  { %242 = vst.msk [vmem:[#allocation2 + $0x2a1] sm:$0xff] %vm17_vm0, %v177_v51  ;;  %243 = vst.msk [vmem:[#allocation2 + $0x2a9] sm:$0xff] %vm17_vm0, %v178_v52  ;;  %v653_v51 = vld [vmem:[#allocation2 + $0x1a] sm:$0xff]  ;;  %v654_v52 = vld [vmem:[#allocation2 + $0x22] sm:$0xff]  ;;  %v724_v36 = vmul.f32 %v3309_v8, %v656_v12 }
  0x51   :  { %244 = vst.msk [vmem:[#allocation2 + $0x2b9] sm:$0xff] %vm17_vm0, %v179_v53  ;;  %245 = vst.msk [vmem:[#allocation2 + $0x2c1] sm:$0xff] %vm17_vm0, %v180_v54  ;;  %v331_v53 = vmul.f32 %v3294_v0, %v3330_v28  ;;  %v528_v54 = vmul.f32 %v3299_v1, %v3335_v30  ;;  %v3399_v10 = vmul.f32 %v3309_v8, %v653_v51  ;;  %v464_v51 = vld [vmem:[#allocation2 + $0x79] sm:$0xff] }
  0x52   :  { %246 = vst.msk [vmem:[#allocation2 + $0x2d1] sm:$0xff] %vm17_vm0, %v181_v55  ;;  %247 = vst.msk [vmem:[#allocation2 + $0x2d9] sm:$0xff] %vm17_vm0, %v182_v56  ;;  %v332_v55 = vmul.f32 %v3294_v0, %v3337_v31  ;;  %v529_v56 = vmul.f32 %v3299_v1, %v3339_v32  ;;  %v3402_v11 = vmul.f32 %v3309_v8, %v654_v52 }
  0x53   :  { %248 = vst.msk [vmem:[#allocation2 + $0x2e9] sm:$0xff] %vm17_vm0, %v183_v57  ;;  %249 = vst.msk [vmem:[#allocation2 + $0x2f1] sm:$0xff] %vm17_vm0, %v184_v58  ;;  %v190_v57 = vld [vmem:[%s5535_s0 + $0x1f8] sm:$0xff]  ;;  %v328_v58 = vmul.f32 %v3294_v0, %v260_v25  ;;  %v592_v14 = vadd.f32 %v528_v54, %v331_v53  ;;  %v3408_v25 = vadd.f32 %v752_v38, %v619_v44  ;;  %v3428_v44 = vld [vmem:[%s5536_s1 + $0x4] ss:$0 sm:$0xff] }
  0x54   :  { %250 = vst.msk [vmem:[#allocation2 + $0x301] sm:$0xff] %vm17_vm0, %v185_v59  ;;  %251 = vst.msk [vmem:[#allocation2 + $0x309] sm:$0xff] %vm17_vm0, %v186_v60  ;;  %v525_v59 = vmul.f32 %v3299_v1, %v457_v26  ;;  %v329_v60 = vmul.f32 %v3294_v0, %v261_v27  ;;  %v593_v16 = vadd.f32 %v529_v56, %v332_v55 }
  0x55   :  { %252 = vst.msk [vmem:[#allocation2 + $0x319] sm:$0xff] %vm17_vm0, %v187_v63  ;;  %253 = vst.msk [vmem:[#allocation2 + $0x321] sm:$0xff] %vm17_vm0, %v188_v4  ;;  %v658_v63 = vld [vmem:[#allocation2 + $0x52] sm:$0xff]  ;;  %v591_v27 = vadd.f32 %v527_v3, %v330_v2  ;;  %v594_v39 = vadd.f32 %v530_v6, %v333_v5  ;;  %v3419_v52 = vmul.f32 %v3415_v37, %v262_v40  ;;  %v661_v6 = vld [vmem:[#allocation2 + $0x7a] sm:$0xff] }
  0x56   :  { %254 = vst.msk [vmem:[#allocation2 + $0x331] sm:$0xff] %vm17_vm0, %v189_v50  ;;  %255 = vst.msk [vmem:[#allocation2 + $0x339] sm:$0xff] %vm17_vm0, %v190_v57  ;;  %v655_v4 = vld [vmem:[#allocation2 + $0x32] sm:$0xff]  ;;  %v726_v18 = vmul.f32 %v3309_v8, %v658_v63  ;;  %v3406_v21 = vadd.f32 %v525_v59, %v328_v58  ;;  %v590_v22 = vadd.f32 %v526_v61, %v329_v60  ;;  %v660_v58 = vld [vmem:[#allocation2 + $0x6a] sm:$0xff] }
  0x57   :  { %v723_v26 = vmul.f32 %v3309_v8, %v655_v4  ;;  %v267_v50 = vld [vmem:[#allocation2 + $0x78] sm:$0xff]  ;;  %v3423_v38 = vmul.f32 %v3415_v37, %v3330_v28  ;;  %v334_v53 = vmul.f32 %v3294_v0, %v266_v19  ;;  %v531_v54 = vmul.f32 %v3299_v1, %v463_v20  ;;  %v268_v59 = vld [vmem:[#allocation2 + $0x80] sm:$0xff] }
  0x58   :  { %v789_v55 = vadd.f32 %v725_v17, %v592_v14  ;;  %v790_v56 = vadd.f32 %v726_v18, %v593_v16  ;;  %v922_v57 = vmul.f32 %v3415_v37, %v265_v46  ;;  %v923_v40 = vmul.f32 %v3415_v37, %v266_v19  ;;  %v465_v60 = vld [vmem:[#allocation2 + $0x81] sm:$0xff] }
  0x59   :  { %5601 = vst [vmem:[#allocation3_spill] sm:$0xff] %v3423_v38  ;;  %v3434_v28 = vadd.f32 %v723_v26, %v590_v22  ;;  %v3438_v61 = vmul.f32 %v3428_v44, %v3335_v30  ;;  %v335_v62 = vmul.f32 %v3294_v0, %v267_v50  ;;  %v532_v2 = vmul.f32 %v3299_v1, %v464_v51  ;;  %v3451_v17 = vld [vmem:[%s5536_s1 + $0x5] ss:$0 sm:$0xff] }
  0x5a   :  { %v788_v3 = vadd.f32 %v724_v36, %v591_v27  ;;  %v921_v4 = vmul.f32 %v3415_v37, %v3337_v31  ;;  %v791_v46 = vadd.f32 %v727_v41, %v594_v39  ;;  %v924_v5 = vmul.f32 %v3415_v37, %v267_v50  ;;  %v662_v26 = vld [vmem:[#allocation2 + $0x82] sm:$0xff] }
  0x5b   :  { %5602 = vst [vmem:[#allocation4_spill] sm:$0xff] %v3434_v28  ;;  %5603 = vst [vmem:[#allocation5_spill] sm:$0xff] %v3438_v61  ;;  %v595_v12 = vadd.f32 %v531_v54, %v334_v53  ;;  %v728_v14 = vmul.f32 %v3309_v8, %v660_v58  ;;  %v336_v16 = vmul.f32 %v3294_v0, %v268_v59 }
  0x5c   :  { %v533_v30 = vmul.f32 %v3299_v1, %v465_v60  ;;  %v986_v18 = vadd.f32 %v922_v57, %v789_v55  ;;  %v1119_v31 = vmul.f32 %v3428_v44, %v3359_v47  ;;  %v987_v19 = vadd.f32 %v923_v40, %v790_v56  ;;  %v466_v56 = vld [vmem:[#allocation2 + $0x91] sm:$0xff] }
  0x5d   :  { %v1120_v22 = vmul.f32 %v3428_v44, %v463_v20  ;;  %v3458_v27 = vmul.f32 %v3428_v44, %v3339_v32  ;;  %v3461_v36 = vmul.f32 %v3451_v17, %v658_v63  ;;  %v596_v39 = vadd.f32 %v532_v2, %v335_v62  ;;  %v269_v20 = vld [vmem:[#allocation2 + $0x90] sm:$0xff]  ;;  %v467_v62 = vld [vmem:[#allocation2 + $0x99] sm:$0xff] }
  0x5e   :  { %v729_v41 = vmul.f32 %v3309_v8, %v661_v6  ;;  %v3464_v53 = vadd.f32 %v921_v4, %v788_v3  ;;  %v3467_v54 = vmul.f32 %v3451_v17, %v659_v13  ;;  %v988_v47 = vadd.f32 %v924_v5, %v791_v46 }
  0x5f   :  { %5604 = vst [vmem:[#allocation6_spill] sm:$0xff] %v3458_v27  ;;  %5605 = vst [vmem:[#allocation7_spill] sm:$0xff] %v3461_v36  ;;  %v1121_v55 = vmul.f32 %v3428_v44, %v464_v51  ;;  %v792_v57 = vadd.f32 %v728_v14, %v595_v12  ;;  %v597_v40 = vadd.f32 %v533_v30, %v336_v16  ;;  %v270_v36 = vld [vmem:[#allocation2 + $0x98] sm:$0xff] }
  0x60   :  { %5606 = vst [vmem:[#allocation8_spill] sm:$0xff] %v3464_v53  ;;  %5607 = vst [vmem:[#allocation9_spill] sm:$0xff] %v3467_v54  ;;  %v730_v32 = vmul.f32 %v3309_v8, %v662_v26  ;;  %v925_v63 = vmul.f32 %v3415_v37, %v268_v59  ;;  %v3472_v2 = vadd.f32 %v1119_v31, %v986_v18  ;;  %v663_v31 = vld [vmem:[#allocation2 + $0x92] sm:$0xff] }
  0x61   :  { %v1184_v3 = vadd.f32 %v1120_v22, %v987_v19  ;;  %v1317_v4 = vmul.f32 %v3451_v17, %v660_v58  ;;  %v3476_v13 = vmul.f32 %v3315_v15, %v267_v50  ;;  %v793_v46 = vadd.f32 %v729_v41, %v596_v39  ;;  %v3485_v22 = vld [vmem:[#allocation2 + $0x9a] sm:$0xff]  ;;  %v271_v41 = vld [vmem:[#allocation2 + $0xa8] sm:$0xff]  ;;  %v469_v27 = vld [vmem:[#allocation2 + $0xb1] sm:$0xff] }
  0x62   :  { %5608 = vst [vmem:[#allocation10_spill] sm:$0xff] %v3472_v2  ;;  %v337_v51 = vmul.f32 %v3294_v0, %v269_v20  ;;  %v534_v5 = vmul.f32 %v3299_v1, %v466_v56  ;;  %v926_v12 = vmul.f32 %v3415_v37, %v269_v20  ;;  %v1185_v14 = vadd.f32 %v1121_v55, %v988_v47 }
  0x63   :  { %5609 = vst [vmem:[#allocation11_spill] sm:$0xff] %v3476_v13  ;;  %v1122_v16 = vmul.f32 %v3428_v44, %v465_v60  ;;  %v338_v30 = vmul.f32 %v3294_v0, %v270_v36  ;;  %v535_v18 = vmul.f32 %v3299_v1, %v467_v62  ;;  %v794_v19 = vadd.f32 %v730_v32, %v597_v40  ;;  %v468_v13 = vld [vmem:[#allocation2 + $0xa9] sm:$0xff] }
  0x64   :  { %v989_v58 = vadd.f32 %v925_v63, %v792_v57  ;;  %v1318_v50 = vmul.f32 %v3451_v17, %v661_v6  ;;  %v927_v39 = vmul.f32 %v3415_v37, %v270_v36  ;;  %v3488_v54 = vadd.f32 %v1317_v4, %v1184_v3  ;;  %v272_v63 = vld [vmem:[#allocation2 + $0xb0] sm:$0xff] }
  0x65   :  { %v1319_v47 = vmul.f32 %v3451_v17, %v662_v26  ;;  %v3492_v55 = vmul.f32 %v3315_v15, %v268_v59  ;;  %v3495_v2 = vmul.f32 %v3323_v23, %v465_v60  ;;  %v598_v40 = vadd.f32 %v534_v5, %v337_v51 }
  0x66   :  { %5610 = vst [vmem:[#allocation12_spill] sm:$0xff] %v3488_v54  ;;  %v990_v57 = vadd.f32 %v926_v12, %v793_v46  ;;  %v1123_v6 = vmul.f32 %v3428_v44, %v466_v56  ;;  %v731_v32 = vmul.f32 %v3309_v8, %v663_v31  ;;  %v599_v53 = vadd.f32 %v535_v18, %v338_v30  ;;  %v665_v46 = vld [vmem:[#allocation2 + $0xaa] sm:$0xff] }
  0x67   :  { %5611 = vst [vmem:[#allocation13_spill] sm:$0xff] %v3492_v55  ;;  %5612 = vst [vmem:[#allocation14_spill] sm:$0xff] %v3495_v2  ;;  %v732_v3 = vmul.f32 %v3309_v8, %v3485_v22  ;;  %v339_v26 = vmul.f32 %v3294_v0, %v271_v41  ;;  %v536_v59 = vmul.f32 %v3299_v1, %v468_v13 }
  0x68   :  { %v1186_v4 = vadd.f32 %v1122_v16, %v989_v58  ;;  %v1382_v55 = vadd.f32 %v1318_v50, %v1185_v14  ;;  %v991_v60 = vadd.f32 %v927_v39, %v794_v19  ;;  %v1124_v51 = vmul.f32 %v3428_v44, %v467_v62  ;;  %v666_v14 = vld [vmem:[#allocation2 + $0xb2] sm:$0xff] }
  0x69   :  { %v1516_v5 = vmul.f32 %v3315_v15, %v269_v20  ;;  %v3506_v12 = vmul.f32 %v3323_v23, %v466_v56  ;;  %v340_v30 = vmul.f32 %v3294_v0, %v272_v63  ;;  %v537_v18 = vmul.f32 %v3299_v1, %v469_v27 }
  0x6a   :  { %v1187_v2 = vadd.f32 %v1123_v6, %v990_v57  ;;  %v795_v54 = vadd.f32 %v731_v32, %v598_v40  ;;  %v1320_v61 = vmul.f32 %v3451_v17, %v663_v31  ;;  %v928_v16 = vmul.f32 %v3415_v37, %v271_v41  ;;  %v273_v57 = vld [vmem:[#allocation2 + $0xc0] sm:$0xff] }
  0x6b   :  { %5613 = vst [vmem:[#allocation15_spill] sm:$0xff] %v3506_v12  ;;  %v796_v19 = vadd.f32 %v732_v3, %v599_v53  ;;  %v600_v58 = vadd.f32 %v536_v59, %v339_v26  ;;  %v733_v50 = vmul.f32 %v3309_v8, %v665_v46  ;;  %v929_v20 = vmul.f32 %v3415_v37, %v272_v63 }
  0x6c   :  { %v1383_v39 = vadd.f32 %v1319_v47, %v1186_v4  ;;  %v1188_v56 = vadd.f32 %v1124_v51, %v991_v60  ;;  %v1321_v12 = vmul.f32 %v3451_v17, %v3485_v22  ;;  %v1517_v38 = vmul.f32 %v3315_v15, %v270_v36  ;;  %v470_v4 = vld [vmem:[#allocation2 + $0xc1] sm:$0xff] }
  0x6d   :  { %v3517_v40 = vadd.f32 %v1516_v5, %v1382_v55  ;;  %v1714_v6 = vmul.f32 %v3323_v23, %v467_v62  ;;  %v601_v32 = vadd.f32 %v537_v18, %v340_v30  ;;  %v734_v53 = vmul.f32 %v3309_v8, %v666_v14  ;;  %v274_v60 = vld [vmem:[#allocation2 + $0xc8] sm:$0xff] }
  0x6e   :  { %v1384_v3 = vadd.f32 %v1320_v61, %v1187_v2  ;;  %v992_v26 = vadd.f32 %v928_v16, %v795_v54  ;;  %v1125_v59 = vmul.f32 %v3428_v44, %v468_v13  ;;  %v1518_v47 = vmul.f32 %v3315_v15, %v271_v41 }
  0x6f   :  { %5614 = vst [vmem:[#allocation16_spill] sm:$0xff] %v3517_v40  ;;  %v797_v51 = vadd.f32 %v733_v50, %v600_v58  ;;  %v993_v28 = vadd.f32 %v929_v20, %v796_v19  ;;  %v1126_v36 = vmul.f32 %v3428_v44, %v469_v27  ;;  %v930_v55 = vmul.f32 %v3415_v37, %v273_v57 }
  0x70   :  { %v1385_v5 = vadd.f32 %v1321_v12, %v1188_v56  ;;  %v1581_v40 = vadd.f32 %v1517_v38, %v1383_v39  ;;  %v3526_v62 = vmul.f32 %v3328_v24, %v663_v31  ;;  %v1519_v61 = vmul.f32 %v3315_v15, %v272_v63  ;;  %v667_v12 = vld [vmem:[#allocation2 + $0xc2] sm:$0xff] }
  0x71   :  { %v798_v54 = vadd.f32 %v734_v53, %v601_v32  ;;  %v341_v2 = vmul.f32 %v3294_v0, %v273_v57  ;;  %v538_v41 = vmul.f32 %v3299_v1, %v470_v4  ;;  %v931_v30 = vmul.f32 %v3415_v37, %v274_v60  ;;  %v471_v53 = vld [vmem:[#allocation2 + $0xc9] sm:$0xff] }
  0x72   :  { %v1189_v18 = vadd.f32 %v1125_v59, %v992_v26  ;;  %v1582_v16 = vadd.f32 %v1518_v47, %v1384_v3  ;;  %v1715_v19 = vmul.f32 %v3323_v23, %v468_v13  ;;  %v1322_v58 = vmul.f32 %v3451_v17, %v665_v46 }
  0x73   :  { %v1190_v38 = vadd.f32 %v1126_v36, %v993_v28  ;;  %v1323_v31 = vmul.f32 %v3451_v17, %v666_v14  ;;  %v994_v50 = vadd.f32 %v930_v55, %v797_v51  ;;  %v1127_v63 = vmul.f32 %v3428_v44, %v470_v4 }
  0x74   :  { %v3536_v20 = vadd.f32 %v1714_v6, %v1581_v40  ;;  %v3540_v39 = vmul.f32 %v3328_v24, %v3485_v22  ;;  %v1583_v56 = vadd.f32 %v1519_v61, %v1385_v5  ;;  %v1716_v32 = vmul.f32 %v3323_v23, %v469_v27  ;;  %v275_v6 = vld [vmem:[#allocation2 + $0xd8] sm:$0xff] }
  0x75   :  { %v602_v13 = vadd.f32 %v538_v41, %v341_v2  ;;  %v735_v3 = vmul.f32 %v3309_v8, %v667_v12  ;;  %v995_v26 = vadd.f32 %v931_v30, %v798_v54  ;;  %v1128_v28 = vmul.f32 %v3428_v44, %v471_v53  ;;  %v472_v5 = vld [vmem:[#allocation2 + $0xd9] sm:$0xff]  ;;  %v668_v30 = vld [vmem:[#allocation2 + $0xca] sm:$0xff] }
  0x76   :  { %5615 = vst [vmem:[#allocation17_spill] sm:$0xff] %v3540_v39  ;;  %v1779_v59 = vadd.f32 %v1715_v19, %v1582_v16  ;;  %v1386_v47 = vadd.f32 %v1322_v58, %v1189_v18  ;;  %v1912_v51 = vmul.f32 %v3328_v24, %v665_v46  ;;  %v1520_v40 = vmul.f32 %v3315_v15, %v273_v57  ;;  %v473_v39 = vld [vmem:[#allocation2 + $0xe1] sm:$0xff] }
  0x77   :  { %v1387_v36 = vadd.f32 %v1323_v31, %v1190_v38  ;;  %v1191_v22 = vadd.f32 %v1127_v63, %v994_v50  ;;  %v1324_v55 = vmul.f32 %v3451_v17, %v667_v12  ;;  %v1521_v27 = vmul.f32 %v3315_v15, %v274_v60 }
  0x78   :  { %v1780_v61 = vadd.f32 %v1716_v32, %v1583_v56  ;;  %v1913_v2 = vmul.f32 %v3328_v24, %v666_v14  ;;  %v342_v54 = vmul.f32 %v3294_v0, %v274_v60  ;;  %v539_v41 = vmul.f32 %v3299_v1, %v471_v53  ;;  %v669_v56 = vld [vmem:[#allocation2 + $0xda] sm:$0xff] }
  0x79   :  { %v799_v18 = vadd.f32 %v735_v3, %v602_v13  ;;  %v1192_v46 = vadd.f32 %v1128_v28, %v995_v26  ;;  %v1325_v57 = vmul.f32 %v3451_v17, %v668_v30  ;;  %v932_v16 = vmul.f32 %v3415_v37, %v275_v6  ;;  %v276_v28 = vld [vmem:[#allocation2 + $0xe0] sm:$0xff] }
  0x7a   :  { %v1584_v19 = vadd.f32 %v1520_v40, %v1386_v47  ;;  %v1717_v58 = vmul.f32 %v3323_v23, %v470_v4  ;;  %v343_v38 = vmul.f32 %v3294_v0, %v275_v6  ;;  %v540_v31 = vmul.f32 %v3299_v1, %v472_v5 }
  0x7b   :  { %v1388_v50 = vadd.f32 %v1324_v55, %v1191_v22  ;;  %v1585_v14 = vadd.f32 %v1521_v27, %v1387_v36  ;;  %v1718_v60 = vmul.f32 %v3323_v23, %v471_v53  ;;  %v1522_v63 = vmul.f32 %v3315_v15, %v275_v6 }
  0x7c   :  { %v3559_v32 = vadd.f32 %v1912_v51, %v1779_v59  ;;  %v3561_v13 = vadd.f32 %v1913_v2, %v1780_v61  ;;  %v603_v3 = vadd.f32 %v539_v41, %v342_v54  ;;  %v736_v26 = vmul.f32 %v3309_v8, %v668_v30  ;;  %v277_v2 = vld [vmem:[#allocation2 + $0xf0] sm:$0xff] }
  0x7d   :  { %v1389_v4 = vadd.f32 %v1325_v57, %v1192_v46  ;;  %v996_v47 = vadd.f32 %v932_v16, %v799_v18  ;;  %v1129_v40 = vmul.f32 %v3428_v44, %v472_v5  ;;  %v1523_v36 = vmul.f32 %v3315_v15, %v276_v28  ;;  %v474_v54 = vld [vmem:[#allocation2 + $0xf1] sm:$0xff]  ;;  %v670_v57 = vld [vmem:[#allocation2 + $0xe2] sm:$0xff] }
  0x7e   :  { %5616 = vst [vmem:[#allocation18_spill] sm:$0xff] %v3559_v32  ;;  %5617 = vst [vmem:[#allocation19_spill] sm:$0xff] %v3561_v13  ;;  %v1781_v22 = vadd.f32 %v1717_v58, %v1584_v19  ;;  %v1914_v53 = vmul.f32 %v3328_v24, %v667_v12  ;;  %v604_v6 = vadd.f32 %v540_v31, %v343_v38 }
  0x7f   :  { %v737_v59 = vmul.f32 %v3309_v8, %v669_v56  ;;  %v1782_v51 = vadd.f32 %v1718_v60, %v1585_v14  ;;  %v1915_v55 = vmul.f32 %v3328_v24, %v668_v30  ;;  %v1586_v27 = vadd.f32 %v1522_v63, %v1388_v50 }
  0x80   :  { %v1719_v61 = vmul.f32 %v3323_v23, %v472_v5  ;;  %v800_v41 = vadd.f32 %v736_v26, %v603_v3  ;;  %v344_v18 = vmul.f32 %v3294_v0, %v276_v28  ;;  %v541_v46 = vmul.f32 %v3299_v1, %v473_v39  ;;  %v671_v26 = vld [vmem:[#allocation2 + $0xf2] sm:$0xff] }
  0x81   :  { %v933_v16 = vmul.f32 %v3415_v37, %v276_v28  ;;  %v1193_v12 = vadd.f32 %v1129_v40, %v996_v47  ;;  %v1326_v19 = vmul.f32 %v3451_v17, %v669_v56  ;;  %v1587_v58 = vadd.f32 %v1523_v36, %v1389_v4  ;;  %v278_v36 = vld [vmem:[#allocation2 + $0xf8] sm:$0xff] }
  0x82   :  { %v1720_v38 = vmul.f32 %v3323_v23, %v473_v39  ;;  %v801_v30 = vadd.f32 %v737_v59, %v604_v6  ;;  %v345_v31 = vmul.f32 %v3294_v0, %v277_v2  ;;  %v542_v5 = vmul.f32 %v3299_v1, %v474_v54  ;;  %v475_v6 = vld [vmem:[#allocation2 + $0xf9] sm:$0xff] }
  0x83   :  { %v934_v50 = vmul.f32 %v3415_v37, %v277_v2  ;;  %v3578_v14 = vadd.f32 %v1914_v53, %v1781_v22  ;;  %v3580_v60 = vadd.f32 %v1915_v55, %v1782_v51  ;;  %v1783_v63 = vadd.f32 %v1719_v61, %v1586_v27 }
  0x84   :  { %v738_v3 = vmul.f32 %v3309_v8, %v670_v57  ;;  %v605_v28 = vadd.f32 %v541_v46, %v344_v18  ;;  %v997_v47 = vadd.f32 %v933_v16, %v800_v41  ;;  %v1130_v4 = vmul.f32 %v3428_v44, %v473_v39  ;;  %v279_v18 = vld [vmem:[#allocation2 + $0x108] sm:$0xff] }
  0x85   :  { %5618 = vst [vmem:[#allocation20_spill] sm:$0xff] %v3578_v14  ;;  %5619 = vst [vmem:[#allocation21_spill] sm:$0xff] %v3580_v60  ;;  %v1916_v40 = vmul.f32 %v3328_v24, %v669_v56  ;;  %v1390_v59 = vadd.f32 %v1326_v19, %v1193_v12  ;;  %v1784_v13 = vadd.f32 %v1720_v38, %v1587_v58  ;;  %v3591_v61 = vsel %vm17_vm0, %v3578_v14, 0.0  ;;  %v672_v12 = vld [vmem:[#allocation2 + $0xfa] sm:$0xff]  ;;  %v476_v58 = vld [vmem:[#allocation2 + $0x109] sm:$0xff] }
  0x86   :  { %v1917_v32 = vmul.f32 %v3328_v24, %v670_v57  ;;  %v1524_v22 = vmul.f32 %v3315_v15, %v277_v2  ;;  %v606_v53 = vadd.f32 %v542_v5, %v345_v31  ;;  %v998_v51 = vadd.f32 %v934_v50, %v801_v30  ;;  %5620 = vst [vmem:[#allocation22_spill] sm:$0xff] %v3591_v61 }
  0x87   :  { %v1131_v55 = vmul.f32 %v3428_v44, %v474_v54  ;;  %v739_v27 = vmul.f32 %v3309_v8, %v671_v26  ;;  %v1327_v39 = vmul.f32 %v3451_v17, %v670_v57  ;;  %v346_v56 = vmul.f32 %v3294_v0, %v278_v36 }
  0x88   :  { %v543_v41 = vmul.f32 %v3299_v1, %v475_v6  ;;  %v802_v46 = vadd.f32 %v738_v3, %v605_v28  ;;  %v1194_v16 = vadd.f32 %v1130_v4, %v997_v47  ;;  %v3596_v2 = vadd.f32 %v1916_v40, %v1783_v63 }
  0x89   :  { %v935_v19 = vmul.f32 %v3415_v37, %v278_v36  ;;  %v3601_v38 = vsel %vm17_vm0, %v3580_v60, 0.0  ;;  %v3603_v30 = vadd.f32 %v1917_v32, %v1784_v13  ;;  %v1588_v57 = vadd.f32 %v1524_v22, %v1390_v59  ;;  %v280_v59 = vld [vmem:[#allocation2 + $0x110] sm:$0xff] }
  0x8a   :  { %5621 = vst [vmem:[#allocation23_spill] sm:$0xff] %v3596_v2  ;;  %5622 = vst [vmem:[#allocation24_spill] sm:$0xff] %v3601_v38  ;;  %v1721_v31 = vmul.f32 %v3323_v23, %v474_v54  ;;  %v1195_v5 = vadd.f32 %v1131_v55, %v998_v51  ;;  %v803_v50 = vadd.f32 %v739_v27, %v606_v53  ;;  %v3613_v32 = vsel %vm17_vm0, %v3596_v2, 0.0  ;;  %v673_v22 = vld [vmem:[#allocation2 + $0x10a] sm:$0xff] }
  0x8b   :  { %5623 = vst [vmem:[#allocation25_spill] sm:$0xff] %v3603_v30  ;;  %v1328_v3 = vmul.f32 %v3451_v17, %v671_v26  ;;  %v936_v63 = vmul.f32 %v3415_v37, %v279_v18  ;;  %v607_v28 = vadd.f32 %v543_v41, %v346_v56  ;;  %v740_v47 = vmul.f32 %v3309_v8, %v672_v12 }
  0x8c   :  { %v347_v4 = vmul.f32 %v3294_v0, %v279_v18  ;;  %v544_v40 = vmul.f32 %v3299_v1, %v476_v58  ;;  %v1391_v60 = vadd.f32 %v1327_v39, %v1194_v16  ;;  %5624 = vst [vmem:[#allocation26_spill] sm:$0xff] %v3613_v32  ;;  %v999_v13 = vadd.f32 %v935_v19, %v802_v46  ;;  %v477_v46 = vld [vmem:[#allocation2 + $0x111] sm:$0xff] }
  0x8d   :  { %v1132_v54 = vmul.f32 %v3428_v44, %v475_v6  ;;  %v3618_v53 = vsel %vm17_vm0, %v3603_v30, 0.0  ;;  %v1785_v51 = vadd.f32 %v1721_v31, %v1588_v57  ;;  %v1525_v55 = vmul.f32 %v3315_v15, %v278_v36  ;;  %v281_v31 = vld [vmem:[#allocation2 + $0x120] sm:$0xff] }
  0x8e   :  { %5625 = vst [vmem:[#allocation27_spill] sm:$0xff] %v3618_v53  ;;  %v1918_v27 = vmul.f32 %v3328_v24, %v671_v26  ;;  %v1392_v56 = vadd.f32 %v1328_v3, %v1195_v5  ;;  %v1000_v39 = vadd.f32 %v936_v63, %v803_v50  ;;  %v1133_v41 = vmul.f32 %v3428_v44, %v476_v58  ;;  %v478_v63 = vld [vmem:[#allocation2 + $0x121] sm:$0xff] }
  0x8f   :  { %v1526_v16 = vmul.f32 %v3315_v15, %v279_v18  ;;  %v804_v19 = vadd.f32 %v740_v47, %v607_v28  ;;  %v608_v2 = vadd.f32 %v544_v40, %v347_v4  ;;  %v741_v14 = vmul.f32 %v3309_v8, %v673_v22  ;;  %v674_v40 = vld [vmem:[#allocation2 + $0x112] sm:$0xff] }
  0x90   :  { %v937_v32 = vmul.f32 %v3415_v37, %v280_v59  ;;  %v1196_v30 = vadd.f32 %v1132_v54, %v999_v13  ;;  %v1329_v57 = vmul.f32 %v3451_v17, %v672_v12  ;;  %v1722_v36 = vmul.f32 %v3323_v23, %v475_v6 }
  0x91   :  { %v1919_v26 = vmul.f32 %v3328_v24, %v672_v12  ;;  %v1589_v5 = vadd.f32 %v1525_v55, %v1391_v60  ;;  %v3629_v50 = vadd.f32 %v1918_v27, %v1785_v51  ;;  %v348_v18 = vmul.f32 %v3294_v0, %v280_v59 }
  0x92   :  { %v545_v3 = vmul.f32 %v3299_v1, %v477_v46  ;;  %v1197_v28 = vadd.f32 %v1133_v41, %v1000_v39  ;;  %v1590_v47 = vadd.f32 %v1526_v16, %v1392_v56  ;;  %v1723_v4 = vmul.f32 %v3323_v23, %v476_v58 }
  0x93   :  { %5626 = vst [vmem:[#allocation28_spill] sm:$0xff] %v3629_v50  ;;  %v1330_v13 = vmul.f32 %v3451_v17, %v673_v22  ;;  %v805_v54 = vadd.f32 %v741_v14, %v608_v2  ;;  %v1001_v6 = vadd.f32 %v937_v32, %v804_v19  ;;  %v1134_v12 = vmul.f32 %v3428_v44, %v477_v46  ;;  %v675_v2 = vld [vmem:[#allocation2 + $0x122] sm:$0xff] }
  0x94   :  { %v938_v60 = vmul.f32 %v3415_v37, %v281_v31  ;;  %v1393_v51 = vadd.f32 %v1329_v57, %v1196_v30  ;;  %v1527_v55 = vmul.f32 %v3315_v15, %v280_v59  ;;  %v349_v27 = vmul.f32 %v3294_v0, %v281_v31  ;;  %v282_v59 = vld [vmem:[#allocation2 + $0x128] sm:$0xff] }
  0x95   :  { %v546_v53 = vmul.f32 %v3299_v1, %v478_v63  ;;  %v1786_v39 = vadd.f32 %v1722_v36, %v1589_v5  ;;  %v3642_v58 = vsel %vm17_vm0, %v3629_v50, 0.0  ;;  %v609_v56 = vadd.f32 %v545_v3, %v348_v18  ;;  %v479_v19 = vld [vmem:[#allocation2 + $0x129] sm:$0xff] }
  0x96   :  { %5627 = vst [vmem:[#allocation29_spill] sm:$0xff] %v3642_v58  ;;  %v742_v14 = vmul.f32 %v3309_v8, %v674_v40  ;;  %v1787_v32 = vadd.f32 %v1723_v4, %v1590_v47  ;;  %v1331_v41 = vmul.f32 %v3451_v17, %v674_v40  ;;  %v1394_v16 = vadd.f32 %v1330_v13, %v1197_v28  ;;  %v283_v13 = vld [vmem:[#allocation2 + $0x138] sm:$0xff] }
  0x97   :  { %v1528_v30 = vmul.f32 %v3315_v15, %v281_v31  ;;  %v1198_v57 = vadd.f32 %v1134_v12, %v1001_v6  ;;  %v1724_v38 = vmul.f32 %v3323_v23, %v477_v46  ;;  %v1002_v36 = vadd.f32 %v938_v60, %v805_v54  ;;  %v676_v12 = vld [vmem:[#allocation2 + $0x12a] sm:$0xff] }
  0x98   :  { %v1135_v5 = vmul.f32 %v3428_v44, %v478_v63  ;;  %v1591_v50 = vadd.f32 %v1527_v55, %v1393_v51  ;;  %v1920_v18 = vmul.f32 %v3328_v24, %v673_v22  ;;  %v610_v3 = vadd.f32 %v546_v53, %v349_v27  ;;  %v480_v22 = vld [vmem:[#allocation2 + $0x139] sm:$0xff] }
  0x99   :  { %v743_v58 = vmul.f32 %v3309_v8, %v675_v2  ;;  %v3651_v47 = vadd.f32 %v1919_v26, %v1786_v39  ;;  %v806_v4 = vadd.f32 %v742_v14, %v609_v56  ;;  %v350_v28 = vmul.f32 %v3294_v0, %v282_v59 }
  0x9a   :  { %v547_v31 = vmul.f32 %v3299_v1, %v479_v19  ;;  %v1921_v6 = vmul.f32 %v3328_v24, %v674_v40  ;;  %v1592_v46 = vadd.f32 %v1528_v30, %v1394_v16  ;;  %v1725_v54 = vmul.f32 %v3323_v23, %v478_v63 }
  0x9b   :  { %5628 = vst [vmem:[#allocation30_spill] sm:$0xff] %v3651_v47  ;;  %v939_v60 = vmul.f32 %v3415_v37, %v282_v59  ;;  %v1395_v53 = vadd.f32 %v1331_v41, %v1198_v57  ;;  %v1199_v51 = vadd.f32 %v1135_v5, %v1002_v36  ;;  %v1332_v26 = vmul.f32 %v3451_v17, %v675_v2 }
  0x9c   :  { %v1529_v55 = vmul.f32 %v3315_v15, %v282_v59  ;;  %v1788_v27 = vadd.f32 %v1724_v38, %v1591_v50  ;;  %v3660_v39 = vadd.f32 %v1920_v18, %v1787_v32  ;;  %v807_v56 = vadd.f32 %v743_v58, %v610_v3  ;;  %v284_v59 = vld [vmem:[#allocation2 + $0x140] sm:$0xff] }
  0x9d   :  { %v940_v14 = vmul.f32 %v3415_v37, %v283_v13  ;;  %v611_v40 = vadd.f32 %v547_v31, %v350_v28  ;;  %v744_v16 = vmul.f32 %v3309_v8, %v676_v12  ;;  %v351_v63 = vmul.f32 %v3294_v0, %v283_v13  ;;  %v677_v38 = vld [vmem:[#allocation2 + $0x13a] sm:$0xff] }
  0x9e   :  { %5629 = vst [vmem:[#allocation31_spill] sm:$0xff] %v3660_v39  ;;  %v548_v30 = vmul.f32 %v3299_v1, %v480_v22  ;;  %v1789_v61 = vadd.f32 %v1725_v54, %v1592_v46  ;;  %v1003_v41 = vadd.f32 %v939_v60, %v806_v4  ;;  %v1136_v57 = vmul.f32 %v3428_v44, %v479_v19  ;;  %v481_v18 = vld [vmem:[#allocation2 + $0x141] sm:$0xff] }
  0x9f   :  { %v1726_v36 = vmul.f32 %v3323_v23, %v479_v19  ;;  %v1396_v50 = vadd.f32 %v1332_v26, %v1199_v51  ;;  %v1593_v32 = vadd.f32 %v1529_v55, %v1395_v53  ;;  %v1922_v58 = vmul.f32 %v3328_v24, %v675_v2 }
  0xa0   :  { %v1530_v5 = vmul.f32 %v3315_v15, %v283_v13  ;;  %v3670_v3 = vadd.f32 %v1921_v6, %v1788_v27  ;;  %v1333_v28 = vmul.f32 %v3451_v17, %v676_v12  ;;  %v1004_v31 = vadd.f32 %v940_v14, %v807_v56  ;;  %v285_v6 = vld [vmem:[#allocation2 + $0x150] sm:$0xff]  ;;  %v678_v14 = vld [vmem:[#allocation2 + $0x142] sm:$0xff] }
  0xa1   :  { %v1137_v4 = vmul.f32 %v3428_v44, %v480_v22  ;;  %v808_v46 = vadd.f32 %v744_v16, %v611_v40  ;;  %v612_v54 = vadd.f32 %v548_v30, %v351_v63  ;;  %v745_v19 = vmul.f32 %v3309_v8, %v677_v38 }
  0xa2   :  { %5630 = vst [vmem:[#allocation32_spill] sm:$0xff] %v3670_v3  ;;  %v941_v60 = vmul.f32 %v3415_v37, %v284_v59  ;;  %v1200_v51 = vadd.f32 %v1136_v57, %v1003_v41  ;;  %v1923_v53 = vmul.f32 %v3328_v24, %v676_v12  ;;  %v352_v2 = vmul.f32 %v3294_v0, %v284_v59  ;;  %v482_v57 = vld [vmem:[#allocation2 + $0x151] sm:$0xff] }
  0xa3   :  { %v549_v13 = vmul.f32 %v3299_v1, %v481_v18  ;;  %v1790_v26 = vadd.f32 %v1726_v36, %v1593_v32  ;;  %v3679_v55 = vadd.f32 %v1922_v58, %v1789_v61  ;;  %v1594_v27 = vadd.f32 %v1530_v5, %v1396_v50 }
  0xa4   :  { %v1727_v56 = vmul.f32 %v3323_v23, %v480_v22  ;;  %v3684_v40 = vsel %vm17_vm0, %v3651_v47, 0.0  ;;  %v3688_v16 = vsel %vm17_vm0, %v3660_v39, 0.0  ;;  %v1201_v12 = vadd.f32 %v1137_v4, %v1004_v31 }
  0xa5   :  { %5631 = vst [vmem:[#allocation33_spill] sm:$0xff] %v3679_v55  ;;  %5632 = vst [vmem:[#allocation34_spill] sm:$0xff] %v3684_v40  ;;  %v1334_v63 = vmul.f32 %v3451_v17, %v677_v38  ;;  %v809_v30 = vadd.f32 %v745_v19, %v612_v54  ;;  %v1005_v41 = vadd.f32 %v941_v60, %v808_v46  ;;  %v3697_v5 = vsel %vm17_vm0, %v3670_v3, 0.0 }
  0xa6   :  { %5633 = vst [vmem:[#allocation35_spill] sm:$0xff] %v3688_v16  ;;  %v1138_v61 = vmul.f32 %v3428_v44, %v481_v18  ;;  %v942_v36 = vmul.f32 %v3415_v37, %v285_v6  ;;  %v1397_v22 = vadd.f32 %v1333_v28, %v1200_v51  ;;  %v613_v50 = vadd.f32 %v549_v13, %v352_v2  ;;  %v286_v51 = vld [vmem:[#allocation2 + $0x158] sm:$0xff] }
  0xa7   :  { %v746_v32 = vmul.f32 %v3309_v8, %v678_v14  ;;  %v1531_v58 = vmul.f32 %v3315_v15, %v284_v59  ;;  %5634 = vst [vmem:[#allocation36_spill] sm:$0xff] %v3697_v5  ;;  %v3699_v31 = vadd.f32 %v1923_v53, %v1790_v26  ;;  %v3703_v4 = vsel %vm17_vm0, %v3679_v55, 0.0  ;;  %v483_v59 = vld [vmem:[#allocation2 + $0x159] sm:$0xff] }
  0xa8   :  { %5636 = vst [vmem:[#allocation38_spill] sm:$0xff] %v3703_v4  ;;  %v1791_v46 = vadd.f32 %v1727_v56, %v1594_v27  ;;  %v1398_v54 = vadd.f32 %v1334_v63, %v1201_v12  ;;  %v353_v19 = vmul.f32 %v3294_v0, %v285_v6  ;;  %v550_v28 = vmul.f32 %v3299_v1, %v482_v57  ;;  %v679_v26 = vld [vmem:[#allocation2 + $0x152] sm:$0xff]  ;;  %v680_v4 = vld [vmem:[#allocation2 + $0x15a] sm:$0xff] }
  0xa9   :  { %5635 = vst [vmem:[#allocation37_spill] sm:$0xff] %v3699_v31  ;;  %v1532_v60 = vmul.f32 %v3315_v15, %v285_v6  ;;  %v1202_v2 = vadd.f32 %v1138_v61, %v1005_v41  ;;  %v1335_v13 = vmul.f32 %v3451_v17, %v678_v14  ;;  %v1006_v3 = vadd.f32 %v942_v36, %v809_v30  ;;  %v484_v61 = vld [vmem:[#allocation2 + $0x169] sm:$0xff] }
  0xaa   :  { %v1139_v53 = vmul.f32 %v3428_v44, %v482_v57  ;;  %v810_v39 = vadd.f32 %v746_v32, %v613_v50  ;;  %v1595_v55 = vadd.f32 %v1531_v58, %v1397_v22  ;;  %v1728_v27 = vmul.f32 %v3323_v23, %v481_v18  ;;  %v287_v32 = vld [vmem:[#allocation2 + $0x168] sm:$0xff] }
  0xab   :  { %v1924_v56 = vmul.f32 %v3328_v24, %v677_v38  ;;  %v1925_v12 = vmul.f32 %v3328_v24, %v678_v14  ;;  %v354_v63 = vmul.f32 %v3294_v0, %v286_v51  ;;  %v551_v6 = vmul.f32 %v3299_v1, %v483_v59 }
  0xac   :  { %v943_v41 = vmul.f32 %v3415_v37, %v286_v51  ;;  %v614_v47 = vadd.f32 %v550_v28, %v353_v19  ;;  %v1596_v30 = vadd.f32 %v1532_v60, %v1398_v54  ;;  %v1729_v36 = vmul.f32 %v3323_v23, %v482_v57 }
  0xad   :  { %v747_v22 = vmul.f32 %v3309_v8, %v679_v26  ;;  %v1399_v50 = vadd.f32 %v1335_v13, %v1202_v2  ;;  %v1203_v18 = vadd.f32 %v1139_v53, %v1006_v3  ;;  %v1336_v38 = vmul.f32 %v3451_v17, %v679_v26  ;;  %v485_v2 = vld [vmem:[#allocation2 + $0x171] sm:$0xff] }
  0xae   :  { %v1533_v14 = vmul.f32 %v3315_v15, %v286_v51  ;;  %v1792_v58 = vadd.f32 %v1728_v27, %v1595_v55  ;;  %v3720_v5 = vadd.f32 %v1924_v56, %v1791_v46  ;;  %v355_v16 = vmul.f32 %v3294_v0, %v287_v32  ;;  %v681_v3 = vld [vmem:[#allocation2 + $0x16a] sm:$0xff] }
  0xaf   :  { %v552_v19 = vmul.f32 %v3299_v1, %v484_v61  ;;  %v615_v54 = vadd.f32 %v551_v6, %v354_v63  ;;  %v748_v57 = vmul.f32 %v3309_v8, %v680_v4  ;;  %v1007_v28 = vadd.f32 %v943_v41, %v810_v39  ;;  %v288_v56 = vld [vmem:[#allocation2 + $0x170] sm:$0xff]  ;;  %v3733_v8 = vld [vmem:[%s5536_s1] ss:$0 sm:$0xff] }
  0xb0   :  { %5637 = vst [vmem:[#allocation39_spill] sm:$0xff] %v3720_v5  ;;  %v1140_v60 = vmul.f32 %v3428_v44, %v483_v59  ;;  %v1793_v13 = vadd.f32 %v1729_v36, %v1596_v30  ;;  %v811_v53 = vadd.f32 %v747_v22, %v614_v47  ;;  %v1926_v51 = vmul.f32 %v3328_v24, %v679_v26  ;;  %v3739_v47 = vld [vmem:[%s5536_s1 + $0x1] ss:$0 sm:$0xff]  ;;  %v682_v30 = vld [vmem:[#allocation2 + $0x172] sm:$0xff] }
  0xb1   :  { %v944_v55 = vmul.f32 %v3415_v37, %v287_v32  ;;  %v1400_v46 = vadd.f32 %v1336_v38, %v1203_v18  ;;  %v1597_v27 = vadd.f32 %v1533_v14, %v1399_v50  ;;  %v1730_v0 = vmul.f32 %v3323_v23, %v483_v59  ;;  %v878_v36 = vld [vmem:[#allocation2 + $0x180] sm:$0xff] }
  0xb2   :  { %v1534_v1 = vmul.f32 %v3315_v15, %v287_v32  ;;  %v616_v63 = vadd.f32 %v552_v19, %v355_v16  ;;  %v356_v39 = vmul.f32 %v3733_v8, %v288_v56  ;;  %v553_v26 = vmul.f32 %v3739_v47, %v485_v2  ;;  %v3745_v15 = vld [vmem:[%s5536_s1 + $0x2] ss:$0 sm:$0xff] }
  0xb3   :  { %v749_v23 = vmul.f32 %v3745_v15, %v681_v3  ;;  %v3748_v16 = vadd.f32 %v1925_v12, %v1792_v58  ;;  %v812_v59 = vadd.f32 %v748_v57, %v615_v54  ;;  %v1204_v6 = vadd.f32 %v1140_v60, %v1007_v28  ;;  %v3758_v12 = vld [vmem:[%s5536_s1 + $0x7] ss:$0 sm:$0xff] }
  0xb4   :  { %v1337_v41 = vmul.f32 %v3451_v17, %v680_v4  ;;  %v1927_v22 = vmul.f32 %v3328_v24, %v680_v4  ;;  %v3752_v50 = vadd.f32 %v1926_v51, %v1793_v13  ;;  %v1008_v18 = vadd.f32 %v944_v55, %v811_v53  ;;  %v1075_v51 = vld [vmem:[#allocation2 + $0x181] sm:$0xff] }
  0xb5   :  { %5638 = vst [vmem:[#allocation40_spill] sm:$0xff] %v3748_v16  ;;  %v1141_v38 = vmul.f32 %v3428_v44, %v484_v61  ;;  %v1794_v14 = vadd.f32 %v1730_v0, %v1597_v27  ;;  %v1598_v32 = vadd.f32 %v1534_v1, %v1400_v46  ;;  %v1731_v58 = vmul.f32 %v3758_v12, %v484_v61  ;;  %v3775_v61 = vld [vmem:[%s5536_s1 + $0x6] ss:$0 sm:$0xff]  ;;  %v879_v55 = vld [vmem:[#allocation2 + $0x188] sm:$0xff] }
  0xb6   :  { %5639 = vst [vmem:[#allocation41_spill] sm:$0xff] %v3752_v50  ;;  %v945_v19 = vmul.f32 %v3415_v37, %v288_v56  ;;  %v617_v54 = vadd.f32 %v553_v26, %v356_v39  ;;  %v750_v57 = vmul.f32 %v3745_v15, %v682_v30  ;;  %v813_v24 = vadd.f32 %v749_v23, %v616_v63  ;;  %v291_v63 = vld [vmem:[#allocation2 + $0x1c8] sm:$0xff] }
  0xb7   :  { %v946_v4 = vmul.f32 %v3415_v37, %v878_v36  ;;  %v3766_v28 = vsel %vm17_vm0, %v3699_v31, 0.0  ;;  %v3770_v60 = vsel %vm17_vm0, %v3720_v5, 0.0  ;;  %v1401_v13 = vadd.f32 %v1337_v41, %v1204_v6  ;;  %v488_v6 = vld [vmem:[#allocation2 + $0x1c9] sm:$0xff] }
  0xb8   :  { %5640 = vst [vmem:[#allocation42_spill] sm:$0xff] %v3766_v28  ;;  %5641 = vst [vmem:[#allocation43_spill] sm:$0xff] %v3770_v60  ;;  %v1535_v53 = vmul.f32 %v3775_v61, %v288_v56  ;;  %v3780_v46 = vsel %vm17_vm0, %v3748_v16, 0.0  ;;  %v3784_v27 = vsel %vm17_vm0, %v3752_v50, 0.0  ;;  %v1205_v0 = vadd.f32 %v1141_v38, %v1008_v18  ;;  %v1076_v38 = vld [vmem:[#allocation2 + $0x189] sm:$0xff] }
  0xb9   :  { %5642 = vst [vmem:[#allocation44_spill] sm:$0xff] %v3780_v46  ;;  %5643 = vst [vmem:[#allocation45_spill] sm:$0xff] %v3784_v27  ;;  %v1338_v1 = vmul.f32 %v3451_v17, %v681_v3  ;;  %v3787_v39 = vadd.f32 %v1927_v22, %v1794_v14  ;;  %v1795_v26 = vadd.f32 %v1731_v58, %v1598_v32  ;;  %v292_v46 = vld [vmem:[#allocation2 + $0x1d0] sm:$0xff]  ;;  %v3796_v22 = vld [vmem:[%s5536_s1 + $0x8] ss:$0 sm:$0xff] }
  0xba   :  { %v1009_v23 = vadd.f32 %v945_v19, %v812_v59  ;;  %v1142_v56 = vmul.f32 %v3428_v44, %v485_v2  ;;  %v814_v41 = vadd.f32 %v750_v57, %v617_v54  ;;  %v1010_v5 = vadd.f32 %v946_v4, %v813_v24  ;;  %v1272_v14 = vld [vmem:[#allocation2 + $0x182] sm:$0xff] }
  0xbb   :  { %5644 = vst [vmem:[#allocation46_spill] sm:$0xff] %v3787_v39  ;;  %v1143_v16 = vmul.f32 %v3428_v44, %v1075_v51  ;;  %v947_v31 = vmul.f32 %v3415_v37, %v879_v55  ;;  %v1599_v50 = vadd.f32 %v1535_v53, %v1401_v13  ;;  %v1732_v18 = vmul.f32 %v3758_v12, %v485_v2  ;;  %v685_v13 = vld [vmem:[#allocation2 + $0x1ca] sm:$0xff] }
  0xbc   :  { %v1928_v59 = vmul.f32 %v3796_v22, %v681_v3  ;;  %v948_v32 = vmul.f32 %v3415_v37, %v291_v63  ;;  %v1339_v58 = vmul.f32 %v3451_v17, %v682_v30  ;;  %v1402_v19 = vadd.f32 %v1338_v1, %v1205_v0  ;;  %v1273_v1 = vld [vmem:[#allocation2 + $0x18a] sm:$0xff] }
  0xbd   :  { %v359_v54 = vmul.f32 %v3733_v8, %v291_v63  ;;  %v556_v57 = vmul.f32 %v3739_v47, %v488_v6  ;;  %v1206_v24 = vadd.f32 %v1142_v56, %v1009_v23  ;;  %v1929_v2 = vmul.f32 %v3796_v22, %v682_v30 }
  0xbe   :  { %v1536_v4 = vmul.f32 %v3775_v61, %v878_v36  ;;  %v949_v53 = vmul.f32 %v3415_v37, %v292_v46  ;;  %v1207_v3 = vadd.f32 %v1143_v16, %v1010_v5  ;;  %v1011_v27 = vadd.f32 %v947_v31, %v814_v41  ;;  %v489_v31 = vld [vmem:[#allocation2 + $0x1d1] sm:$0xff]  ;;  %v293_v41 = vld [vmem:[#allocation2 + $0x1e0] sm:$0xff] }
  0xbf   :  { %v1144_v60 = vmul.f32 %v3428_v44, %v1076_v38  ;;  %v1340_v28 = vmul.f32 %v3451_v17, %v1272_v14  ;;  %v1796_v40 = vadd.f32 %v1732_v18, %v1599_v50  ;;  %v3808_v0 = vadd.f32 %v1928_v59, %v1795_v26 }
  0xc0   :  { %v1012_v63 = vadd.f32 %v948_v32, %v3357_v45  ;;  %v1145_v23 = vmul.f32 %v3428_v44, %v488_v6  ;;  %v3814_v30 = vsel %vm17_vm0, %v3787_v39, 0.0  ;;  %v1733_v37 = vmul.f32 %v3758_v12, %v1075_v51 }
  0xc1   :  { %5645 = vst [vmem:[#allocation47_spill] sm:$0xff] %v3808_v0  ;;  %v620_v5 = vadd.f32 %v556_v57, %v359_v54  ;;  %v753_v16 = vmul.f32 %v3745_v15, %v685_v13  ;;  %v1403_v36 = vadd.f32 %v1339_v58, %v1206_v24  ;;  %v1600_v56 = vadd.f32 %v1536_v4, %v1402_v19  ;;  %v686_v19 = vld [vmem:[#allocation2 + $0x1d2] sm:$0xff] }
  0xc2   :  { %v1013_v50 = vadd.f32 %v949_v53, %v3408_v25  ;;  %v1146_v26 = vmul.f32 %v3428_v44, %v489_v31  ;;  %v1208_v45 = vadd.f32 %v1144_v60, %v1011_v27  ;;  %v1341_v6 = vmul.f32 %v3451_v17, %v1273_v1  ;;  %v490_v27 = vld [vmem:[#allocation2 + $0x1e1] sm:$0xff] }
  0xc3   :  { %v1404_v18 = vadd.f32 %v1340_v28, %v1207_v3  ;;  %v1537_v59 = vmul.f32 %v3775_v61, %v879_v55  ;;  %v3822_v32 = vadd.f32 %v1929_v2, %v1796_v40  ;;  %v3826_v51 = vsel %vm17_vm0, %v3808_v0, 0.0  ;;  %v3834_v28 = vld [vmem:[%s5536_s1 + $0x3] ss:$0 sm:$0xff]  ;;  %v2792_v0 = vld [vmem:[#allocation2 + $0x4a] sm:$0xff] }
  0xc4   :  { %v1209_v54 = vadd.f32 %v1145_v23, %v1012_v63  ;;  %v1342_v58 = vmul.f32 %v3451_v17, %v685_v13  ;;  %v360_v25 = vmul.f32 %v3733_v8, %v292_v46  ;;  %v557_v44 = vmul.f32 %v3739_v47, %v489_v31 }
  0xc5   :  { %5646 = vst [vmem:[#allocation48_spill] sm:$0xff] %v3822_v32  ;;  %v817_v60 = vadd.f32 %v753_v16, %v620_v5  ;;  %v950_v40 = vmul.f32 %v3834_v28, %v293_v41  ;;  %v1797_v55 = vadd.f32 %v1733_v37, %v1600_v56  ;;  %v1734_v57 = vmul.f32 %v3758_v12, %v1076_v38  ;;  %v294_v16 = vld [vmem:[#allocation2 + $0x1e8] sm:$0xff] }
  0xc6   :  { %v1210_v24 = vadd.f32 %v1146_v26, %v1013_v50  ;;  %v1343_v2 = vmul.f32 %v3451_v17, %v686_v19  ;;  %v1405_v4 = vadd.f32 %v1341_v6, %v1208_v45  ;;  %v1601_v46 = vadd.f32 %v1537_v59, %v1403_v36  ;;  %v3848_v17 = vld [vmem:[%s5536_s1 + $0x4] ss:$0 sm:$0xff]  ;;  %v491_v59 = vld [vmem:[#allocation2 + $0x1e9] sm:$0xff] }
  0xc7   :  { %v1930_v13 = vmul.f32 %v3796_v22, %v1272_v14  ;;  %v1602_v53 = vadd.f32 %v3342_v33, %v1404_v18  ;;  %v1406_v3 = vadd.f32 %v1342_v58, %v1209_v54  ;;  %v361_v63 = vmul.f32 %v3733_v8, %v293_v41  ;;  %v687_v33 = vld [vmem:[#allocation2 + $0x1e2] sm:$0xff] }
  0xc8   :  { %v558_v23 = vmul.f32 %v3739_v47, %v490_v27  ;;  %v1540_v5 = vmul.f32 %v3775_v61, %v293_v41  ;;  %v621_v31 = vadd.f32 %v557_v44, %v360_v25  ;;  %v754_v37 = vmul.f32 %v3745_v15, %v686_v19 }
  0xc9   :  { %v1014_v38 = vadd.f32 %v950_v40, %v817_v60  ;;  %v1147_v14 = vmul.f32 %v3848_v17, %v490_v27  ;;  %v3853_v36 = vsel %vm17_vm0, %v3822_v32, 0.0  ;;  %v1931_v56 = vmul.f32 %v3796_v22, %v1273_v1  ;;  %v3867_v40 = vld [vmem:[%s5536_s1 + $0x5] ss:$0 sm:$0xff] }
  0xca   :  { %v1407_v50 = vadd.f32 %v1343_v2, %v1210_v24  ;;  %v1541_v26 = vmul.f32 %v3775_v61, %v294_v16  ;;  %v1798_v41 = vadd.f32 %v1734_v57, %v1601_v46  ;;  %v3857_v45 = vadd.f32 %v1930_v13, %v1797_v55  ;;  %v295_v55 = vld [vmem:[#allocation2 + $0x1f8] sm:$0xff] }
  0xcb   :  { %v1603_v6 = vadd.f32 %v3345_v34, %v1405_v4  ;;  %v1799_v18 = vadd.f32 %v3352_v42, %v1602_v53  ;;  %v622_v54 = vadd.f32 %v558_v23, %v361_v63  ;;  %v1604_v58 = vadd.f32 %v1540_v5, %v1406_v3  ;;  %v688_v53 = vld [vmem:[#allocation2 + $0x1ea] sm:$0xff]  ;;  %v492_v5 = vld [vmem:[#allocation2 + $0x1f9] sm:$0xff] }
  0xcc   :  { %5647 = vst [vmem:[#allocation49_spill] sm:$0xff] %v3857_v45  ;;  %v1737_v25 = vmul.f32 %v3758_v12, %v490_v27  ;;  %v755_v44 = vmul.f32 %v3745_v15, %v687_v33  ;;  %v818_v19 = vadd.f32 %v754_v37, %v621_v31  ;;  %v1211_v60 = vadd.f32 %v1147_v14, %v1014_v38 }
  0xcd   :  { %v951_v1 = vmul.f32 %v3834_v28, %v294_v16  ;;  %v1344_v34 = vmul.f32 %v3867_v40, %v687_v33  ;;  %v362_v42 = vmul.f32 %v3733_v8, %v294_v16  ;;  %v559_v57 = vmul.f32 %v3739_v47, %v491_v59 }
  0xce   :  { %v1605_v24 = vadd.f32 %v1541_v26, %v1407_v50  ;;  %v1738_v27 = vmul.f32 %v3758_v12, %v491_v59  ;;  %v3873_v2 = vadd.f32 %v1931_v56, %v1798_v41  ;;  %v3877_v4 = vsel %vm17_vm0, %v3857_v45, 0.0  ;;  %v296_v56 = vld [vmem:[#allocation2 + $0x200] sm:$0xff] }
  0xcf   :  { %v1800_v46 = vadd.f32 %v3362_v48, %v1603_v6  ;;  %v3881_v13 = vadd.f32 %v3355_v43, %v1799_v18  ;;  %v1801_v3 = vadd.f32 %v1737_v25, %v1604_v58  ;;  %v819_v63 = vadd.f32 %v755_v44, %v622_v54  ;;  %v493_v50 = vld [vmem:[#allocation2 + $0x201] sm:$0xff] }
  0xd0   :  { %5648 = vst [vmem:[#allocation50_spill] sm:$0xff] %v3873_v2  ;;  %v1148_v23 = vmul.f32 %v3848_v17, %v491_v59  ;;  %v952_v31 = vmul.f32 %v3834_v28, %v295_v55  ;;  %v1015_v37 = vadd.f32 %v951_v1, %v818_v19  ;;  %v1408_v38 = vadd.f32 %v1344_v34, %v1211_v60  ;;  %v689_v19 = vld [vmem:[#allocation2 + $0x1fa] sm:$0xff] }
  0xd1   :  { %5649 = vst [vmem:[#allocation51_spill] sm:$0xff] %v3881_v13  ;;  %v1934_v14 = vmul.f32 %v3796_v22, %v687_v33  ;;  %v1542_v16 = vmul.f32 %v3775_v61, %v295_v55  ;;  %v623_v48 = vadd.f32 %v559_v57, %v362_v42  ;;  %v756_v43 = vmul.f32 %v3745_v15, %v688_v53  ;;  %v690_v42 = vld [vmem:[#allocation2 + $0x202] sm:$0xff] }
  0xd2   :  { %v1802_v26 = vadd.f32 %v1738_v27, %v1605_v24  ;;  %v1935_v41 = vmul.f32 %v3796_v22, %v688_v53  ;;  %v3890_v6 = vadd.f32 %v3365_v49, %v1800_v46  ;;  %v1345_v18 = vmul.f32 %v3867_v40, %v688_v53 }
  0xd3   :  { %v363_v59 = vmul.f32 %v3733_v8, %v295_v55  ;;  %v560_v54 = vmul.f32 %v3739_v47, %v492_v5  ;;  %v1016_v33 = vadd.f32 %v952_v31, %v819_v63  ;;  %v1149_v58 = vmul.f32 %v3848_v17, %v492_v5 }
  0xd4   :  { %5650 = vst [vmem:[#allocation52_spill] sm:$0xff] %v3890_v6  ;;  %v364_v25 = vmul.f32 %v3733_v8, %v296_v56  ;;  %v561_v44 = vmul.f32 %v3739_v47, %v493_v50  ;;  %v1212_v60 = vadd.f32 %v1148_v23, %v1015_v37  ;;  %v3898_v1 = vadd.f32 %v1934_v14, %v1801_v3  ;;  %v257_v23 = vld [vmem:[#allocation2] sm:$0xff] }
  0xd5   :  { %v1606_v34 = vadd.f32 %v1542_v16, %v1408_v38  ;;  %v1739_v49 = vmul.f32 %v3758_v12, %v492_v5  ;;  %v3903_v55 = vsel %vm17_vm0, %v3873_v2, 0.0  ;;  %v820_v57 = vadd.f32 %v756_v43, %v623_v48  ;;  %v454_v14 = vld [vmem:[#allocation2 + $0x1] sm:$0xff]  ;;  %v5661_v2 = vld [vmem:[#allocation5_spill] sm:$0xff] }
  0xd6   :  { %5651 = vst [vmem:[#allocation53_spill] sm:$0xff] %v3898_v1  ;;  %v3905_v24 = vadd.f32 %v1935_v41, %v1802_v26  ;;  %v953_v27 = vmul.f32 %v3834_v28, %v296_v56  ;;  %v3910_v46 = vsel %vm17_vm0, %v3881_v13, 0.0  ;;  %v3914_v53 = vsel %vm17_vm0, %v3890_v6, 0.0  ;;  %v297_v6 = vld [vmem:[#allocation2 + $0x210] sm:$0xff] }
  0xd7   :  { %5653 = vst [vmem:[#allocation55_spill] sm:$0xff] %v3914_v53  ;;  %v624_v3 = vadd.f32 %v560_v54, %v363_v59  ;;  %v757_v63 = vmul.f32 %v3745_v15, %v689_v19  ;;  %v1213_v5 = vadd.f32 %v1149_v58, %v1016_v33  ;;  %v625_v31 = vadd.f32 %v561_v44, %v364_v25  ;;  %v651_v58 = vld [vmem:[#allocation2 + $0x2] sm:$0xff]  ;;  %v652_v25 = vld [vmem:[#allocation2 + $0xa] sm:$0xff] }
  0xd8   :  { %5652 = vst [vmem:[#allocation54_spill] sm:$0xff] %v3905_v24  ;;  %v758_v37 = vmul.f32 %v3745_v15, %v690_v42  ;;  %v1346_v38 = vmul.f32 %v3867_v40, %v689_v19  ;;  %v1409_v16 = vadd.f32 %v1345_v18, %v1212_v60  ;;  %v3921_v48 = vsel %vm17_vm0, %v3898_v1, 0.0  ;;  %v1640_v53 = vld [vmem:[#allocation2 + $0x51] sm:$0xff] }
  0xd9   :  { %5654 = vst [vmem:[#allocation56_spill] sm:$0xff] %v3921_v48  ;;  %v1803_v43 = vadd.f32 %v1739_v49, %v1606_v34  ;;  %v1150_v26 = vmul.f32 %v3848_v17, %v493_v50  ;;  %v3926_v41 = vsel %vm17_vm0, %v3905_v24, 0.0  ;;  %v1017_v59 = vadd.f32 %v953_v27, %v820_v57  ;;  %v494_v24 = vld [vmem:[#allocation2 + $0x211] sm:$0xff] }
  0xda   :  { %5655 = vst [vmem:[#allocation57_spill] sm:$0xff] %v3926_v41  ;;  %v1543_v54 = vmul.f32 %v3775_v61, %v296_v56  ;;  %v325_v33 = vmul.f32 %v3733_v8, %v257_v23  ;;  %v821_v44 = vadd.f32 %v757_v63, %v624_v3  ;;  %v1347_v18 = vmul.f32 %v3867_v40, %v690_v42  ;;  %v848_v27 = vld [vmem:[#allocation2 + $0x18] sm:$0xff] }
  0xdb   :  { %v1740_v60 = vmul.f32 %v3758_v12, %v493_v50  ;;  %v522_v34 = vmul.f32 %v3739_v47, %v454_v14  ;;  %v3933_v49 = vadd.f32 %v758_v37, %v625_v31  ;;  %v1410_v1 = vadd.f32 %v1346_v38, %v1213_v5  ;;  %v849_v14 = vld [vmem:[#allocation2 + $0x20] sm:$0xff] }
  0xdc   :  { %v587_v57 = vadd.f32 %v3348_v35, %v3333_v29  ;;  %v588_v56 = vadd.f32 %v3396_v9, %v3393_v7  ;;  %v1936_v3 = vmul.f32 %v3796_v22, %v689_v19  ;;  %v1937_v63 = vmul.f32 %v3796_v22, %v690_v42  ;;  %v3947_v19 = vld [vmem:[#allocation2 + $0x31] sm:$0xff] }
  0xdd   :  { %v586_v23 = vadd.f32 %v522_v34, %v325_v33  ;;  %v719_v50 = vmul.f32 %v3745_v15, %v651_v58  ;;  %v1214_v31 = vadd.f32 %v1150_v26, %v1017_v59  ;;  %v1607_v37 = vadd.f32 %v1543_v54, %v1409_v16  ;;  %v2790_v16 = vld [vmem:[#allocation2 + $0x30] sm:$0xff]  ;;  %v1045_v54 = vld [vmem:[#allocation2 + $0x19] sm:$0xff] }
  0xde   :  { %v720_v5 = vmul.f32 %v3745_v15, %v652_v25  ;;  %v785_v38 = vadd.f32 %v3399_v10, %v588_v56  ;;  %v365_v29 = vmul.f32 %v3733_v8, %v297_v6  ;;  %v562_v35 = vmul.f32 %v3739_v47, %v494_v24  ;;  %v1046_v10 = vld [vmem:[#allocation2 + $0x21] sm:$0xff] }
  0xdf   :  { %v783_v7 = vadd.f32 %v719_v50, %v586_v23  ;;  %v916_v9 = vmul.f32 %v3834_v28, %v848_v27  ;;  %v786_v33 = vadd.f32 %v3402_v11, %v3406_v21  ;;  %v917_v26 = vmul.f32 %v3834_v28, %v849_v14  ;;  %v3962_v14 = vld [vmem:[#allocation2 + $0x218] sm:$0xff] }
  0xe0   :  { %v784_v42 = vadd.f32 %v720_v5, %v587_v57  ;;  %v918_v59 = vmul.f32 %v2790_v16, %v3834_v28  ;;  %v3953_v58 = vadd.f32 %v1936_v3, %v1803_v43  ;;  %v954_v25 = vmul.f32 %v3834_v28, %v297_v6 }
  0xe1   :  { %v1151_v34 = vmul.f32 %v3848_v17, %v494_v24  ;;  %v980_v56 = vadd.f32 %v916_v9, %v783_v7  ;;  %v1544_v27 = vmul.f32 %v3775_v61, %v297_v6  ;;  %v1115_v11 = vmul.f32 %v3848_v17, %v3947_v19  ;;  %v2791_v6 = vld [vmem:[#allocation2 + $0x39] sm:$0xff] }
  0xe2   :  { %5656 = vst [vmem:[#allocation58_spill] sm:$0xff] %v3953_v58  ;;  %v981_v57 = vadd.f32 %v917_v26, %v784_v42  ;;  %v982_v23 = vadd.f32 %v918_v59, %v785_v38  ;;  %v3960_v21 = vadd.f32 %v1347_v18, %v1214_v31  ;;  %v1804_v50 = vadd.f32 %v1740_v60, %v1607_v37  ;;  %v1242_v9 = vld [vmem:[#allocation2 + $0x1a] sm:$0xff]  ;;  %v1243_v42 = vld [vmem:[#allocation2 + $0x22] sm:$0xff]  ;;  %v3969_v26 = vld [vmem:[#allocation2 + $0x32] sm:$0xff] }
  0xe3   :  { %v1113_v43 = vmul.f32 %v3848_v17, %v1045_v54  ;;  %v1114_v3 = vmul.f32 %v3848_v17, %v1046_v10  ;;  %v626_v5 = vadd.f32 %v562_v35, %v365_v29  ;;  %v1741_v16 = vmul.f32 %v3758_v12, %v494_v24  ;;  %v3971_v60 = vld [vmem:[#allocation2 + $0x219] sm:$0xff]  ;;  %v5658_v54 = vld [vmem:[#allocation4_spill] sm:$0xff] }
  0xe4   :  { %v983_v7 = vadd.f32 %v3419_v52, %v786_v33  ;;  %v1116_v38 = vmul.f32 %v2791_v6, %v3848_v17  ;;  %v1018_v18 = vadd.f32 %v954_v25, %v821_v44  ;;  %v3973_v31 = vld [vmem:[#allocation2 + $0x212] sm:$0xff]  ;;  %v3975_v37 = vld [vmem:[#allocation2 + $0x21a] sm:$0xff]  ;;  %v1179_v35 = vadd.f32 %v1115_v11, %v982_v23 }
  0xe5   :  { %v1177_v59 = vadd.f32 %v1113_v43, %v980_v56  ;;  %v1178_v29 = vadd.f32 %v1114_v3, %v981_v57  ;;  %v3979_v52 = vsel %vm17_vm0, %v3953_v58, 0.0  ;;  %v1608_v24 = vadd.f32 %v1544_v27, %v1410_v1  ;;  %v5659_v10 = vld [vmem:[#allocation3_spill] sm:$0xff]  ;;  %v1440_v11 = vld [vmem:[#allocation2 + $0x30] sm:$0xff]  ;;  %v1442_v43 = vld [vmem:[#allocation2 + $0x48] sm:$0xff] }
  0xe6   :  { %5657 = vst [vmem:[#allocation59_spill] sm:$0xff] %v3979_v52  ;;  %v366_v33 = vmul.f32 %v3733_v8, %v3962_v14  ;;  %v984_v44 = vadd.f32 %v5659_v10, %v5658_v54  ;;  %v3985_v25 = vadd.f32 %v1937_v63, %v1804_v50  ;;  %v3987_v6 = vld [vmem:[#allocation2 + $0x3a] sm:$0xff]  ;;  %v1310_v13 = vmul.f32 %v3867_v40, %v1242_v9  ;;  %v1443_v10 = vld [vmem:[#allocation2 + $0x50] sm:$0xff] }
  0xe7   :  { %v1311_v56 = vmul.f32 %v3867_v40, %v1243_v42  ;;  %v1312_v57 = vmul.f32 %v3867_v40, %v3969_v26  ;;  %v563_v1 = vmul.f32 %v3739_v47, %v3971_v60  ;;  %v759_v27 = vmul.f32 %v3745_v15, %v3973_v31  ;;  %v1441_v50 = vld [vmem:[#allocation2 + $0x38] sm:$0xff] }
  0xe8   :  { %5660 = vst [vmem:[#allocation4_spill] sm:$0xff] %v3985_v25  ;;  %v760_v23 = vmul.f32 %v3745_v15, %v3975_v37  ;;  %v1180_v63 = vadd.f32 %v1116_v38, %v983_v7  ;;  %v3999_v3 = vadd.f32 %v1151_v34, %v1018_v18  ;;  %v1374_v9 = vadd.f32 %v1310_v13, %v1177_v59  ;;  %v1444_v38 = vld [vmem:[#allocation2 + $0x60] sm:$0xff]  ;;  %v5663_v59 = vld [vmem:[#allocation6_spill] sm:$0xff] }
  0xe9   :  { %v1375_v42 = vadd.f32 %v1311_v56, %v1178_v29  ;;  %v1376_v54 = vadd.f32 %v1312_v57, %v1179_v35  ;;  %v4001_v58 = vadd.f32 %v1741_v16, %v1608_v24  ;;  %v1181_v45 = vadd.f32 %v5661_v2, %v984_v44  ;;  %v5662_v2 = vld [vmem:[#allocation8_spill] sm:$0xff]  ;;  %v1638_v24 = vld [vmem:[#allocation2 + $0x39] sm:$0xff] }
  0xea   :  { %v1313_v32 = vmul.f32 %v3867_v40, %v3987_v6  ;;  %v1314_v39 = vmul.f32 %v2792_v0, %v3867_v40  ;;  %v955_v7 = vmul.f32 %v3834_v28, %v3962_v14  ;;  %v1508_v34 = vmul.f32 %v3775_v61, %v1440_v11  ;;  %v1639_v44 = vld [vmem:[#allocation2 + $0x49] sm:$0xff] }
  0xeb   :  { %v1509_v13 = vmul.f32 %v3775_v61, %v1441_v50  ;;  %v1510_v18 = vmul.f32 %v3775_v61, %v1442_v43  ;;  %v4014_v16 = vmul.f32 %v3848_v17, %v3971_v60  ;;  %v1182_v29 = vadd.f32 %v5663_v59, %v5662_v2  ;;  %v5666_v59 = vld [vmem:[#allocation9_spill] sm:$0xff] }
  0xec   :  { %v1377_v35 = vadd.f32 %v1313_v32, %v1180_v63  ;;  %v1511_v0 = vmul.f32 %v3775_v61, %v1443_v10  ;;  %v4021_v56 = vsel %vm17_vm0, %v3985_v25, 0.0  ;;  %v1572_v57 = vadd.f32 %v1508_v34, %v1374_v9 }
  0xed   :  { %v1573_v11 = vadd.f32 %v1509_v13, %v1375_v42  ;;  %v1574_v50 = vadd.f32 %v1510_v18, %v1376_v54  ;;  %v627_v43 = vadd.f32 %v563_v1, %v366_v33  ;;  %v4023_v52 = vadd.f32 %v759_v27, %v626_v5  ;;  %v5664_v42 = vld [vmem:[#allocation7_spill] sm:$0xff]  ;;  %v2793_v5 = vld [vmem:[#allocation2 + $0x68] sm:$0xff] }
  0xee   :  { %v1378_v41 = vadd.f32 %v1314_v39, %v1181_v45  ;;  %v1512_v48 = vmul.f32 %v3775_v61, %v1444_v38  ;;  %v1348_v32 = vmul.f32 %v3867_v40, %v3973_v31  ;;  %v1705_v63 = vmul.f32 %v3758_v12, %v3947_v19  ;;  %v1641_v1 = vld [vmem:[#allocation2 + $0x61] sm:$0xff]  ;;  %v1836_v27 = vld [vmem:[#allocation2 + $0x4a] sm:$0xff] }
  0xef   :  { %v1706_v10 = vmul.f32 %v3758_v12, %v1638_v24  ;;  %v1707_v2 = vmul.f32 %v3758_v12, %v1639_v44  ;;  %v1019_v9 = vadd.f32 %v955_v7, %v3933_v49  ;;  %v1379_v33 = vadd.f32 %v5664_v42, %v1182_v29  ;;  %v1642_v54 = vld [vmem:[#allocation2 + $0x69] sm:$0xff]  ;;  %v5665_v7 = vld [vmem:[#allocation10_spill] sm:$0xff] }
  0xf0   :  { %v1513_v39 = vmul.f32 %v2793_v5, %v3775_v61  ;;  %v1575_v45 = vadd.f32 %v1511_v0, %v1377_v35  ;;  %v1708_v38 = vmul.f32 %v3758_v12, %v1640_v53  ;;  %v1769_v34 = vadd.f32 %v1705_v63, %v1572_v57  ;;  %v1837_v63 = vld [vmem:[#allocation2 + $0x52] sm:$0xff]  ;;  %v299_v5 = vld [vmem:[#allocation2 + $0x228] sm:$0xff] }
  0xf1   :  { %v1770_v13 = vadd.f32 %v1706_v10, %v1573_v11  ;;  %v1771_v19 = vadd.f32 %v1707_v2, %v1574_v50  ;;  %v1349_v18 = vmul.f32 %v3867_v40, %v3975_v37  ;;  %v1545_v49 = vmul.f32 %v3775_v61, %v3962_v14 }
  0xf2   :  { %v1380_v29 = vadd.f32 %v5666_v59, %v5665_v7  ;;  %v1576_v24 = vadd.f32 %v1512_v48, %v1378_v41  ;;  %v1709_v35 = vmul.f32 %v3758_v12, %v1641_v1  ;;  %v1902_v0 = vmul.f32 %v3796_v22, %v3969_v26  ;;  %v1838_v48 = vld [vmem:[#allocation2 + $0x62] sm:$0xff] }
  0xf3   :  { %v1903_v53 = vmul.f32 %v3796_v22, %v3987_v6  ;;  %v1904_v44 = vmul.f32 %v3796_v22, %v1836_v27  ;;  %v4048_v57 = vadd.f32 %v760_v23, %v627_v43  ;;  %v1742_v11 = vmul.f32 %v3758_v12, %v3971_v60  ;;  %v5667_v43 = vld [vmem:[#allocation11_spill] sm:$0xff] }
  0xf4   :  { %v1577_v14 = vadd.f32 %v1513_v39, %v1379_v33  ;;  %v1710_v50 = vmul.f32 %v3758_v12, %v1642_v54  ;;  %v1772_v41 = vadd.f32 %v1708_v38, %v1575_v45  ;;  %v4053_v10 = vadd.f32 %v1902_v0, %v1769_v34  ;;  %v1839_v33 = vld [vmem:[#allocation2 + $0x6a] sm:$0xff]  ;;  %v2794_v45 = vld [vmem:[#allocation2 + $0x79] sm:$0xff] }
  0xf5   :  { %v4055_v2 = vadd.f32 %v1903_v53, %v1770_v13  ;;  %v4057_v26 = vadd.f32 %v1904_v44, %v1771_v19  ;;  %v1412_v6 = vadd.f32 %v1348_v32, %v3999_v3  ;;  %v1938_v23 = vmul.f32 %v3796_v22, %v3973_v31  ;;  %v496_v39 = vld [vmem:[#allocation2 + $0x229] sm:$0xff] }
  0xf6   :  { %v1939_v60 = vmul.f32 %v3796_v22, %v3975_v37  ;;  %v1578_v42 = vadd.f32 %v5667_v43, %v1380_v29  ;;  %v1711_v1 = vmul.f32 %v2794_v45, %v3758_v12  ;;  %v1773_v27 = vadd.f32 %v1709_v35, %v1576_v24  ;;  %v5668_v32 = vld [vmem:[#allocation12_spill] sm:$0xff]  ;;  %v5669_v31 = vld [vmem:[#allocation13_spill] sm:$0xff]  ;;  %v1840_v37 = vld [vmem:[#allocation2 + $0x7a] sm:$0xff] }
  0xf7   :  { %v1905_v54 = vmul.f32 %v3796_v22, %v1837_v63  ;;  %v1906_v38 = vmul.f32 %v3796_v22, %v1838_v48  ;;  %v1609_v3 = vadd.f32 %v1545_v49, %v3960_v21  ;;  %v1579_v34 = vadd.f32 %v5669_v31, %v5668_v32 }
  0xf8   :  { %v1774_v13 = vadd.f32 %v1710_v50, %v1577_v14  ;;  %v2030_v19 = vsel %vm17_vm0, %v4053_v10, 0.0  ;;  %v1907_v7 = vmul.f32 %v3796_v22, %v1839_v33  ;;  %v2031_v29 = vsel %vm17_vm0, %v4055_v2, 0.0  ;;  %v5671_v33 = vld [vmem:[#allocation14_spill] sm:$0xff] }
  0xf9   :  { %v4074_v59 = vadd.f32 %v1905_v54, %v1772_v41  ;;  %v2033_v24 = vsel %vm17_vm0, %v4057_v26, 0.0  ;;  %v1216_v21 = vadd.f32 %v4014_v16, %v1019_v9  ;;  %v367_v49 = vmul.f32 %v3733_v8, %v299_v5  ;;  %v300_v16 = vld [vmem:[#allocation2 + $0x230] sm:$0xff]  ;;  %v2795_v54 = vld [vmem:[#allocation2 + $0x82] sm:$0xff] }
  0xfa   :  { %v564_v35 = vmul.f32 %v3739_v47, %v496_v39  ;;  %v2032_v0 = vadd.f32 %v2031_v29, %v2030_v19  ;;  %v956_v53 = vmul.f32 %v3834_v28, %v299_v5  ;;  %v1775_v44 = vadd.f32 %v1711_v1, %v1578_v42  ;;  %v497_v9 = vld [vmem:[#allocation2 + $0x231] sm:$0xff] }
  0xfb   :  { %v1908_v14 = vmul.f32 %v3796_v22, %v1840_v37  ;;  %v4085_v50 = vadd.f32 %v1906_v38, %v1773_v27  ;;  %v1806_v63 = vadd.f32 %v1742_v11, %v1609_v3  ;;  %v4088_v48 = vadd.f32 %v1938_v23, %v4001_v58  ;;  %v693_v27 = vld [vmem:[#allocation2 + $0x22a] sm:$0xff]  ;;  %v5673_v3 = vld [vmem:[#allocation15_spill] sm:$0xff]  ;;  %v694_v29 = vld [vmem:[#allocation2 + $0x232] sm:$0xff] }
  0xfc   :  { %v1546_v41 = vmul.f32 %v3775_v61, %v299_v5  ;;  %v2034_v43 = vadd.f32 %v2033_v24, %v2032_v0  ;;  %v1776_v45 = vadd.f32 %v5671_v33, %v1579_v34  ;;  %v1909_v32 = vmul.f32 %v2795_v54, %v3796_v22  ;;  %v5672_v38 = vld [vmem:[#allocation16_spill] sm:$0xff] }
  0xfd   :  { %5670 = vst [vmem:[#allocation3_spill] sm:$0xff] %v4088_v48  ;;  %v4093_v31 = vadd.f32 %v1907_v7, %v1774_v13  ;;  %v2035_v42 = vsel %vm17_vm0, %v4074_v59, 0.0  ;;  %v1413_v1 = vadd.f32 %v1349_v18, %v1216_v21  ;;  %v1153_v11 = vmul.f32 %v3848_v17, %v496_v39 }
  0xfe   :  { %v1743_v58 = vmul.f32 %v3758_v12, %v496_v39  ;;  %v2036_v23 = vadd.f32 %v2035_v42, %v2034_v43  ;;  %v1020_v5 = vadd.f32 %v956_v53, %v4023_v52  ;;  %v1777_v34 = vadd.f32 %v5673_v3, %v5672_v38 }
  0xff   :  { %v4102_v37 = vadd.f32 %v1908_v14, %v1775_v44  ;;  %v2037_v13 = vsel %vm17_vm0, %v4085_v50, 0.0  ;;  %v1610_v19 = vadd.f32 %v1546_v41, %v1412_v6  ;;  %v368_v7 = vmul.f32 %v3733_v8, %v300_v16 }
 0x100   :  { %v565_v18 = vmul.f32 %v3739_v47, %v497_v9  ;;  %v2038_v24 = vadd.f32 %v2037_v13, %v2036_v23  ;;  %v4108_v39 = vadd.f32 %v1939_v60, %v1806_v63  ;;  %v628_v21 = vadd.f32 %v564_v35, %v367_v49  ;;  %v5678_v23 = vld [vmem:[#allocation17_spill] sm:$0xff] }
 0x101   :  { %5674 = vst [vmem:[#allocation5_spill] sm:$0xff] %v4102_v37  ;;  %v4110_v52 = vadd.f32 %v1909_v32, %v1776_v45  ;;  %v2039_v0 = vsel %vm17_vm0, %v4093_v31, 0.0  ;;  %v4116_v53 = vsel %vm17_vm0, %v4088_v48, 0.0  ;;  %v761_v6 = vmul.f32 %v3745_v15, %v693_v27  ;;  %v301_v45 = vld [vmem:[#allocation2 + $0x240] sm:$0xff] }
 0x102   :  { %5675 = vst [vmem:[#allocation8_spill] sm:$0xff] %v4108_v39  ;;  %v957_v44 = vmul.f32 %v3834_v28, %v300_v16  ;;  %v2040_v14 = vadd.f32 %v2039_v0, %v2038_v24  ;;  %v1217_v41 = vadd.f32 %v1153_v11, %v1020_v5  ;;  %v762_v43 = vmul.f32 %v3745_v15, %v694_v29  ;;  %v498_v11 = vld [vmem:[#allocation2 + $0x241] sm:$0xff] }
 0x103   :  { %5676 = vst [vmem:[#allocation6_spill] sm:$0xff] %v4110_v52  ;;  %v4122_v60 = vadd.f32 %v3526_v62, %v1777_v34  ;;  %v2041_v49 = vsel %vm17_vm0, %v4102_v37, 0.0  ;;  %v1807_v35 = vadd.f32 %v1743_v58, %v1610_v19  ;;  %v629_v63 = vadd.f32 %v565_v18, %v368_v7  ;;  %v302_v18 = vld [vmem:[#allocation2 + $0x248] sm:$0xff] }
 0x104   :  { %v1154_v33 = vmul.f32 %v3848_v17, %v497_v9  ;;  %v2042_v54 = vadd.f32 %v2041_v49, %v2040_v14  ;;  %v4129_v32 = vsel %vm17_vm0, %v4108_v39, 0.0  ;;  %v1350_v42 = vmul.f32 %v3867_v40, %v693_v27  ;;  %v499_v14 = vld [vmem:[#allocation2 + $0x249] sm:$0xff] }
 0x105   :  { %5677 = vst [vmem:[#allocation7_spill] sm:$0xff] %v4122_v60  ;;  %v4134_v62 = vadd.f32 %v5678_v23, %v3536_v20  ;;  %v2043_v5 = vsel %vm17_vm0, %v4110_v52, 0.0  ;;  %v825_v58 = vadd.f32 %v761_v6, %v628_v21  ;;  %v1021_v38 = vadd.f32 %v957_v44, %v4048_v57  ;;  %v695_v23 = vld [vmem:[#allocation2 + $0x242] sm:$0xff] }
 0x106   :  { %v1547_v3 = vmul.f32 %v3775_v61, %v300_v16  ;;  %v2044_v34 = vadd.f32 %v2043_v5, %v2042_v54  ;;  %v1351_v13 = vmul.f32 %v3867_v40, %v694_v29  ;;  %v1744_v19 = vmul.f32 %v3758_v12, %v497_v9 }
 0x107   :  { %5679 = vst [vmem:[#allocation10_spill] sm:$0xff] %v4134_v62  ;;  %v958_v7 = vmul.f32 %v3834_v28, %v301_v45  ;;  %v2045_v20 = vsel %vm17_vm0, %v4122_v60, 0.0  ;;  %v826_v24 = vadd.f32 %v762_v43, %v629_v63  ;;  %v369_v0 = vmul.f32 %v3733_v8, %v301_v45 }
 0x108   :  { %v566_v21 = vmul.f32 %v3739_v47, %v498_v11  ;;  %v2046_v6 = vadd.f32 %v2045_v20, %v2044_v34  ;;  %v1414_v57 = vadd.f32 %v1350_v42, %v1217_v41  ;;  %v1940_v16 = vmul.f32 %v3796_v22, %v693_v27  ;;  %v5680_v41 = vld [vmem:[#allocation18_spill] sm:$0xff] }
 0x109   :  { %v1548_v44 = vmul.f32 %v3775_v61, %v301_v45  ;;  %v2047_v9 = vsel %vm17_vm0, %v4134_v62, 0.0  ;;  %v1611_v49 = vadd.f32 %v1547_v3, %v1413_v1  ;;  %v1941_v54 = vmul.f32 %v3796_v22, %v694_v29  ;;  %v696_v3 = vld [vmem:[#allocation2 + $0x24a] sm:$0xff] }
 0x10a   :  { %v959_v43 = vmul.f32 %v3834_v28, %v302_v18  ;;  %v2048_v63 = vadd.f32 %v2047_v9, %v2046_v6  ;;  %v1218_v5 = vadd.f32 %v1154_v33, %v1021_v38  ;;  %v1022_v39 = vadd.f32 %v958_v7, %v825_v58  ;;  %v5681_v6 = vld [vmem:[#allocation19_spill] sm:$0xff]  ;;  %v303_v9 = vld [vmem:[#allocation2 + $0x258] sm:$0xff] }
 0x10b   :  { %v1155_v34 = vmul.f32 %v3848_v17, %v498_v11  ;;  %v2049_v27 = vsel %vm17_vm0, %v5680_v41, 0.0  ;;  %v630_v42 = vadd.f32 %v566_v21, %v369_v0  ;;  %v370_v45 = vmul.f32 %v3733_v8, %v302_v18 }
 0x10c   :  { %v567_v20 = vmul.f32 %v3739_v47, %v499_v14  ;;  %v2050_v48 = vadd.f32 %v2049_v27, %v2048_v63  ;;  %v1612_v1 = vadd.f32 %v1548_v44, %v1414_v57  ;;  %v1745_v29 = vmul.f32 %v3758_v12, %v498_v11  ;;  %v5683_v27 = vld [vmem:[#allocation22_spill] sm:$0xff] }
 0x10d   :  { %v763_v25 = vmul.f32 %v3745_v15, %v695_v23  ;;  %v2051_v33 = vsel %vm17_vm0, %v5681_v6, 0.0  ;;  %v1808_v58 = vadd.f32 %v1744_v19, %v1611_v49  ;;  %v1023_v38 = vadd.f32 %v959_v43, %v826_v24  ;;  %v500_v49 = vld [vmem:[#allocation2 + $0x259] sm:$0xff] }
 0x10e   :  { %v1156_v7 = vmul.f32 %v3848_v17, %v499_v14  ;;  %v2052_v0 = vadd.f32 %v2051_v33, %v2050_v48  ;;  %v1415_v21 = vadd.f32 %v1351_v13, %v1218_v5  ;;  %v1219_v41 = vadd.f32 %v1155_v34, %v1022_v39 }
 0x10f   :  { %v1352_v62 = vmul.f32 %v3867_v40, %v695_v23  ;;  %v1549_v57 = vmul.f32 %v3775_v61, %v302_v18  ;;  %v4165_v44 = vadd.f32 %v1940_v16, %v1807_v35  ;;  %v631_v11 = vadd.f32 %v567_v20, %v370_v45  ;;  %v5685_v18 = vld [vmem:[#allocation24_spill] sm:$0xff]  ;;  %v304_v20 = vld [vmem:[#allocation2 + $0x260] sm:$0xff] }
 0x110   :  { %v764_v63 = vmul.f32 %v3745_v15, %v696_v3  ;;  %v2054_v60 = vadd.f32 %v5683_v27, %v2052_v0  ;;  %v1809_v6 = vadd.f32 %v1745_v29, %v1612_v1  ;;  %v827_v19 = vadd.f32 %v763_v25, %v630_v42  ;;  %v501_v25 = vld [vmem:[#allocation2 + $0x261] sm:$0xff] }
 0x111   :  { %5682 = vst [vmem:[#allocation9_spill] sm:$0xff] %v4165_v44  ;;  %v1942_v24 = vmul.f32 %v3796_v22, %v695_v23  ;;  %v960_v48 = vmul.f32 %v3834_v28, %v303_v9  ;;  %v4171_v13 = vadd.f32 %v1941_v54, %v1808_v58  ;;  %v1220_v39 = vadd.f32 %v1156_v7, %v1023_v38  ;;  %v5686_v54 = vld [vmem:[#allocation26_spill] sm:$0xff]  ;;  %v5688_v0 = vld [vmem:[#allocation27_spill] sm:$0xff] }
 0x112   :  { %v1353_v43 = vmul.f32 %v3867_v40, %v696_v3  ;;  %v2056_v35 = vadd.f32 %v5685_v18, %v2054_v60  ;;  %v1416_v16 = vadd.f32 %v1352_v62, %v1219_v41  ;;  %v1613_v5 = vadd.f32 %v1549_v57, %v1415_v21  ;;  %v697_v41 = vld [vmem:[#allocation2 + $0x25a] sm:$0xff] }
 0x113   :  { %5684 = vst [vmem:[#allocation11_spill] sm:$0xff] %v4171_v13  ;;  %v1746_v34 = vmul.f32 %v3758_v12, %v499_v14  ;;  %v1550_v45 = vmul.f32 %v3775_v61, %v303_v9  ;;  %v828_v42 = vadd.f32 %v764_v63, %v631_v11  ;;  %v371_v23 = vmul.f32 %v3733_v8, %v303_v9  ;;  %v698_v63 = vld [vmem:[#allocation2 + $0x262] sm:$0xff] }
 0x114   :  { %v568_v1 = vmul.f32 %v3739_v47, %v500_v49  ;;  %v2058_v29 = vadd.f32 %v5686_v54, %v2056_v35  ;;  %v1943_v33 = vmul.f32 %v3796_v22, %v696_v3  ;;  %v4181_v58 = vadd.f32 %v1942_v24, %v1809_v6  ;;  %v5689_v24 = vld [vmem:[#allocation29_spill] sm:$0xff] }
 0x115   :  { %v1024_v60 = vadd.f32 %v960_v48, %v827_v19  ;;  %v1157_v62 = vmul.f32 %v3848_v17, %v500_v49  ;;  %v1417_v14 = vadd.f32 %v1353_v43, %v1220_v39  ;;  %v372_v38 = vmul.f32 %v3733_v8, %v304_v20 }
 0x116   :  { %5687 = vst [vmem:[#allocation12_spill] sm:$0xff] %v4181_v58  ;;  %v569_v7 = vmul.f32 %v3739_v47, %v501_v25  ;;  %v2060_v21 = vadd.f32 %v5688_v0, %v2058_v29  ;;  %v1810_v9 = vadd.f32 %v1746_v34, %v1613_v5  ;;  %v1614_v57 = vadd.f32 %v1550_v45, %v1416_v16  ;;  %v305_v34 = vld [vmem:[#allocation2 + $0x270] sm:$0xff]  ;;  %v5690_v45 = vld [vmem:[#allocation34_spill] sm:$0xff] }
 0x117   :  { %v1747_v11 = vmul.f32 %v3758_v12, %v500_v49  ;;  %v961_v3 = vmul.f32 %v3834_v28, %v304_v20  ;;  %v632_v6 = vadd.f32 %v568_v1, %v371_v23  ;;  %v765_v27 = vmul.f32 %v3745_v15, %v697_v41  ;;  %v502_v0 = vld [vmem:[#allocation2 + $0x271] sm:$0xff] }
 0x118   :  { %v1551_v19 = vmul.f32 %v3775_v61, %v304_v20  ;;  %v2062_v48 = vadd.f32 %v5689_v24, %v2060_v21  ;;  %v4194_v39 = vsel %vm17_vm0, %v4165_v44, 0.0  ;;  %v4198_v43 = vsel %vm17_vm0, %v4171_v13, 0.0  ;;  %v306_v24 = vld [vmem:[#allocation2 + $0x278] sm:$0xff] }
 0x119   :  { %v1221_v18 = vadd.f32 %v1157_v62, %v1024_v60  ;;  %v1354_v49 = vmul.f32 %v3867_v40, %v697_v41  ;;  %v4203_v35 = vsel %vm17_vm0, %v4181_v58, 0.0  ;;  %v633_v16 = vadd.f32 %v569_v7, %v372_v38  ;;  %v5692_v58 = vld [vmem:[#allocation35_spill] sm:$0xff] }
 0x11a   :  { %v766_v5 = vmul.f32 %v3745_v15, %v698_v63  ;;  %v2064_v20 = vadd.f32 %v5690_v45, %v2062_v48  ;;  %v4207_v23 = vadd.f32 %v1943_v33, %v1810_v9  ;;  %v1811_v1 = vadd.f32 %v1747_v11, %v1614_v57  ;;  %v503_v11 = vld [vmem:[#allocation2 + $0x279] sm:$0xff] }
 0x11b   :  { %v1025_v54 = vadd.f32 %v961_v3, %v828_v42  ;;  %v1158_v29 = vmul.f32 %v3848_v17, %v501_v25  ;;  %v829_v60 = vadd.f32 %v765_v27, %v632_v6  ;;  %v1615_v62 = vadd.f32 %v1551_v19, %v1417_v14  ;;  %v5693_v3 = vld [vmem:[#allocation36_spill] sm:$0xff]  ;;  %v699_v27 = vld [vmem:[#allocation2 + $0x272] sm:$0xff]  ;;  %v700_v45 = vld [vmem:[#allocation2 + $0x27a] sm:$0xff] }
 0x11c   :  { %5691 = vst [vmem:[#allocation13_spill] sm:$0xff] %v4207_v23  ;;  %v1748_v21 = vmul.f32 %v3758_v12, %v501_v25  ;;  %v2066_v13 = vadd.f32 %v5692_v58, %v2064_v20  ;;  %v1355_v38 = vmul.f32 %v3867_v40, %v698_v63  ;;  %v1418_v15 = vadd.f32 %v1354_v49, %v1221_v18 }
 0x11d   :  { %v962_v7 = vmul.f32 %v3834_v28, %v305_v34  ;;  %v1552_v33 = vmul.f32 %v3775_v61, %v305_v34  ;;  %v830_v9 = vadd.f32 %v766_v5, %v633_v16  ;;  %v373_v42 = vmul.f32 %v3733_v8, %v305_v34  ;;  %v5694_v16 = vld [vmem:[#allocation38_spill] sm:$0xff] }
 0x11e   :  { %v570_v57 = vmul.f32 %v3739_v47, %v502_v0  ;;  %v2068_v14 = vadd.f32 %v5693_v3, %v2066_v13  ;;  %v1222_v6 = vadd.f32 %v1158_v29, %v1025_v54  ;;  %v1944_v25 = vmul.f32 %v3796_v22, %v697_v41  ;;  %v4227_v13 = vld [vmem:[%s5536_s1] ss:$0 sm:$0xff]  ;;  %v4243_v54 = vld [vmem:[%s5536_s1 + $0x2] ss:$0 sm:$0xff] }
 0x11f   :  { %v1945_v58 = vmul.f32 %v3796_v22, %v698_v63  ;;  %v963_v19 = vmul.f32 %v3834_v28, %v306_v24  ;;  %v1812_v48 = vadd.f32 %v1748_v21, %v1615_v62  ;;  %v1159_v18 = vmul.f32 %v3848_v17, %v502_v0  ;;  %v4233_v63 = vld [vmem:[%s5536_s1 + $0x1] ss:$0 sm:$0xff] }
 0x120   :  { %v1749_v49 = vmul.f32 %v3758_v12, %v502_v0  ;;  %v2070_v8 = vadd.f32 %v5694_v16, %v2068_v14  ;;  %v1026_v5 = vadd.f32 %v962_v7, %v829_v60  ;;  %v1616_v47 = vadd.f32 %v1552_v33, %v1418_v15  ;;  %v5695_v0 = vld [vmem:[#allocation42_spill] sm:$0xff]  ;;  %v307_v33 = vld [vmem:[#allocation2 + $0x288] sm:$0xff] }
 0x121   :  { %v374_v41 = vmul.f32 %v4227_v13, %v306_v24  ;;  %v571_v34 = vmul.f32 %v4233_v63, %v503_v11  ;;  %v4238_v12 = vsel %vm17_vm0, %v4207_v23, 0.0  ;;  %v634_v20 = vadd.f32 %v570_v57, %v373_v42  ;;  %v5698_v57 = vld [vmem:[#allocation43_spill] sm:$0xff] }
 0x122   :  { %v767_v29 = vmul.f32 %v4243_v54, %v699_v27  ;;  %v2072_v60 = vadd.f32 %v5695_v0, %v2070_v8  ;;  %v1419_v62 = vadd.f32 %v1355_v38, %v1222_v6  ;;  %v1027_v21 = vadd.f32 %v963_v19, %v830_v9  ;;  %v504_v38 = vld [vmem:[#allocation2 + $0x289] sm:$0xff] }
 0x123   :  { %v1160_v15 = vmul.f32 %v3848_v17, %v503_v11  ;;  %v1553_v7 = vmul.f32 %v3775_v61, %v306_v24  ;;  %v4249_v3 = vadd.f32 %v1944_v25, %v1811_v1  ;;  %v4251_v14 = vadd.f32 %v1945_v58, %v1812_v48  ;;  %v5699_v24 = vld [vmem:[#allocation44_spill] sm:$0xff]  ;;  %v4263_v48 = vld [vmem:[%s5536_s1 + $0x7] ss:$0 sm:$0xff]  ;;  %v308_v0 = vld [vmem:[#allocation2 + $0x290] sm:$0xff] }
 0x124   :  { %v768_v42 = vmul.f32 %v4243_v54, %v700_v45  ;;  %v2074_v16 = vadd.f32 %v5698_v57, %v2072_v60  ;;  %v1223_v23 = vadd.f32 %v1159_v18, %v1026_v5  ;;  %v1813_v44 = vadd.f32 %v1749_v49, %v1616_v47  ;;  %v5700_v5 = vld [vmem:[#allocation45_spill] sm:$0xff] }
 0x125   :  { %5696 = vst [vmem:[#allocation14_spill] sm:$0xff] %v4249_v3  ;;  %5697 = vst [vmem:[#allocation16_spill] sm:$0xff] %v4251_v14  ;;  %v635_v52 = vadd.f32 %v571_v34, %v374_v41  ;;  %v1356_v8 = vmul.f32 %v3867_v40, %v699_v27  ;;  %v831_v9 = vadd.f32 %v767_v29, %v634_v20  ;;  %v4268_v49 = vsel %vm17_vm0, %v4249_v3, 0.0  ;;  %v701_v60 = vld [vmem:[#allocation2 + $0x28a] sm:$0xff] }
 0x126   :  { %v1946_v6 = vmul.f32 %v3796_v22, %v699_v27  ;;  %v964_v61 = vmul.f32 %v3834_v28, %v307_v33  ;;  %v2076_v1 = vadd.f32 %v5699_v24, %v2074_v16  ;;  %v1224_v25 = vadd.f32 %v1160_v15, %v1027_v21 }
 0x127   :  { %v1357_v58 = vmul.f32 %v3867_v40, %v700_v45  ;;  %v1617_v19 = vadd.f32 %v1553_v7, %v1419_v62  ;;  %v1750_v18 = vmul.f32 %v4263_v48, %v503_v11  ;;  %v375_v22 = vmul.f32 %v4227_v13, %v307_v33  ;;  %v4280_v11 = vld [vmem:[%s5536_s1 + $0x6] ss:$0 sm:$0xff]  ;;  %v505_v7 = vld [vmem:[#allocation2 + $0x291] sm:$0xff] }
 0x128   :  { %v572_v27 = vmul.f32 %v4233_v63, %v504_v38  ;;  %v2078_v47 = vadd.f32 %v5700_v5, %v2076_v1  ;;  %v4275_v41 = vsel %vm17_vm0, %v4251_v14, 0.0  ;;  %v832_v34 = vadd.f32 %v768_v42, %v635_v52 }
 0x129   :  { %v1420_v20 = vadd.f32 %v1356_v8, %v1223_v23  ;;  %v1554_v29 = vmul.f32 %v4280_v11, %v307_v33  ;;  %v4283_v62 = vadd.f32 %v1946_v6, %v1813_v44  ;;  %v1028_v21 = vadd.f32 %v964_v61, %v831_v9  ;;  %v4290_v23 = vld [vmem:[%s5536_s1 + $0x8] ss:$0 sm:$0xff] }
 0x12a   :  { %v1161_v15 = vmul.f32 %v3848_v17, %v504_v38  ;;  %v2080_v57 = vadd.f32 %v3814_v30, %v2078_v47  ;;  %v1421_v16 = vadd.f32 %v1357_v58, %v1224_v25  ;;  %v1814_v52 = vadd.f32 %v1750_v18, %v1617_v19  ;;  %v309_v25 = vld [vmem:[#allocation2 + $0x2a0] sm:$0xff]  ;;  %v702_v19 = vld [vmem:[#allocation2 + $0x292] sm:$0xff] }
 0x12b   :  { %5701 = vst [vmem:[#allocation15_spill] sm:$0xff] %v4283_v62  ;;  %v1947_v42 = vmul.f32 %v4290_v23, %v700_v45  ;;  %v1555_v33 = vmul.f32 %v4280_v11, %v308_v0  ;;  %v636_v8 = vadd.f32 %v572_v27, %v375_v22  ;;  %v769_v44 = vmul.f32 %v4243_v54, %v701_v60  ;;  %v506_v47 = vld [vmem:[#allocation2 + $0x2a1] sm:$0xff] }
 0x12c   :  { %v965_v9 = vmul.f32 %v3834_v28, %v308_v0  ;;  %v2082_v6 = vadd.f32 %v3826_v51, %v2080_v57  ;;  %v1618_v61 = vadd.f32 %v1554_v29, %v1420_v20  ;;  %v1751_v30 = vmul.f32 %v4263_v48, %v504_v38 }
 0x12d   :  { %v376_v24 = vmul.f32 %v4227_v13, %v308_v0  ;;  %v573_v1 = vmul.f32 %v4233_v63, %v505_v7  ;;  %v4302_v45 = vsel %vm17_vm0, %v4283_v62, 0.0  ;;  %v1225_v58 = vadd.f32 %v1161_v15, %v1028_v21 }
 0x12e   :  { %v1358_v18 = vmul.f32 %v3867_v40, %v701_v60  ;;  %v2084_v22 = vadd.f32 %v3853_v36, %v2082_v6  ;;  %v4306_v27 = vadd.f32 %v1947_v42, %v1814_v52  ;;  %v1162_v51 = vmul.f32 %v3848_v17, %v505_v7 }
 0x12f   :  { %v1619_v38 = vadd.f32 %v1555_v33, %v1421_v16  ;;  %v1752_v5 = vmul.f32 %v4263_v48, %v505_v7  ;;  %v833_v20 = vadd.f32 %v769_v44, %v636_v8  ;;  %v1029_v29 = vadd.f32 %v965_v9, %v832_v34  ;;  %v310_v33 = vld [vmem:[#allocation2 + $0x2a8] sm:$0xff] }
 0x130   :  { %5702 = vst [vmem:[#allocation17_spill] sm:$0xff] %v4306_v27  ;;  %v966_v0 = vmul.f32 %v3834_v28, %v309_v25  ;;  %v2086_v57 = vadd.f32 %v3877_v4, %v2084_v22  ;;  %v1815_v21 = vadd.f32 %v1751_v30, %v1618_v61  ;;  %v637_v15 = vadd.f32 %v573_v1, %v376_v24  ;;  %v507_v7 = vld [vmem:[#allocation2 + $0x2a9] sm:$0xff] }
 0x131   :  { %v770_v62 = vmul.f32 %v4243_v54, %v702_v19  ;;  %v1359_v36 = vmul.f32 %v3867_v40, %v702_v19  ;;  %v1422_v52 = vadd.f32 %v1358_v18, %v1225_v58  ;;  %v377_v42 = vmul.f32 %v4227_v13, %v309_v25  ;;  %v703_v9 = vld [vmem:[#allocation2 + $0x2a2] sm:$0xff] }
 0x132   :  { %v574_v16 = vmul.f32 %v4233_v63, %v506_v47  ;;  %v2088_v8 = vadd.f32 %v3903_v55, %v2086_v57  ;;  %v1816_v34 = vadd.f32 %v1752_v5, %v1619_v38  ;;  %v1948_v28 = vmul.f32 %v4290_v23, %v701_v60  ;;  %v704_v55 = vld [vmem:[#allocation2 + $0x2aa] sm:$0xff]  ;;  %v4327_v60 = vld [vmem:[%s5536_s1 + $0x3] ss:$0 sm:$0xff] }
 0x133   :  { %v1949_v4 = vmul.f32 %v4290_v23, %v702_v19  ;;  %v1556_v44 = vmul.f32 %v4280_v11, %v309_v25  ;;  %v1226_v6 = vadd.f32 %v1162_v51, %v1029_v29  ;;  %v1030_v61 = vadd.f32 %v966_v0, %v833_v20  ;;  %v311_v20 = vld [vmem:[#allocation2 + $0x2b8] sm:$0xff] }
 0x134   :  { %v1163_v40 = vmul.f32 %v3848_v17, %v506_v47  ;;  %v2090_v30 = vadd.f32 %v3910_v46, %v2088_v8  ;;  %v834_v24 = vadd.f32 %v770_v62, %v637_v15  ;;  %v378_v1 = vmul.f32 %v4227_v13, %v310_v33  ;;  %v5703_v62 = vld [vmem:[#allocation55_spill] sm:$0xff]  ;;  %v5706_v15 = vld [vmem:[#allocation56_spill] sm:$0xff] }
 0x135   :  { %v575_v58 = vmul.f32 %v4233_v63, %v507_v7  ;;  %v967_v25 = vmul.f32 %v4327_v60, %v310_v33  ;;  %v4332_v19 = vsel %vm17_vm0, %v4306_v27, 0.0  ;;  %v638_v17 = vadd.f32 %v574_v16, %v377_v42  ;;  %v4346_v16 = vld [vmem:[%s5536_s1 + $0x4] ss:$0 sm:$0xff] }
 0x136   :  { %v771_v46 = vmul.f32 %v4243_v54, %v703_v9  ;;  %v2092_v18 = vadd.f32 %v5703_v62, %v2090_v30  ;;  %v4336_v22 = vadd.f32 %v1948_v28, %v1815_v21  ;;  %v4338_v51 = vadd.f32 %v1949_v4, %v1816_v34  ;;  %v508_v34 = vld [vmem:[#allocation2 + $0x2b9] sm:$0xff] }
 0x137   :  { %v1620_v38 = vadd.f32 %v1556_v44, %v1422_v52  ;;  %v1753_v5 = vmul.f32 %v4263_v48, %v506_v47  ;;  %v1423_v29 = vadd.f32 %v1359_v36, %v1226_v6  ;;  %v1227_v0 = vadd.f32 %v1163_v40, %v1030_v61  ;;  %v4353_v36 = vld [vmem:[%s5536_s1 + $0x5] ss:$0 sm:$0xff]  ;;  %v5707_v44 = vld [vmem:[#allocation57_spill] sm:$0xff] }
 0x138   :  { %5704 = vst [vmem:[#allocation22_spill] sm:$0xff] %v4336_v22  ;;  %5705 = vst [vmem:[#allocation24_spill] sm:$0xff] %v4338_v51  ;;  %v772_v57 = vmul.f32 %v4243_v54, %v704_v55  ;;  %v2094_v8 = vadd.f32 %v5706_v15, %v2092_v18  ;;  %v639_v27 = vadd.f32 %v575_v58, %v378_v1  ;;  %v4360_v61 = vsel %vm17_vm0, %v4336_v22, 0.0 }
 0x139   :  { %v1031_v42 = vadd.f32 %v967_v25, %v834_v24  ;;  %v1164_v21 = vmul.f32 %v4346_v16, %v507_v7  ;;  %v1557_v52 = vmul.f32 %v4280_v11, %v310_v33  ;;  %v835_v47 = vadd.f32 %v771_v46, %v638_v17  ;;  %v312_v25 = vld [vmem:[#allocation2 + $0x2c0] sm:$0xff] }
 0x13a   :  { %v1360_v28 = vmul.f32 %v4353_v36, %v703_v9  ;;  %v968_v4 = vmul.f32 %v4327_v60, %v311_v20  ;;  %v2096_v6 = vadd.f32 %v5707_v44, %v2094_v8  ;;  %v4364_v33 = vsel %vm17_vm0, %v4338_v51, 0.0  ;;  %v509_v17 = vld [vmem:[#allocation2 + $0x2c1] sm:$0xff] }
 0x13b   :  { %v1817_v40 = vadd.f32 %v1753_v5, %v1620_v38  ;;  %v1361_v30 = vmul.f32 %v4353_v36, %v704_v55  ;;  %v1754_v24 = vmul.f32 %v4263_v48, %v507_v7  ;;  %v379_v1 = vmul.f32 %v4227_v13, %v311_v20  ;;  %v5708_v46 = vld [vmem:[#allocation59_spill] sm:$0xff] }
 0x13c   :  { %v576_v58 = vmul.f32 %v4233_v63, %v508_v34  ;;  %v2098_v62 = vadd.f32 %v5708_v46, %v2096_v6  ;;  %v836_v18 = vadd.f32 %v772_v57, %v639_v27  ;;  %v1228_v15 = vadd.f32 %v1164_v21, %v1031_v42  ;;  %v705_v51 = vld [vmem:[#allocation2 + $0x2ba] sm:$0xff]  ;;  %v706_v57 = vld [vmem:[#allocation2 + $0x2c2] sm:$0xff] }
 0x13d   :  { %v1621_v8 = vadd.f32 %v1557_v52, %v1423_v29  ;;  %v1950_v44 = vmul.f32 %v4290_v23, %v703_v9  ;;  %v1424_v22 = vadd.f32 %v1360_v28, %v1227_v0  ;;  %v1032_v38 = vadd.f32 %v968_v4, %v835_v47  ;;  %v510_v4 = vld [vmem:[#allocation2 + $0x2d1] sm:$0xff] }
 0x13e   :  { %v1165_v5 = vmul.f32 %v4346_v16, %v508_v34  ;;  %v2100_v7 = vadd.f32 %v4021_v56, %v2098_v62  ;;  %v1951_v14 = vmul.f32 %v4290_v23, %v704_v55  ;;  %v1558_v3 = vmul.f32 %v4280_v11, %v311_v20  ;;  %v313_v55 = vld [vmem:[#allocation2 + $0x2d0] sm:$0xff] }
 0x13f   :  { %v380_v37 = vmul.f32 %v4227_v13, %v312_v25  ;;  %v577_v6 = vmul.f32 %v4233_v63, %v509_v17  ;;  %v640_v27 = vadd.f32 %v576_v58, %v379_v1  ;;  %v773_v29 = vmul.f32 %v4243_v54, %v705_v51 }
 0x140   :  { %v969_v9 = vmul.f32 %v4327_v60, %v312_v25  ;;  %v2102_v0 = vadd.f32 %v4116_v53, %v2100_v7  ;;  %v1425_v42 = vadd.f32 %v1361_v30, %v1228_v15  ;;  %v1818_v21 = vadd.f32 %v1754_v24, %v1621_v8 }
 0x141   :  { %v4381_v52 = vadd.f32 %v1950_v44, %v1817_v40  ;;  %v1559_v56 = vmul.f32 %v4280_v11, %v312_v25  ;;  %v1229_v20 = vadd.f32 %v1165_v5, %v1032_v38  ;;  %v1755_v47 = vmul.f32 %v4263_v48, %v508_v34  ;;  %v314_v25 = vld [vmem:[#allocation2 + $0x2d8] sm:$0xff] }
 0x142   :  { %v1362_v28 = vmul.f32 %v4353_v36, %v705_v51  ;;  %v2104_v1 = vadd.f32 %v4129_v32, %v2102_v0  ;;  %v1622_v58 = vadd.f32 %v1558_v3, %v1424_v22  ;;  %v641_v46 = vadd.f32 %v577_v6, %v380_v37  ;;  %v707_v6 = vld [vmem:[#allocation2 + $0x2d2] sm:$0xff] }
 0x143   :  { %v774_v62 = vmul.f32 %v4243_v54, %v706_v57  ;;  %v1166_v53 = vmul.f32 %v4346_v16, %v509_v17  ;;  %v837_v30 = vadd.f32 %v773_v29, %v640_v27  ;;  %v1033_v40 = vadd.f32 %v969_v9, %v836_v18 }
 0x144   :  { %v970_v24 = vmul.f32 %v4327_v60, %v313_v55  ;;  %v2106_v15 = vadd.f32 %v4194_v39, %v2104_v1  ;;  %v1623_v8 = vadd.f32 %v1559_v56, %v1425_v42  ;;  %v1756_v34 = vmul.f32 %v4263_v48, %v509_v17  ;;  %v315_v1 = vld [vmem:[#allocation2 + $0x2e8] sm:$0xff] }
 0x145   :  { %v381_v44 = vmul.f32 %v4227_v13, %v313_v55  ;;  %v578_v32 = vmul.f32 %v4233_v63, %v510_v4  ;;  %v4394_v3 = vadd.f32 %v1951_v14, %v1818_v21  ;;  %v1426_v37 = vadd.f32 %v1362_v28, %v1229_v20 }
 0x146   :  { %v1560_v22 = vmul.f32 %v4280_v11, %v313_v55  ;;  %v2108_v38 = vadd.f32 %v4198_v43, %v2106_v15  ;;  %v1819_v18 = vadd.f32 %v1755_v47, %v1622_v58  ;;  %v838_v5 = vadd.f32 %v774_v62, %v641_v46  ;;  %v511_v55 = vld [vmem:[#allocation2 + $0x2d9] sm:$0xff] }
 0x147   :  { %v1363_v7 = vmul.f32 %v4353_v36, %v706_v57  ;;  %v971_v39 = vmul.f32 %v4327_v60, %v314_v25  ;;  %v1952_v17 = vmul.f32 %v4290_v23, %v705_v51  ;;  %v1034_v27 = vadd.f32 %v970_v24, %v837_v30  ;;  %v708_v15 = vld [vmem:[#allocation2 + $0x2da] sm:$0xff] }
 0x148   :  { %v1167_v29 = vmul.f32 %v4346_v16, %v510_v4  ;;  %v2110_v14 = vadd.f32 %v4203_v35, %v2108_v38  ;;  %v1230_v9 = vadd.f32 %v1166_v53, %v1033_v40  ;;  %v1820_v0 = vadd.f32 %v1756_v34, %v1623_v8  ;;  %v512_v34 = vld [vmem:[#allocation2 + $0x2e9] sm:$0xff] }
 0x149   :  { %v1953_v42 = vmul.f32 %v4290_v23, %v706_v57  ;;  %v642_v21 = vadd.f32 %v578_v32, %v381_v44  ;;  %v1624_v43 = vadd.f32 %v1560_v22, %v1426_v37  ;;  %v1757_v56 = vmul.f32 %v4263_v48, %v510_v4 }
 0x14a   :  { %v775_v20 = vmul.f32 %v4243_v54, %v707_v6  ;;  %v2112_v47 = vadd.f32 %v4238_v12, %v2110_v14  ;;  %v4409_v51 = vsel %vm17_vm0, %v4381_v52, 0.0  ;;  %v4413_v35 = vsel %vm17_vm0, %v4394_v3, 0.0 }
 0x14b   :  { %v1035_v28 = vadd.f32 %v971_v39, %v838_v5  ;;  %v1168_v57 = vmul.f32 %v4346_v16, %v511_v55  ;;  %v4416_v58 = vadd.f32 %v1952_v17, %v1819_v18  ;;  %v1231_v4 = vadd.f32 %v1167_v29, %v1034_v27 }
 0x14c   :  { %v1364_v46 = vmul.f32 %v4353_v36, %v707_v6  ;;  %v2114_v62 = vadd.f32 %v4268_v49, %v2112_v47  ;;  %v1427_v12 = vadd.f32 %v1363_v7, %v1230_v9  ;;  %v4420_v53 = vadd.f32 %v1953_v42, %v1820_v0  ;;  %v316_v9 = vld [vmem:[#allocation2 + $0x2f0] sm:$0xff] }
 0x14d   :  { %v382_v30 = vmul.f32 %v4227_v13, %v314_v25  ;;  %v579_v40 = vmul.f32 %v4233_v63, %v511_v55  ;;  %v1821_v24 = vadd.f32 %v1757_v56, %v1624_v43  ;;  %v839_v8 = vadd.f32 %v775_v20, %v642_v21  ;;  %v709_v0 = vld [vmem:[#allocation2 + $0x2ea] sm:$0xff] }
 0x14e   :  { %v972_v44 = vmul.f32 %v4327_v60, %v315_v1  ;;  %v2116_v32 = vadd.f32 %v4275_v41, %v2114_v62  ;;  %v1232_v37 = vadd.f32 %v1168_v57, %v1035_v28  ;;  %v1365_v22 = vmul.f32 %v4353_v36, %v708_v15  ;;  %v513_v28 = vld [vmem:[#allocation2 + $0x2f1] sm:$0xff] }
 0x14f   :  { %v1561_v49 = vmul.f32 %v4280_v11, %v314_v25  ;;  %v1954_v38 = vmul.f32 %v4290_v23, %v707_v6  ;;  %v2129_v18 = vsel %vm17_vm0, %v4416_v58, 0.0  ;;  %v1428_v5 = vadd.f32 %v1364_v46, %v1231_v4 }
 0x150   :  { %v1562_v7 = vmul.f32 %v4280_v11, %v315_v1  ;;  %v2118_v39 = vadd.f32 %v4302_v45, %v2116_v32  ;;  %v643_v17 = vadd.f32 %v579_v40, %v382_v30  ;;  %v776_v27 = vmul.f32 %v4243_v54, %v708_v15 }
 0x151   :  { %v383_v41 = vmul.f32 %v4227_v13, %v315_v1  ;;  %v580_v29 = vmul.f32 %v4233_v63, %v512_v34  ;;  %v2131_v25 = vsel %vm17_vm0, %v4420_v53, 0.0  ;;  %v1036_v14 = vadd.f32 %v972_v44, %v839_v8  ;;  %v317_v44 = vld [vmem:[#allocation2 + $0x300] sm:$0xff] }
 0x152   :  { %v1169_v6 = vmul.f32 %v4346_v16, %v512_v34  ;;  %v2120_v42 = vadd.f32 %v4332_v19, %v2118_v39  ;;  %v1429_v21 = vadd.f32 %v1365_v22, %v1232_v37  ;;  %v1625_v43 = vadd.f32 %v1561_v49, %v1427_v12  ;;  %v710_v37 = vld [vmem:[#allocation2 + $0x2f2] sm:$0xff] }
 0x153   :  { %v1758_v45 = vmul.f32 %v4263_v48, %v511_v55  ;;  %v4441_v56 = vadd.f32 %v1954_v38, %v1821_v24  ;;  %v1626_v20 = vadd.f32 %v1562_v7, %v1428_v5  ;;  %v1759_v47 = vmul.f32 %v4263_v48, %v512_v34 }
 0x154   :  { %v1563_v57 = vmul.f32 %v4280_v11, %v316_v9  ;;  %v2122_v1 = vadd.f32 %v4360_v61, %v2120_v42  ;;  %v840_v4 = vadd.f32 %v776_v27, %v643_v17  ;;  %v644_v46 = vadd.f32 %v580_v29, %v383_v41 }
 0x155   :  { %v777_v62 = vmul.f32 %v4243_v54, %v709_v0  ;;  %v973_v19 = vmul.f32 %v4327_v60, %v316_v9  ;;  %v1955_v12 = vmul.f32 %v4290_v23, %v708_v15  ;;  %v1233_v30 = vadd.f32 %v1169_v6, %v1036_v14  ;;  %v514_v15 = vld [vmem:[#allocation2 + $0x301] sm:$0xff] }
 0x156   :  { %v1366_v55 = vmul.f32 %v4353_v36, %v709_v0  ;;  %v2124_v40 = vadd.f32 %v4364_v33, %v2122_v1  ;;  %v1822_v24 = vadd.f32 %v1758_v45, %v1625_v43  ;;  %v2133_v8 = vsel %vm17_vm0, %v4441_v56, 0.0  ;;  %v711_v45 = vld [vmem:[#allocation2 + $0x302] sm:$0xff] }
 0x157   :  { %v384_v34 = vmul.f32 %v4227_v13, %v316_v9  ;;  %v581_v61 = vmul.f32 %v4233_v63, %v513_v28  ;;  %v1823_v32 = vadd.f32 %v1759_v47, %v1626_v20  ;;  %v1627_v22 = vadd.f32 %v1563_v57, %v1429_v21  ;;  %v515_v1 = vld [vmem:[#allocation2 + $0x309] sm:$0xff] }
 0x158   :  { %v1760_v49 = vmul.f32 %v4263_v48, %v513_v28  ;;  %v2126_v38 = vadd.f32 %v4409_v51, %v2124_v40  ;;  %v841_v5 = vadd.f32 %v777_v62, %v644_v46  ;;  %v1037_v7 = vadd.f32 %v973_v19, %v840_v4 }
 0x159   :  { %v1170_v33 = vmul.f32 %v4346_v16, %v513_v28  ;;  %v1956_v39 = vmul.f32 %v4290_v23, %v709_v0  ;;  %v1430_v17 = vadd.f32 %v1366_v55, %v1233_v30  ;;  %v974_v27 = vmul.f32 %v4327_v60, %v317_v44  ;;  %v318_v0 = vld [vmem:[#allocation2 + $0x308] sm:$0xff] }
 0x15a   :  { %v1564_v41 = vmul.f32 %v4280_v11, %v317_v44  ;;  %v2128_v29 = vadd.f32 %v4413_v35, %v2126_v38  ;;  %v645_v14 = vadd.f32 %v581_v61, %v384_v34  ;;  %v778_v6 = vmul.f32 %v4243_v54, %v710_v37  ;;  %v712_v55 = vld [vmem:[#allocation2 + $0x30a] sm:$0xff] }
 0x15b   :  { %v385_v9 = vmul.f32 %v4227_v13, %v317_v44  ;;  %v582_v51 = vmul.f32 %v4233_v63, %v514_v15  ;;  %v4465_v42 = vadd.f32 %v1955_v12, %v1822_v24  ;;  %v1824_v21 = vadd.f32 %v1760_v49, %v1627_v22  ;;  %v516_v49 = vld [vmem:[#allocation2 + $0x319] sm:$0xff] }
 0x15c   :  { %v1957_v43 = vmul.f32 %v4290_v23, %v710_v37  ;;  %v2130_v20 = vadd.f32 %v2129_v18, %v2128_v29  ;;  %v1234_v47 = vadd.f32 %v1170_v33, %v1037_v7  ;;  %v1367_v28 = vmul.f32 %v4353_v36, %v710_v37  ;;  %v517_v29 = vld [vmem:[#allocation2 + $0x321] sm:$0xff] }
 0x15d   :  { %v4469_v57 = vadd.f32 %v1956_v39, %v1823_v32  ;;  %v1171_v35 = vmul.f32 %v4346_v16, %v514_v15  ;;  %v1038_v4 = vadd.f32 %v974_v27, %v841_v5  ;;  %v1628_v46 = vadd.f32 %v1564_v41, %v1430_v17  ;;  %v319_v32 = vld [vmem:[#allocation2 + $0x318] sm:$0xff] }
 0x15e   :  { %v1761_v62 = vmul.f32 %v4263_v48, %v514_v15  ;;  %v2132_v19 = vadd.f32 %v2131_v25, %v2130_v20  ;;  %v842_v12 = vadd.f32 %v778_v6, %v645_v14  ;;  %v646_v30 = vadd.f32 %v582_v51, %v385_v9  ;;  %v713_v20 = vld [vmem:[#allocation2 + $0x31a] sm:$0xff] }
 0x15f   :  { %v779_v40 = vmul.f32 %v4243_v54, %v711_v45  ;;  %v975_v18 = vmul.f32 %v4327_v60, %v318_v0  ;;  %v2135_v24 = vsel %vm17_vm0, %v4465_v42, 0.0  ;;  %v4477_v34 = vadd.f32 %v1957_v43, %v1824_v21 }
 0x160   :  { %v386_v61 = vmul.f32 %v4227_v13, %v318_v0  ;;  %v583_v44 = vmul.f32 %v4233_v63, %v515_v1  ;;  %v1431_v37 = vadd.f32 %v1367_v28, %v1234_v47  ;;  %v2137_v25 = vsel %vm17_vm0, %v4469_v57, 0.0 }
 0x161   :  { %v1565_v22 = vmul.f32 %v4280_v11, %v318_v0  ;;  %v2134_v15 = vadd.f32 %v2133_v8, %v2132_v19  ;;  %v1235_v38 = vadd.f32 %v1171_v35, %v1038_v4  ;;  %v1825_v5 = vadd.f32 %v1761_v62, %v1628_v46  ;;  %v320_v0 = vld [vmem:[#allocation2 + $0x320] sm:$0xff] }
 0x162   :  { %v780_v7 = vmul.f32 %v4243_v54, %v712_v55  ;;  %v1368_v33 = vmul.f32 %v4353_v36, %v711_v45  ;;  %v843_v39 = vadd.f32 %v779_v40, %v646_v30  ;;  %v1039_v17 = vadd.f32 %v975_v18, %v842_v12  ;;  %v714_v40 = vld [vmem:[#allocation2 + $0x322] sm:$0xff] }
 0x163   :  { %v1172_v27 = vmul.f32 %v4346_v16, %v515_v1  ;;  %v976_v41 = vmul.f32 %v4327_v60, %v319_v32  ;;  %v2139_v14 = vsel %vm17_vm0, %v4477_v34, 0.0  ;;  %v647_v6 = vadd.f32 %v583_v44, %v386_v61 }
 0x164   :  { %v387_v9 = vmul.f32 %v4227_v13, %v319_v32  ;;  %v584_v8 = vmul.f32 %v4233_v63, %v516_v49  ;;  %v1629_v51 = vadd.f32 %v1565_v22, %v1431_v37  ;;  %v1762_v21 = vmul.f32 %v4263_v48, %v515_v1 }
 0x165   :  { %v1958_v43 = vmul.f32 %v4290_v23, %v711_v45  ;;  %v2136_v47 = vadd.f32 %v2135_v24, %v2134_v15  ;;  %v1432_v28 = vadd.f32 %v1368_v33, %v1235_v38  ;;  %v1566_v35 = vmul.f32 %v4280_v11, %v319_v32 }
 0x166   :  { %v388_v4 = vmul.f32 %v4227_v13, %v320_v0  ;;  %v585_v46 = vmul.f32 %v4233_v63, %v517_v29  ;;  %v1236_v62 = vadd.f32 %v1172_v27, %v1039_v17  ;;  %v1369_v19 = vmul.f32 %v4353_v36, %v712_v55  ;;  %v910_v13 = vld [vmem:[#allocation2 + $0x330] sm:$0xff] }
 0x167   :  { %v1040_v12 = vadd.f32 %v976_v41, %v843_v39  ;;  %v1173_v30 = vmul.f32 %v4346_v16, %v516_v49  ;;  %v844_v1 = vadd.f32 %v780_v7, %v647_v6  ;;  %v648_v18 = vadd.f32 %v584_v8, %v387_v9  ;;  %v911_v6 = vld [vmem:[#allocation2 + $0x338] sm:$0xff] }
 0x168   :  { %v781_v45 = vmul.f32 %v4243_v54, %v713_v20  ;;  %v977_v24 = vmul.f32 %v4327_v60, %v320_v0  ;;  %v1826_v61 = vadd.f32 %v1762_v21, %v1629_v51  ;;  %v1959_v44 = vmul.f32 %v4290_v23, %v712_v55  ;;  %v1107_v9 = vld [vmem:[#allocation2 + $0x331] sm:$0xff] }
 0x169   :  { %v4502_v32 = vadd.f32 %v1958_v43, %v1825_v5  ;;  %v2138_v63 = vadd.f32 %v2137_v25, %v2136_v47  ;;  %v1630_v37 = vadd.f32 %v1566_v35, %v1432_v28  ;;  %v1763_v22 = vmul.f32 %v4263_v48, %v516_v49 }
 0x16a   :  { %v649_v15 = vadd.f32 %v585_v46, %v388_v4  ;;  %v782_v38 = vmul.f32 %v4243_v54, %v714_v40  ;;  %v1433_v33 = vadd.f32 %v1369_v19, %v1236_v62  ;;  %v1237_v7 = vadd.f32 %v1173_v30, %v1040_v12  ;;  %v1108_v12 = vld [vmem:[#allocation2 + $0x339] sm:$0xff] }
 0x16b   :  { %v1370_v39 = vmul.f32 %v4353_v36, %v713_v20  ;;  %v1567_v17 = vmul.f32 %v4280_v11, %v320_v0  ;;  %v845_v27 = vadd.f32 %v781_v45, %v648_v18  ;;  %v1041_v41 = vadd.f32 %v977_v24, %v844_v1  ;;  %v1502_v45 = vld [vmem:[#allocation2 + $0x348] sm:$0xff] }
 0x16c   :  { %v1174_v55 = vmul.f32 %v4346_v16, %v517_v29  ;;  %v978_v5 = vmul.f32 %v4327_v60, %v910_v13  ;;  %v4510_v25 = vadd.f32 %v1959_v44, %v1826_v61  ;;  %v2141_v49 = vsel %vm17_vm0, %v4502_v32, 0.0 }
 0x16d   :  { %v2140_v54 = vadd.f32 %v2139_v14, %v2138_v63  ;;  %v1827_v8 = vadd.f32 %v1763_v22, %v1630_v37  ;;  %v846_v51 = vadd.f32 %v782_v38, %v649_v15  ;;  %v1764_v21 = vmul.f32 %v4263_v48, %v517_v29  ;;  %v1304_v14 = vld [vmem:[#allocation2 + $0x332] sm:$0xff]  ;;  %v1305_v37 = vld [vmem:[#allocation2 + $0x33a] sm:$0xff] }
 0x16e   :  { %v1960_v43 = vmul.f32 %v4290_v23, %v713_v20  ;;  %v1434_v0 = vadd.f32 %v1370_v39, %v1237_v7  ;;  %v1631_v47 = vadd.f32 %v1567_v17, %v1433_v33  ;;  %v1568_v28 = vmul.f32 %v4280_v11, %v910_v13 }
 0x16f   :  { %v979_v35 = vmul.f32 %v4327_v60, %v911_v6  ;;  %v1238_v4 = vadd.f32 %v1174_v55, %v1041_v41  ;;  %v1371_v46 = vmul.f32 %v4353_v36, %v714_v40  ;;  %v1042_v62 = vadd.f32 %v978_v5, %v845_v27  ;;  %v1699_v41 = vld [vmem:[#allocation2 + $0x349] sm:$0xff] }
 0x170   :  { %v1175_v19 = vmul.f32 %v4346_v16, %v1107_v9  ;;  %v2142_v30 = vadd.f32 %v2141_v49, %v2140_v54  ;;  %v2143_v29 = vsel %vm17_vm0, %v4510_v25, 0.0  ;;  %v1961_v20 = vmul.f32 %v4290_v23, %v714_v40 }
 0x171   :  { %v4523_v1 = vadd.f32 %v1960_v43, %v1827_v8  ;;  %v1765_v18 = vmul.f32 %v4263_v48, %v1107_v9  ;;  %v1828_v60 = vadd.f32 %v1764_v21, %v1631_v47  ;;  %v1632_v24 = vadd.f32 %v1568_v28, %v1434_v0  ;;  %v1896_v43 = vld [vmem:[#allocation2 + $0x34a] sm:$0xff] }
 0x172   :  { %v1043_v61 = vadd.f32 %v979_v35, %v846_v51  ;;  %v1176_v44 = vmul.f32 %v4346_v16, %v1108_v12  ;;  %v1435_v13 = vadd.f32 %v1371_v46, %v1238_v4  ;;  %v1239_v63 = vadd.f32 %v1175_v19, %v1042_v62  ;;  %v1503_v16 = vld [vmem:[#allocation2 + $0x350] sm:$0xff] }
 0x173   :  { %v1372_v22 = vmul.f32 %v4353_v36, %v1304_v14  ;;  %v1569_v15 = vmul.f32 %v4280_v11, %v911_v6  ;;  %v2144_v38 = vadd.f32 %v2143_v29, %v2142_v30  ;;  %v1570_v40 = vmul.f32 %v4280_v11, %v1502_v45  ;;  %v1700_v0 = vld [vmem:[#allocation2 + $0x351] sm:$0xff] }
 0x174   :  { %v2145_v33 = vsel %vm17_vm0, %v4523_v1, 0.0  ;;  %v4532_v7 = vadd.f32 %v1961_v20, %v1828_v60  ;;  %v1829_v39 = vadd.f32 %v1765_v18, %v1632_v24  ;;  %v1240_v17 = vadd.f32 %v1176_v44, %v1043_v61  ;;  %v1897_v30 = vld [vmem:[#allocation2 + $0x352] sm:$0xff] }
 0x175   :  { %v1373_v27 = vmul.f32 %v4353_v36, %v1305_v37  ;;  %v1436_v55 = vadd.f32 %v1372_v22, %v1239_v63  ;;  %v1633_v5 = vadd.f32 %v1569_v15, %v1435_v13  ;;  %v1766_v49 = vmul.f32 %v4263_v48, %v1108_v12 }
 0x176   :  { %v1962_v6 = vmul.f32 %v4290_v23, %v1304_v14  ;;  %v2146_v9 = vadd.f32 %v2145_v33, %v2144_v38  ;;  %v1571_v54 = vmul.f32 %v4280_v11, %v1503_v16  ;;  %v1767_v8 = vmul.f32 %v4263_v48, %v1699_v41 }
 0x177   :  { %v2147_v51 = vsel %vm17_vm0, %v4532_v7, 0.0  ;;  %v1437_v21 = vadd.f32 %v1373_v27, %v1240_v17  ;;  %v1634_v36 = vadd.f32 %v1570_v40, %v1436_v55  ;;  %v1830_v47 = vadd.f32 %v1766_v49, %v1633_v5 }
 0x178   :  { %v1963_v28 = vmul.f32 %v4290_v23, %v1305_v37  ;;  %v4542_v35 = vadd.f32 %v1962_v6, %v1829_v39  ;;  %v2148_v4 = vadd.f32 %v2147_v51, %v2146_v9  ;;  %v1768_v46 = vmul.f32 %v4263_v48, %v1700_v0  ;;  %v5709_v9 = vld [vmem:[#allocation5_spill] sm:$0xff] }
 0x179   :  { %v1964_v62 = vmul.f32 %v4290_v23, %v1896_v43  ;;  %v1635_v11 = vadd.f32 %v1571_v54, %v1437_v21  ;;  %v1831_v19 = vadd.f32 %v1767_v8, %v1634_v36  ;;  %v1965_v20 = vmul.f32 %v4290_v23, %v1897_v30 }
 0x17a   :  { %v4546_v12 = vadd.f32 %v1963_v28, %v1830_v47  ;;  %v2149_v14 = vsel %vm17_vm0, %v4542_v35, 0.0  ;;  %v5711_v47 = vld [vmem:[#allocation7_spill] sm:$0xff] }
 0x17b   :  { %v2150_v29 = vadd.f32 %v2149_v14, %v2148_v4  ;;  %v1832_v18 = vadd.f32 %v1768_v46, %v1635_v11  ;;  %v4551_v45 = vadd.f32 %v1964_v62, %v1831_v19  ;;  %v5712_v11 = vld [vmem:[#allocation10_spill] sm:$0xff] }
 0x17c   :  { %v2151_v60 = vsel %vm17_vm0, %v4546_v12, 0.0 }
 0x17d   :  { %v2152_v48 = vadd.f32 %v2151_v60, %v2150_v29  ;;  %v4555_v24 = vadd.f32 %v1965_v20, %v1832_v18  ;;  %v2153_v61 = vsel %vm17_vm0, %v4551_v45, 0.0  ;;  %v5713_v20 = vld [vmem:[#allocation18_spill] sm:$0xff] }
 0x17f   :  { %v2154_v44 = vadd.f32 %v2153_v61, %v2152_v48  ;;  %v2155_v13 = vsel %vm17_vm0, %v4555_v24, 0.0 }
 0x181   :  { %v2156_v63 = vadd.f32 %v2155_v13, %v2154_v44  ;;  %v5714_v44 = vld [vmem:[#allocation19_spill] sm:$0xff] }
 0x183   :  { %v2157_v37 = vrot.slane %v2156_v63, 4 }
 0x185   :  { %v2158_v22 = vadd.f32 %v2157_v37, %v2156_v63 }
 0x187   :  { %v2159_v23 = vrot.slane %v2158_v22, 2 }
 0x189   :  { %v2160_v15 = vadd.f32 %v2159_v23, %v2158_v22  ;;  %v5715_v23 = vld [vmem:[#allocation20_spill] sm:$0xff] }
 0x18b   :  { %v2161_v38 = vrot.slane %v2160_v15, 1 }
 0x18d   :  { %v2162_v40 = vadd.f32 %v2161_v38, %v2160_v15 }
 0x18f   :  { %v4561_v33 = vmul.f32 0.001953125, %v2162_v40 }
 0x191   :  { %v4565_v39 = vsub.f32 %v4053_v10, %v4561_v33  ;;  %v4569_v17 = vsub.f32 %v4055_v2, %v4561_v33  ;;  %v4573_v27 = vsub.f32 %v4057_v26, %v4561_v33  ;;  %v4577_v16 = vsub.f32 %v4074_v59, %v4561_v33 }
 0x192   :  { %v4585_v10 = vsub.f32 %v4085_v50, %v4561_v33  ;;  %v4591_v26 = vsub.f32 %v4093_v31, %v4561_v33  ;;  %v4599_v54 = vsub.f32 %v5709_v9, %v4561_v33  ;;  %v5710_v31 = vld [vmem:[#allocation6_spill] sm:$0xff]  ;;  %v4613_v28 = vsub.f32 %v5711_v47, %v4561_v33 }
 0x193   :  { %v2229_v41 = vmul.f32 %v4565_v39, %v4565_v39  ;;  %v2230_v55 = vmul.f32 %v4569_v17, %v4569_v17  ;;  %v2231_v2 = vmul.f32 %v4573_v27, %v4573_v27  ;;  %v2232_v59 = vmul.f32 %v4577_v16, %v4577_v16 }
 0x194   :  { %v2233_v50 = vmul.f32 %v4585_v10, %v4585_v10  ;;  %v4606_v21 = vsub.f32 %v5710_v31, %v4561_v33  ;;  %v2234_v43 = vmul.f32 %v4591_v26, %v4591_v26  ;;  %v2235_v4 = vmul.f32 %v4599_v54, %v4599_v54  ;;  %v5718_v31 = vld [vmem:[#allocation25_spill] sm:$0xff] }
 0x195   :  { %v2293_v5 = vsel %vm17_vm0, %v2229_v41, 0.0  ;;  %v2294_v49 = vsel %vm17_vm0, %v2230_v55, 0.0  ;;  %v2296_v8 = vsel %vm17_vm0, %v2231_v2, 0.0  ;;  %v2298_v0 = vsel %vm17_vm0, %v2232_v59, 0.0  ;;  %v5716_v55 = vld [vmem:[#allocation21_spill] sm:$0xff] }
 0x196   :  { %v2295_v6 = vadd.f32 %v2294_v49, %v2293_v5  ;;  %v2300_v46 = vsel %vm17_vm0, %v2233_v50, 0.0  ;;  %v4620_v19 = vsub.f32 %v5712_v11, %v4561_v33  ;;  %v2236_v14 = vmul.f32 %v4606_v21, %v4606_v21 }
 0x197   :  { %v2302_v30 = vsel %vm17_vm0, %v2234_v43, 0.0  ;;  %v4627_v18 = vsub.f32 %v5713_v20, %v4561_v33  ;;  %v2237_v60 = vmul.f32 %v4613_v28, %v4613_v28  ;;  %v2304_v48 = vsel %vm17_vm0, %v2235_v4, 0.0  ;;  %v5719_v4 = vld [vmem:[#allocation28_spill] sm:$0xff] }
 0x198   :  { %v2297_v51 = vadd.f32 %v2296_v8, %v2295_v6  ;;  %v4634_v13 = vsub.f32 %v5714_v44, %v4561_v33  ;;  %v2238_v63 = vmul.f32 %v4620_v19, %v4620_v19  ;;  %v2306_v37 = vsel %vm17_vm0, %v2236_v14, 0.0  ;;  %v5717_v6 = vld [vmem:[#allocation23_spill] sm:$0xff] }
 0x199   :  { %v4641_v15 = vsub.f32 %v5715_v23, %v4561_v33  ;;  %v2239_v38 = vmul.f32 %v4627_v18, %v4627_v18  ;;  %v2308_v40 = vsel %vm17_vm0, %v2237_v60, 0.0  ;;  %v4648_v2 = vsub.f32 %v5716_v55, %v4561_v33  ;;  %v5722_v23 = vld [vmem:[#allocation32_spill] sm:$0xff] }
 0x19a   :  { %v2299_v36 = vadd.f32 %v2298_v0, %v2297_v51  ;;  %v2240_v59 = vmul.f32 %v4634_v13, %v4634_v13  ;;  %v2310_v5 = vsel %vm17_vm0, %v2238_v63, 0.0  ;;  %v4655_v9 = vsub.f32 %v5717_v6, %v4561_v33 }
 0x19b   :  { %v2241_v50 = vmul.f32 %v4641_v15, %v4641_v15  ;;  %v2312_v8 = vsel %vm17_vm0, %v2239_v38, 0.0  ;;  %v4662_v43 = vsub.f32 %v5718_v31, %v4561_v33  ;;  %v2242_v0 = vmul.f32 %v4648_v2, %v4648_v2 }
 0x19c   :  { %v2301_v62 = vadd.f32 %v2300_v46, %v2299_v36  ;;  %v2314_v36 = vsel %vm17_vm0, %v2240_v59, 0.0  ;;  %v4669_v46 = vsub.f32 %v5719_v4, %v4561_v33  ;;  %v4690_v38 = vsub.f32 %v5722_v23, %v4561_v33  ;;  %v5723_v59 = vld [vmem:[#allocation33_spill] sm:$0xff] }
 0x19d   :  { %v2316_v11 = vsel %vm17_vm0, %v2241_v50, 0.0  ;;  %v2244_v20 = vmul.f32 %v4662_v43, %v4662_v43  ;;  %v2318_v60 = vsel %vm17_vm0, %v2242_v0, 0.0 }
 0x19e   :  { %v2303_v29 = vadd.f32 %v2302_v30, %v2301_v62  ;;  %v2243_v62 = vmul.f32 %v4655_v9, %v4655_v9  ;;  %v5720_v30 = vld [vmem:[#allocation30_spill] sm:$0xff]  ;;  %v2245_v63 = vmul.f32 %v4669_v46, %v4669_v46  ;;  %v2248_v31 = vmul.f32 %v4690_v38, %v4690_v38 }
 0x1a0   :  { %v2305_v61 = vadd.f32 %v2304_v48, %v2303_v29  ;;  %v4676_v29 = vsub.f32 %v5720_v30, %v4561_v33  ;;  %v2324_v6 = vsel %vm17_vm0, %v2245_v63, 0.0  ;;  %v5726_v30 = vld [vmem:[#allocation40_spill] sm:$0xff]  ;;  %v5727_v63 = vld [vmem:[#allocation41_spill] sm:$0xff] }
 0x1a2   :  { %v2307_v22 = vadd.f32 %v2306_v37, %v2305_v61  ;;  %v5721_v61 = vld [vmem:[#allocation31_spill] sm:$0xff]  ;;  %v2320_v37 = vsel %vm17_vm0, %v2243_v62, 0.0 }
 0x1a3   :  { %v4683_v44 = vsub.f32 %v5721_v61, %v4561_v33 }
 0x1a4   :  { %v2309_v41 = vadd.f32 %v2308_v40, %v2307_v22  ;;  %v2246_v40 = vmul.f32 %v4676_v29, %v4676_v29 }
 0x1a6   :  { %v2311_v49 = vadd.f32 %v2310_v5, %v2309_v41  ;;  %v2322_v41 = vsel %vm17_vm0, %v2244_v20, 0.0  ;;  %v4697_v5 = vsub.f32 %v5723_v59, %v4561_v33  ;;  %v2326_v0 = vsel %vm17_vm0, %v2246_v40, 0.0 }
 0x1a7   :  { %v4718_v20 = vsub.f32 %v5726_v30, %v4561_v33 }
 0x1a8   :  { %v2313_v51 = vadd.f32 %v2312_v8, %v2311_v49  ;;  %v2247_v49 = vmul.f32 %v4683_v44, %v4683_v44  ;;  %v5724_v8 = vld [vmem:[#allocation37_spill] sm:$0xff]  ;;  %v2249_v62 = vmul.f32 %v4697_v5, %v4697_v5 }
 0x1a9   :  { %v2252_v59 = vmul.f32 %v4718_v20, %v4718_v20 }
 0x1aa   :  { %v2315_v47 = vadd.f32 %v2314_v36, %v2313_v51  ;;  %v4704_v51 = vsub.f32 %v5724_v8, %v4561_v33  ;;  %v2332_v23 = vsel %vm17_vm0, %v2249_v62, 0.0 }
 0x1ac   :  { %v2317_v14 = vadd.f32 %v2316_v11, %v2315_v47  ;;  %v5725_v47 = vld [vmem:[#allocation39_spill] sm:$0xff]  ;;  %v2328_v11 = vsel %vm17_vm0, %v2247_v49, 0.0 }
 0x1ad   :  { %v4711_v4 = vsub.f32 %v5725_v47, %v4561_v33  ;;  %v5730_v47 = vld [vmem:[#allocation48_spill] sm:$0xff] }
 0x1ae   :  { %v2319_v48 = vadd.f32 %v2318_v60, %v2317_v14  ;;  %v2250_v60 = vmul.f32 %v4704_v51, %v4704_v51  ;;  %v4746_v62 = vsub.f32 %v5730_v47, %v4561_v33  ;;  %v5734_v47 = vld [vmem:[#allocation52_spill] sm:$0xff] }
 0x1b0   :  { %v2321_v22 = vadd.f32 %v2320_v37, %v2319_v48  ;;  %v2330_v48 = vsel %vm17_vm0, %v2248_v31, 0.0  ;;  %v4725_v37 = vsub.f32 %v5727_v63, %v4561_v33  ;;  %v2334_v49 = vsel %vm17_vm0, %v2250_v60, 0.0  ;;  %v5731_v60 = vld [vmem:[#allocation49_spill] sm:$0xff] }
 0x1b2   :  { %v2323_v55 = vadd.f32 %v2322_v41, %v2321_v22  ;;  %v2251_v22 = vmul.f32 %v4711_v4, %v4711_v4  ;;  %v5728_v41 = vld [vmem:[#allocation46_spill] sm:$0xff]  ;;  %v2253_v31 = vmul.f32 %v4725_v37, %v4725_v37 }
 0x1b4   :  { %v2325_v50 = vadd.f32 %v2324_v6, %v2323_v55  ;;  %v4732_v55 = vsub.f32 %v5728_v41, %v4561_v33  ;;  %v2340_v63 = vsel %vm17_vm0, %v2253_v31, 0.0  ;;  %v2256_v41 = vmul.f32 %v4746_v62, %v4746_v62 }
 0x1b6   :  { %v2327_v36 = vadd.f32 %v2326_v0, %v2325_v50  ;;  %v5729_v50 = vld [vmem:[#allocation47_spill] sm:$0xff]  ;;  %v2336_v0 = vsel %vm17_vm0, %v2251_v22, 0.0 }
 0x1b7   :  { %v4739_v8 = vsub.f32 %v5729_v50, %v4561_v33 }
 0x1b8   :  { %v2329_v14 = vadd.f32 %v2328_v11, %v2327_v36  ;;  %v2254_v11 = vmul.f32 %v4732_v55, %v4732_v55 }
 0x1ba   :  { %v2331_v61 = vadd.f32 %v2330_v48, %v2329_v14  ;;  %v2338_v14 = vsel %vm17_vm0, %v2252_v59, 0.0  ;;  %v4753_v48 = vsub.f32 %v5731_v60, %v4561_v33  ;;  %v2342_v59 = vsel %vm17_vm0, %v2254_v11, 0.0 }
 0x1bb   :  { %v2346_v11 = vsel %vm17_vm0, %v2256_v41, 0.0 }
 0x1bc   :  { %v2333_v40 = vadd.f32 %v2332_v23, %v2331_v61  ;;  %v2255_v61 = vmul.f32 %v4739_v8, %v4739_v8  ;;  %v5732_v23 = vld [vmem:[#allocation50_spill] sm:$0xff] }
 0x1be   :  { %v2335_v6 = vadd.f32 %v2334_v49, %v2333_v40  ;;  %v4760_v40 = vsub.f32 %v5732_v23, %v4561_v33  ;;  %v2344_v31 = vsel %vm17_vm0, %v2255_v61, 0.0 }
 0x1c0   :  { %v2337_v36 = vadd.f32 %v2336_v0, %v2335_v6  ;;  %v5733_v6 = vld [vmem:[#allocation51_spill] sm:$0xff]  ;;  %v2257_v0 = vmul.f32 %v4753_v48, %v4753_v48 }
 0x1c1   :  { %v4767_v50 = vsub.f32 %v5733_v6, %v4561_v33 }
 0x1c2   :  { %v2339_v30 = vadd.f32 %v2338_v14, %v2337_v36  ;;  %v4774_v14 = vsub.f32 %v5734_v47, %v4561_v33  ;;  %v2348_v61 = vsel %vm17_vm0, %v2257_v0, 0.0  ;;  %v5740_v47 = vld [vmem:[#allocation58_spill] sm:$0xff] }
 0x1c3   :  { %v2259_v23 = vmul.f32 %v4767_v50, %v4767_v50 }
 0x1c4   :  { %v2341_v22 = vadd.f32 %v2340_v63, %v2339_v30  ;;  %5735 = vst [vmem:[#allocation26_spill] sm:$0xff] %v4774_v14  ;;  %v2258_v30 = vmul.f32 %v4760_v40, %v4760_v40  ;;  %v5736_v63 = vld [vmem:[#allocation53_spill] sm:$0xff] }
 0x1c5   :  { %v2352_v0 = vsel %vm17_vm0, %v2259_v23, 0.0 }
 0x1c6   :  { %v2343_v49 = vadd.f32 %v2342_v59, %v2341_v22  ;;  %v4781_v22 = vsub.f32 %v5736_v63, %v4561_v33  ;;  %v2350_v41 = vsel %vm17_vm0, %v2258_v30, 0.0 }
 0x1c8   :  { %v2345_v36 = vadd.f32 %v2344_v31, %v2343_v49  ;;  %5737 = vst [vmem:[#allocation27_spill] sm:$0xff] %v4781_v22  ;;  %v5738_v49 = vld [vmem:[#allocation54_spill] sm:$0xff]  ;;  %v2260_v31 = vmul.f32 %v4774_v14, %v4774_v14  ;;  %v2261_v63 = vmul.f32 %v4781_v22, %v4781_v22 }
 0x1c9   :  { %v4788_v6 = vsub.f32 %v5738_v49, %v4561_v33 }
 0x1ca   :  { %v2347_v60 = vadd.f32 %v2346_v11, %v2345_v36  ;;  %v4795_v11 = vsub.f32 %v5740_v47, %v4561_v33  ;;  %v2354_v30 = vsel %vm17_vm0, %v2260_v31, 0.0  ;;  %v2356_v23 = vsel %vm17_vm0, %v2261_v63, 0.0 }
 0x1cb   :  { %5739 = vst [vmem:[#allocation29_spill] sm:$0xff] %v4788_v6  ;;  %v2262_v14 = vmul.f32 %v4788_v6, %v4788_v6 }
 0x1cc   :  { %v2349_v59 = vadd.f32 %v2348_v61, %v2347_v60  ;;  %5741 = vst [vmem:[#allocation34_spill] sm:$0xff] %v4795_v11  ;;  %v5742_v61 = vld [vmem:[#allocation4_spill] sm:$0xff]  ;;  %v2263_v22 = vmul.f32 %v4795_v11, %v4795_v11 }
 0x1cd   :  { %v4802_v49 = vsub.f32 %v5742_v61, %v4561_v33  ;;  %v2358_v31 = vsel %vm17_vm0, %v2262_v14, 0.0 }
 0x1ce   :  { %v2351_v36 = vadd.f32 %v2350_v41, %v2349_v59  ;;  %v5744_v41 = vld [vmem:[#allocation3_spill] sm:$0xff]  ;;  %v2360_v63 = vsel %vm17_vm0, %v2263_v22, 0.0 }
 0x1cf   :  { %5743 = vst [vmem:[#allocation35_spill] sm:$0xff] %v4802_v49  ;;  %v4809_v47 = vsub.f32 %v5744_v41, %v4561_v33  ;;  %v2264_v6 = vmul.f32 %v4802_v49, %v4802_v49 }
 0x1d0   :  { %v2353_v60 = vadd.f32 %v2352_v0, %v2351_v36  ;;  %v5746_v0 = vld [vmem:[#allocation8_spill] sm:$0xff] }
 0x1d1   :  { %5745 = vst [vmem:[#allocation36_spill] sm:$0xff] %v4809_v47  ;;  %v4816_v61 = vsub.f32 %v5746_v0, %v4561_v33  ;;  %v2265_v11 = vmul.f32 %v4809_v47, %v4809_v47  ;;  %v2362_v14 = vsel %vm17_vm0, %v2264_v6, 0.0 }
 0x1d2   :  { %v2355_v59 = vadd.f32 %v2354_v30, %v2353_v60  ;;  %v5748_v30 = vld [vmem:[#allocation9_spill] sm:$0xff] }
 0x1d3   :  { %5747 = vst [vmem:[#allocation38_spill] sm:$0xff] %v4816_v61  ;;  %v4823_v41 = vsub.f32 %v5748_v30, %v4561_v33  ;;  %v2266_v49 = vmul.f32 %v4816_v61, %v4816_v61  ;;  %v2364_v22 = vsel %vm17_vm0, %v2265_v11, 0.0 }
 0x1d4   :  { %v2357_v36 = vadd.f32 %v2356_v23, %v2355_v59  ;;  %v5750_v23 = vld [vmem:[#allocation11_spill] sm:$0xff] }
 0x1d5   :  { %5749 = vst [vmem:[#allocation42_spill] sm:$0xff] %v4823_v41  ;;  %v4830_v0 = vsub.f32 %v5750_v23, %v4561_v33  ;;  %v2267_v47 = vmul.f32 %v4823_v41, %v4823_v41  ;;  %v2366_v6 = vsel %vm17_vm0, %v2266_v49, 0.0 }
 0x1d6   :  { %v2359_v60 = vadd.f32 %v2358_v31, %v2357_v36  ;;  %v5752_v31 = vld [vmem:[#allocation12_spill] sm:$0xff] }
 0x1d7   :  { %5751 = vst [vmem:[#allocation43_spill] sm:$0xff] %v4830_v0  ;;  %v4837_v30 = vsub.f32 %v5752_v31, %v4561_v33  ;;  %v2268_v61 = vmul.f32 %v4830_v0, %v4830_v0  ;;  %v2368_v11 = vsel %vm17_vm0, %v2267_v47, 0.0 }
 0x1d8   :  { %v2361_v59 = vadd.f32 %v2360_v63, %v2359_v60  ;;  %v5754_v63 = vld [vmem:[#allocation13_spill] sm:$0xff] }
 0x1d9   :  { %5753 = vst [vmem:[#allocation44_spill] sm:$0xff] %v4837_v30  ;;  %v4844_v23 = vsub.f32 %v5754_v63, %v4561_v33  ;;  %v2269_v41 = vmul.f32 %v4837_v30, %v4837_v30  ;;  %v2370_v49 = vsel %vm17_vm0, %v2268_v61, 0.0 }
 0x1da   :  { %v2363_v36 = vadd.f32 %v2362_v14, %v2361_v59  ;;  %v5756_v14 = vld [vmem:[#allocation14_spill] sm:$0xff] }
 0x1db   :  { %5755 = vst [vmem:[#allocation45_spill] sm:$0xff] %v4844_v23  ;;  %v4851_v31 = vsub.f32 %v5756_v14, %v4561_v33  ;;  %v2270_v0 = vmul.f32 %v4844_v23, %v4844_v23  ;;  %v2372_v47 = vsel %vm17_vm0, %v2269_v41, 0.0 }
 0x1dc   :  { %v2365_v60 = vadd.f32 %v2364_v22, %v2363_v36  ;;  %v5758_v22 = vld [vmem:[#allocation16_spill] sm:$0xff] }
 0x1dd   :  { %5757 = vst [vmem:[#allocation55_spill] sm:$0xff] %v4851_v31  ;;  %v4858_v63 = vsub.f32 %v5758_v22, %v4561_v33  ;;  %v2271_v30 = vmul.f32 %v4851_v31, %v4851_v31  ;;  %v2374_v61 = vsel %vm17_vm0, %v2270_v0, 0.0 }
 0x1de   :  { %v2367_v59 = vadd.f32 %v2366_v6, %v2365_v60  ;;  %v5760_v6 = vld [vmem:[#allocation15_spill] sm:$0xff] }
 0x1df   :  { %5759 = vst [vmem:[#allocation56_spill] sm:$0xff] %v4858_v63  ;;  %v4865_v14 = vsub.f32 %v5760_v6, %v4561_v33  ;;  %v2272_v23 = vmul.f32 %v4858_v63, %v4858_v63  ;;  %v2376_v41 = vsel %vm17_vm0, %v2271_v30, 0.0 }
 0x1e0   :  { %v2369_v36 = vadd.f32 %v2368_v11, %v2367_v59  ;;  %v5761_v11 = vld [vmem:[#allocation17_spill] sm:$0xff] }
 0x1e1   :  { %v4872_v22 = vsub.f32 %v5761_v11, %v4561_v33  ;;  %v2273_v31 = vmul.f32 %v4865_v14, %v4865_v14  ;;  %v2378_v0 = vsel %vm17_vm0, %v2272_v23, 0.0 }
 0x1e2   :  { %v2371_v60 = vadd.f32 %v2370_v49, %v2369_v36  ;;  %v5762_v49 = vld [vmem:[#allocation22_spill] sm:$0xff] }
 0x1e3   :  { %v4879_v6 = vsub.f32 %v5762_v49, %v4561_v33  ;;  %v2274_v63 = vmul.f32 %v4872_v22, %v4872_v22  ;;  %v2380_v30 = vsel %vm17_vm0, %v2273_v31, 0.0 }
 0x1e4   :  { %v2373_v59 = vadd.f32 %v2372_v47, %v2371_v60  ;;  %v5763_v47 = vld [vmem:[#allocation24_spill] sm:$0xff] }
 0x1e5   :  { %v4886_v11 = vsub.f32 %v5763_v47, %v4561_v33  ;;  %v2275_v49 = vmul.f32 %v4879_v6, %v4879_v6  ;;  %v2382_v23 = vsel %vm17_vm0, %v2274_v63, 0.0 }
 0x1e6   :  { %v2375_v36 = vadd.f32 %v2374_v61, %v2373_v59  ;;  %v4893_v61 = vsub.f32 %v4381_v52, %v4561_v33  ;;  %v4907_v52 = vsub.f32 %v4416_v58, %v4561_v33  ;;  %v4921_v58 = vsub.f32 %v4441_v56, %v4561_v33 }
 0x1e7   :  { %v2276_v47 = vmul.f32 %v4886_v11, %v4886_v11  ;;  %v2384_v31 = vsel %vm17_vm0, %v2275_v49, 0.0  ;;  %v4935_v56 = vsub.f32 %v4469_v57, %v4561_v33  ;;  %v4949_v57 = vsub.f32 %v4502_v32, %v4561_v33 }
 0x1e8   :  { %v2377_v60 = vadd.f32 %v2376_v41, %v2375_v36  ;;  %v4900_v41 = vsub.f32 %v4394_v3, %v4561_v33  ;;  %v4914_v3 = vsub.f32 %v4420_v53, %v4561_v33  ;;  %v4928_v53 = vsub.f32 %v4465_v42, %v4561_v33 }
 0x1e9   :  { %v2386_v63 = vsel %vm17_vm0, %v2276_v47, 0.0  ;;  %v4942_v42 = vsub.f32 %v4477_v34, %v4561_v33  ;;  %v4956_v34 = vsub.f32 %v4510_v25, %v4561_v33  ;;  %v4963_v32 = vsub.f32 %v4523_v1, %v4561_v33 }
 0x1ea   :  { %v2379_v59 = vadd.f32 %v2378_v0, %v2377_v60  ;;  %v2277_v0 = vmul.f32 %v4893_v61, %v4893_v61  ;;  %v4970_v25 = vsub.f32 %v4532_v7, %v4561_v33  ;;  %v4977_v1 = vsub.f32 %v4542_v35, %v4561_v33 }
 0x1eb   :  { %5764 = vst [vmem:[#allocation57_spill] sm:$0xff] %v4956_v34  ;;  %5765 = vst [vmem:[#allocation59_spill] sm:$0xff] %v4963_v32  ;;  %v4984_v7 = vsub.f32 %v4546_v12, %v4561_v33 }
 0x1ec   :  { %v2381_v36 = vadd.f32 %v2380_v30, %v2379_v59  ;;  %v2278_v30 = vmul.f32 %v4900_v41, %v4900_v41  ;;  %v2388_v49 = vsel %vm17_vm0, %v2277_v0, 0.0  ;;  %5766 = vst [vmem:[#allocation5_spill] sm:$0xff] %v4970_v25  ;;  %5767 = vst [vmem:[#allocation6_spill] sm:$0xff] %v4977_v1  ;;  %v2289_v35 = vmul.f32 %v4977_v1, %v4977_v1 }
 0x1ed   :  { %5768 = vst [vmem:[#allocation7_spill] sm:$0xff] %v4984_v7  ;;  %v2290_v12 = vmul.f32 %v4984_v7, %v4984_v7 }
 0x1ee   :  { %v2383_v60 = vadd.f32 %v2382_v23, %v2381_v36  ;;  %v2279_v23 = vmul.f32 %v4907_v52, %v4907_v52  ;;  %v2390_v47 = vsel %vm17_vm0, %v2278_v30, 0.0 }
 0x1f0   :  { %v2385_v59 = vadd.f32 %v2384_v31, %v2383_v60  ;;  %v2280_v31 = vmul.f32 %v4914_v3, %v4914_v3  ;;  %v2392_v0 = vsel %vm17_vm0, %v2279_v23, 0.0 }
 0x1f2   :  { %v2387_v36 = vadd.f32 %v2386_v63, %v2385_v59  ;;  %v2281_v63 = vmul.f32 %v4921_v58, %v4921_v58  ;;  %v2394_v30 = vsel %vm17_vm0, %v2280_v31, 0.0 }
 0x1f4   :  { %v2389_v60 = vadd.f32 %v2388_v49, %v2387_v36  ;;  %v2282_v49 = vmul.f32 %v4928_v53, %v4928_v53  ;;  %v2396_v23 = vsel %vm17_vm0, %v2281_v63, 0.0 }
 0x1f6   :  { %v2391_v59 = vadd.f32 %v2390_v47, %v2389_v60  ;;  %v2283_v47 = vmul.f32 %v4935_v56, %v4935_v56  ;;  %v2398_v31 = vsel %vm17_vm0, %v2282_v49, 0.0 }
 0x1f8   :  { %v2393_v36 = vadd.f32 %v2392_v0, %v2391_v59  ;;  %v2284_v0 = vmul.f32 %v4942_v42, %v4942_v42  ;;  %v2400_v63 = vsel %vm17_vm0, %v2283_v47, 0.0 }
 0x1fa   :  { %v2395_v60 = vadd.f32 %v2394_v30, %v2393_v36  ;;  %v2285_v30 = vmul.f32 %v4949_v57, %v4949_v57  ;;  %v2402_v49 = vsel %vm17_vm0, %v2284_v0, 0.0 }
 0x1fc   :  { %v2397_v59 = vadd.f32 %v2396_v23, %v2395_v60  ;;  %v2286_v23 = vmul.f32 %v4956_v34, %v4956_v34  ;;  %v2404_v47 = vsel %vm17_vm0, %v2285_v30, 0.0 }
 0x1fe   :  { %v2399_v36 = vadd.f32 %v2398_v31, %v2397_v59  ;;  %v2287_v31 = vmul.f32 %v4963_v32, %v4963_v32  ;;  %v2406_v0 = vsel %vm17_vm0, %v2286_v23, 0.0 }
 0x200   :  { %v2401_v60 = vadd.f32 %v2400_v63, %v2399_v36  ;;  %v2288_v63 = vmul.f32 %v4970_v25, %v4970_v25  ;;  %v2408_v30 = vsel %vm17_vm0, %v2287_v31, 0.0  ;;  %v2414_v25 = vsel %vm17_vm0, %v2290_v12, 0.0 }
 0x202   :  { %v2403_v59 = vadd.f32 %v2402_v49, %v2401_v60  ;;  %v4993_v49 = vsub.f32 %v4551_v45, %v4561_v33  ;;  %v2410_v23 = vsel %vm17_vm0, %v2288_v63, 0.0 }
 0x204   :  { %v2405_v36 = vadd.f32 %v2404_v47, %v2403_v59  ;;  %5769 = vst [vmem:[#allocation10_spill] sm:$0xff] %v4993_v49  ;;  %v5000_v47 = vsub.f32 %v4555_v24, %v4561_v33  ;;  %v2291_v1 = vmul.f32 %v4993_v49, %v4993_v49 }
 0x206   :  { %v2407_v60 = vadd.f32 %v2406_v0, %v2405_v36  ;;  %v2412_v0 = vsel %vm17_vm0, %v2289_v35, 0.0  ;;  %v2292_v31 = vmul.f32 %v5000_v47, %v5000_v47 }
 0x208   :  { %v2409_v59 = vadd.f32 %v2408_v30, %v2407_v60  ;;  %v2416_v30 = vsel %vm17_vm0, %v2291_v1, 0.0  ;;  %v2418_v24 = vsel %vm17_vm0, %v2292_v31, 0.0 }
 0x20a   :  { %v2411_v36 = vadd.f32 %v2410_v23, %v2409_v59 }
 0x20c   :  { %v2413_v45 = vadd.f32 %v2412_v0, %v2411_v36 }
 0x20e   :  { %v2415_v60 = vadd.f32 %v2414_v25, %v2413_v45  ;;  %v5016_v25 = vld [vmem:[%s5537_s2] ss:$0 sm:$0xff] }
 0x210   :  { %v2417_v7 = vadd.f32 %v2416_v30, %v2415_v60 }
 0x212   :  { %v2419_v33 = vadd.f32 %v2418_v24, %v2417_v7 }
 0x214   :  { %v2420_v63 = vrot.slane %v2419_v33, 4 }
 0x216   :  { %v2421_v59 = vadd.f32 %v2420_v63, %v2419_v33 }
 0x218   :  { %v2422_v23 = vrot.slane %v2421_v59, 2 }
 0x21a   :  { %v2423_v35 = vadd.f32 %v2422_v23, %v2421_v59 }
 0x21c   :  { %v2424_v32 = vrot.slane %v2423_v35, 1 }
 0x21e   :  { %v2425_v34 = vadd.f32 %v2424_v32, %v2423_v35  ;;  %v5029_v32 = vld [vmem:[%s5538_s3] ss:$0 sm:$0xff] }
 0x220   :  { %v2426_v49 = vmul.f32 0.001953125, %v2425_v34 }
 0x222   :  { %v2427_v36 = vadd.f32 1e-05, %v2426_v49 }
 0x224   :  { %2779 = vrsqrt.f32 %v2427_v36 }
 0x22e   :  { %v5011_v12 = vpop.eup %2779 }
 0x22f   :  { %v2429_v1 = vmul.f32 %v5011_v12, %v4565_v39  ;;  %v2430_v7 = vmul.f32 %v5011_v12, %v4569_v17  ;;  %v2431_v0 = vmul.f32 %v5011_v12, %v4573_v27  ;;  %v2432_v34 = vmul.f32 %v5011_v12, %v4577_v16 }
 0x230   :  { %v2433_v49 = vmul.f32 %v5011_v12, %v4585_v10  ;;  %v2434_v39 = vmul.f32 %v5011_v12, %v4591_v26  ;;  %v2435_v17 = vmul.f32 %v5011_v12, %v4599_v54  ;;  %v2436_v27 = vmul.f32 %v5011_v12, %v4606_v21 }
 0x231   :  { %v2500_v45 = vmul.f32 %v5016_v25, %v2429_v1  ;;  %v2501_v16 = vmul.f32 %v5016_v25, %v2430_v7  ;;  %v2502_v31 = vmul.f32 %v5016_v25, %v2431_v0  ;;  %v2503_v60 = vmul.f32 %v5016_v25, %v2432_v34 }
 0x232   :  { %v2504_v30 = vmul.f32 %v5016_v25, %v2433_v49  ;;  %v2505_v10 = vmul.f32 %v5016_v25, %v2434_v39  ;;  %v2506_v26 = vmul.f32 %v5016_v25, %v2435_v17  ;;  %v2507_v24 = vmul.f32 %v5016_v25, %v2436_v27 }
 0x233   :  { %v2571_v54 = vadd.f32 %v5029_v32, %v2500_v45  ;;  %v2572_v21 = vadd.f32 %v5029_v32, %v2501_v16  ;;  %v2573_v33 = vadd.f32 %v5029_v32, %v2502_v31  ;;  %v2574_v63 = vadd.f32 %v5029_v32, %v2503_v60 }
 0x234   :  { %v2575_v59 = vadd.f32 %v5029_v32, %v2504_v30  ;;  %v2576_v23 = vadd.f32 %v5029_v32, %v2505_v10  ;;  %v2577_v35 = vadd.f32 %v5029_v32, %v2506_v26  ;;  %v2578_v36 = vadd.f32 %v5029_v32, %v2507_v24 }
 0x235   :  { %v2635_v1 = vmax.f32 %v2571_v54, 0.0  ;;  %v2636_v7 = vmax.f32 %v2572_v21, 0.0  ;;  %v2637_v0 = vmax.f32 %v2573_v33, 0.0  ;;  %v2638_v34 = vmax.f32 %v2574_v63, 0.0 }
 0x236   :  { %v2639_v49 = vmax.f32 %v2575_v59, 0.0  ;;  %v2640_v39 = vmax.f32 %v2576_v23, 0.0  ;;  %v2641_v17 = vmax.f32 %v2577_v35, 0.0  ;;  %v2642_v27 = vmax.f32 %v2578_v36, 0.0 }
 0x237   :  { %2699 = vst.msk [vmem:[%s5539_s4] sm:$0xff] %vm17_vm0, %v2635_v1  ;;  %2700 = vst.msk [vmem:[%s5539_s4 + $0x8] sm:$0xff] %vm17_vm0, %v2636_v7  ;;  %v2437_v45 = vmul.f32 %v5011_v12, %v4613_v28  ;;  %v2438_v16 = vmul.f32 %v5011_v12, %v4620_v19  ;;  %v2439_v31 = vmul.f32 %v5011_v12, %v4627_v18 }
 0x238   :  { %2701 = vst.msk [vmem:[%s5539_s4 + $0x10] sm:$0xff] %vm17_vm0, %v2637_v0  ;;  %2702 = vst.msk [vmem:[%s5539_s4 + $0x18] sm:$0xff] %vm17_vm0, %v2638_v34  ;;  %v2440_v60 = vmul.f32 %v5011_v12, %v4634_v13  ;;  %v2441_v28 = vmul.f32 %v5011_v12, %v4641_v15  ;;  %v2442_v19 = vmul.f32 %v5011_v12, %v4648_v2 }
 0x239   :  { %2703 = vst.msk [vmem:[%s5539_s4 + $0x20] sm:$0xff] %vm17_vm0, %v2639_v49  ;;  %2704 = vst.msk [vmem:[%s5539_s4 + $0x28] sm:$0xff] %vm17_vm0, %v2640_v39  ;;  %v2443_v18 = vmul.f32 %v5011_v12, %v4655_v9  ;;  %v2444_v13 = vmul.f32 %v5011_v12, %v4662_v43  ;;  %v2508_v30 = vmul.f32 %v5016_v25, %v2437_v45 }
 0x23a   :  { %2705 = vst.msk [vmem:[%s5539_s4 + $0x30] sm:$0xff] %vm17_vm0, %v2641_v17  ;;  %2706 = vst.msk [vmem:[%s5539_s4 + $0x38] sm:$0xff] %vm17_vm0, %v2642_v27  ;;  %v2509_v10 = vmul.f32 %v5016_v25, %v2438_v16  ;;  %v2510_v26 = vmul.f32 %v5016_v25, %v2439_v31  ;;  %v2511_v24 = vmul.f32 %v5016_v25, %v2440_v60 }
 0x23b   :  { %v2512_v54 = vmul.f32 %v5016_v25, %v2441_v28  ;;  %v2513_v15 = vmul.f32 %v5016_v25, %v2442_v19  ;;  %v2514_v2 = vmul.f32 %v5016_v25, %v2443_v18  ;;  %v2515_v21 = vmul.f32 %v5016_v25, %v2444_v13 }
 0x23c   :  { %v2579_v9 = vadd.f32 %v5029_v32, %v2508_v30  ;;  %v2580_v43 = vadd.f32 %v5029_v32, %v2509_v10  ;;  %v2581_v33 = vadd.f32 %v5029_v32, %v2510_v26  ;;  %v2582_v63 = vadd.f32 %v5029_v32, %v2511_v24 }
 0x23d   :  { %v2583_v59 = vadd.f32 %v5029_v32, %v2512_v54  ;;  %v2584_v23 = vadd.f32 %v5029_v32, %v2513_v15  ;;  %v2585_v35 = vadd.f32 %v5029_v32, %v2514_v2  ;;  %v2586_v36 = vadd.f32 %v5029_v32, %v2515_v21 }
 0x23e   :  { %v2643_v1 = vmax.f32 %v2579_v9, 0.0  ;;  %v2644_v7 = vmax.f32 %v2580_v43, 0.0  ;;  %v2645_v0 = vmax.f32 %v2581_v33, 0.0  ;;  %v2646_v34 = vmax.f32 %v2582_v63, 0.0 }
 0x23f   :  { %v2647_v49 = vmax.f32 %v2583_v59, 0.0  ;;  %v2648_v39 = vmax.f32 %v2584_v23, 0.0  ;;  %v2649_v17 = vmax.f32 %v2585_v35, 0.0  ;;  %v2650_v27 = vmax.f32 %v2586_v36, 0.0 }
 0x240   :  { %2707 = vst.msk [vmem:[%s5539_s4 + $0x40] sm:$0xff] %vm17_vm0, %v2643_v1  ;;  %2708 = vst.msk [vmem:[%s5539_s4 + $0x48] sm:$0xff] %vm17_vm0, %v2644_v7  ;;  %v2445_v45 = vmul.f32 %v5011_v12, %v4669_v46  ;;  %v2446_v16 = vmul.f32 %v5011_v12, %v4676_v29  ;;  %v2447_v31 = vmul.f32 %v5011_v12, %v4683_v44 }
 0x241   :  { %2709 = vst.msk [vmem:[%s5539_s4 + $0x50] sm:$0xff] %vm17_vm0, %v2645_v0  ;;  %2710 = vst.msk [vmem:[%s5539_s4 + $0x58] sm:$0xff] %vm17_vm0, %v2646_v34  ;;  %v2448_v60 = vmul.f32 %v5011_v12, %v4690_v38  ;;  %v2449_v46 = vmul.f32 %v5011_v12, %v4697_v5  ;;  %v2450_v29 = vmul.f32 %v5011_v12, %v4704_v51 }
 0x242   :  { %2711 = vst.msk [vmem:[%s5539_s4 + $0x60] sm:$0xff] %vm17_vm0, %v2647_v49  ;;  %2712 = vst.msk [vmem:[%s5539_s4 + $0x68] sm:$0xff] %vm17_vm0, %v2648_v39  ;;  %v2451_v44 = vmul.f32 %v5011_v12, %v4711_v4  ;;  %v2452_v38 = vmul.f32 %v5011_v12, %v4718_v20  ;;  %v2516_v28 = vmul.f32 %v5016_v25, %v2445_v45 }
 0x243   :  { %2713 = vst.msk [vmem:[%s5539_s4 + $0x70] sm:$0xff] %vm17_vm0, %v2649_v17  ;;  %2714 = vst.msk [vmem:[%s5539_s4 + $0x78] sm:$0xff] %vm17_vm0, %v2650_v27  ;;  %v2517_v19 = vmul.f32 %v5016_v25, %v2446_v16  ;;  %v2518_v18 = vmul.f32 %v5016_v25, %v2447_v31  ;;  %v2519_v13 = vmul.f32 %v5016_v25, %v2448_v60 }
 0x244   :  { %v2520_v30 = vmul.f32 %v5016_v25, %v2449_v46  ;;  %v2521_v5 = vmul.f32 %v5016_v25, %v2450_v29  ;;  %v2522_v51 = vmul.f32 %v5016_v25, %v2451_v44  ;;  %v2523_v10 = vmul.f32 %v5016_v25, %v2452_v38 }
 0x245   :  { %v2587_v4 = vadd.f32 %v5029_v32, %v2516_v28  ;;  %v2588_v20 = vadd.f32 %v5029_v32, %v2517_v19  ;;  %v2589_v26 = vadd.f32 %v5029_v32, %v2518_v18  ;;  %v2590_v24 = vadd.f32 %v5029_v32, %v2519_v13 }
 0x246   :  { %v2591_v54 = vadd.f32 %v5029_v32, %v2520_v30  ;;  %v2592_v15 = vadd.f32 %v5029_v32, %v2521_v5  ;;  %v2593_v2 = vadd.f32 %v5029_v32, %v2522_v51  ;;  %v2594_v21 = vadd.f32 %v5029_v32, %v2523_v10 }
 0x247   :  { %v2651_v9 = vmax.f32 %v2587_v4, 0.0  ;;  %v2652_v43 = vmax.f32 %v2588_v20, 0.0  ;;  %v2653_v33 = vmax.f32 %v2589_v26, 0.0  ;;  %v2654_v63 = vmax.f32 %v2590_v24, 0.0  ;;  %v5771_v26 = vld [vmem:[#allocation27_spill] sm:$0xff] }
 0x248   :  { %v2655_v59 = vmax.f32 %v2591_v54, 0.0  ;;  %v2656_v23 = vmax.f32 %v2592_v15, 0.0  ;;  %v2657_v35 = vmax.f32 %v2593_v2, 0.0  ;;  %v2658_v36 = vmax.f32 %v2594_v21, 0.0  ;;  %v5772_v54 = vld [vmem:[#allocation29_spill] sm:$0xff]  ;;  %v5773_v2 = vld [vmem:[#allocation34_spill] sm:$0xff] }
 0x249   :  { %2715 = vst.msk [vmem:[%s5539_s4 + $0x80] sm:$0xff] %vm17_vm0, %v2651_v9  ;;  %2716 = vst.msk [vmem:[%s5539_s4 + $0x88] sm:$0xff] %vm17_vm0, %v2652_v43  ;;  %v2453_v1 = vmul.f32 %v5011_v12, %v4725_v37  ;;  %v2454_v7 = vmul.f32 %v5011_v12, %v4732_v55  ;;  %v2455_v0 = vmul.f32 %v5011_v12, %v4739_v8  ;;  %v5774_v9 = vld [vmem:[#allocation35_spill] sm:$0xff] }
 0x24a   :  { %2717 = vst.msk [vmem:[%s5539_s4 + $0x90] sm:$0xff] %vm17_vm0, %v2653_v33  ;;  %2718 = vst.msk [vmem:[%s5539_s4 + $0x98] sm:$0xff] %vm17_vm0, %v2654_v63  ;;  %v2456_v34 = vmul.f32 %v5011_v12, %v4746_v62  ;;  %v2457_v37 = vmul.f32 %v5011_v12, %v4753_v48  ;;  %v2458_v55 = vmul.f32 %v5011_v12, %v4760_v40  ;;  %v5770_v62 = vld [vmem:[#allocation26_spill] sm:$0xff]  ;;  %v5775_v33 = vld [vmem:[#allocation36_spill] sm:$0xff] }
 0x24b   :  { %2719 = vst.msk [vmem:[%s5539_s4 + $0xa0] sm:$0xff] %vm17_vm0, %v2655_v59  ;;  %2720 = vst.msk [vmem:[%s5539_s4 + $0xa8] sm:$0xff] %vm17_vm0, %v2656_v23  ;;  %v2459_v8 = vmul.f32 %v5011_v12, %v4767_v50  ;;  %v2460_v49 = vmul.f32 %v5011_v12, %v5770_v62  ;;  %v2524_v39 = vmul.f32 %v5016_v25, %v2453_v1  ;;  %v5776_v59 = vld [vmem:[#allocation38_spill] sm:$0xff]  ;;  %v5778_v1 = vld [vmem:[#allocation43_spill] sm:$0xff] }
 0x24c   :  { %2721 = vst.msk [vmem:[%s5539_s4 + $0xb0] sm:$0xff] %vm17_vm0, %v2657_v35  ;;  %2722 = vst.msk [vmem:[%s5539_s4 + $0xb8] sm:$0xff] %vm17_vm0, %v2658_v36  ;;  %v2525_v17 = vmul.f32 %v5016_v25, %v2454_v7  ;;  %v2526_v27 = vmul.f32 %v5016_v25, %v2455_v0  ;;  %v2527_v45 = vmul.f32 %v5016_v25, %v2456_v34  ;;  %v5777_v35 = vld [vmem:[#allocation42_spill] sm:$0xff] }
 0x24d   :  { %v2528_v16 = vmul.f32 %v5016_v25, %v2457_v37  ;;  %v2529_v48 = vmul.f32 %v5016_v25, %v2458_v55  ;;  %v2530_v40 = vmul.f32 %v5016_v25, %v2459_v8  ;;  %v2531_v31 = vmul.f32 %v5016_v25, %v2460_v49 }
 0x24e   :  { %v2595_v50 = vadd.f32 %v5029_v32, %v2524_v39  ;;  %v2596_v60 = vadd.f32 %v5029_v32, %v2525_v17  ;;  %v2597_v46 = vadd.f32 %v5029_v32, %v2526_v27  ;;  %v2598_v29 = vadd.f32 %v5029_v32, %v2527_v45 }
 0x24f   :  { %v2599_v44 = vadd.f32 %v5029_v32, %v2528_v16  ;;  %v2600_v38 = vadd.f32 %v5029_v32, %v2529_v48  ;;  %v2601_v28 = vadd.f32 %v5029_v32, %v2530_v40  ;;  %v2602_v19 = vadd.f32 %v5029_v32, %v2531_v31 }
 0x250   :  { %v2659_v18 = vmax.f32 %v2595_v50, 0.0  ;;  %v2660_v13 = vmax.f32 %v2596_v60, 0.0  ;;  %v2661_v30 = vmax.f32 %v2597_v46, 0.0  ;;  %v2662_v5 = vmax.f32 %v2598_v29, 0.0 }
 0x251   :  { %v2663_v51 = vmax.f32 %v2599_v44, 0.0  ;;  %v2664_v10 = vmax.f32 %v2600_v38, 0.0  ;;  %v2665_v4 = vmax.f32 %v2601_v28, 0.0  ;;  %v2666_v20 = vmax.f32 %v2602_v19, 0.0 }
 0x252   :  { %2723 = vst.msk [vmem:[%s5539_s4 + $0xc0] sm:$0xff] %vm17_vm0, %v2659_v18  ;;  %2724 = vst.msk [vmem:[%s5539_s4 + $0xc8] sm:$0xff] %vm17_vm0, %v2660_v13  ;;  %v2461_v24 = vmul.f32 %v5011_v12, %v5771_v26  ;;  %v2462_v15 = vmul.f32 %v5011_v12, %v5772_v54  ;;  %v2463_v21 = vmul.f32 %v5011_v12, %v5773_v2  ;;  %v5779_v13 = vld [vmem:[#allocation44_spill] sm:$0xff] }
 0x253   :  { %2725 = vst.msk [vmem:[%s5539_s4 + $0xd0] sm:$0xff] %vm17_vm0, %v2661_v30  ;;  %2726 = vst.msk [vmem:[%s5539_s4 + $0xd8] sm:$0xff] %vm17_vm0, %v2662_v5  ;;  %v2464_v43 = vmul.f32 %v5011_v12, %v5774_v9  ;;  %v2465_v63 = vmul.f32 %v5011_v12, %v5775_v33  ;;  %v2466_v23 = vmul.f32 %v5011_v12, %v5776_v59  ;;  %v5780_v5 = vld [vmem:[#allocation45_spill] sm:$0xff] }
 0x254   :  { %2727 = vst.msk [vmem:[%s5539_s4 + $0xe0] sm:$0xff] %vm17_vm0, %v2663_v51  ;;  %2728 = vst.msk [vmem:[%s5539_s4 + $0xe8] sm:$0xff] %vm17_vm0, %v2664_v10  ;;  %v2467_v36 = vmul.f32 %v5011_v12, %v5777_v35  ;;  %v2468_v7 = vmul.f32 %v5011_v12, %v5778_v1  ;;  %v2532_v0 = vmul.f32 %v5016_v25, %v2461_v24  ;;  %v5781_v10 = vld [vmem:[#allocation55_spill] sm:$0xff] }
 0x255   :  { %2729 = vst.msk [vmem:[%s5539_s4 + $0xf0] sm:$0xff] %vm17_vm0, %v2665_v4  ;;  %2730 = vst.msk [vmem:[%s5539_s4 + $0xf8] sm:$0xff] %vm17_vm0, %v2666_v20  ;;  %v2533_v34 = vmul.f32 %v5016_v25, %v2462_v15  ;;  %v2534_v37 = vmul.f32 %v5016_v25, %v2463_v21  ;;  %v2535_v55 = vmul.f32 %v5016_v25, %v2464_v43  ;;  %v5782_v20 = vld [vmem:[#allocation56_spill] sm:$0xff] }
 0x256   :  { %v2536_v8 = vmul.f32 %v5016_v25, %v2465_v63  ;;  %v2537_v62 = vmul.f32 %v5016_v25, %v2466_v23  ;;  %v2538_v49 = vmul.f32 %v5016_v25, %v2467_v36  ;;  %v2539_v39 = vmul.f32 %v5016_v25, %v2468_v7 }
 0x257   :  { %v2603_v17 = vadd.f32 %v5029_v32, %v2532_v0  ;;  %v2604_v27 = vadd.f32 %v5029_v32, %v2533_v34  ;;  %v2605_v45 = vadd.f32 %v5029_v32, %v2534_v37  ;;  %v2606_v16 = vadd.f32 %v5029_v32, %v2535_v55 }
 0x258   :  { %v2607_v48 = vadd.f32 %v5029_v32, %v2536_v8  ;;  %v2608_v40 = vadd.f32 %v5029_v32, %v2537_v62  ;;  %v2609_v31 = vadd.f32 %v5029_v32, %v2538_v49  ;;  %v2610_v50 = vadd.f32 %v5029_v32, %v2539_v39 }
 0x259   :  { %v2667_v60 = vmax.f32 %v2603_v17, 0.0  ;;  %v2668_v46 = vmax.f32 %v2604_v27, 0.0  ;;  %v2669_v29 = vmax.f32 %v2605_v45, 0.0  ;;  %v2670_v44 = vmax.f32 %v2606_v16, 0.0 }
 0x25a   :  { %v2671_v38 = vmax.f32 %v2607_v48, 0.0  ;;  %v2672_v28 = vmax.f32 %v2608_v40, 0.0  ;;  %v2673_v19 = vmax.f32 %v2609_v31, 0.0  ;;  %v2674_v18 = vmax.f32 %v2610_v50, 0.0 }
 0x25b   :  { %2731 = vst.msk [vmem:[%s5539_s4 + $0x100] sm:$0xff] %vm17_vm0, %v2667_v60  ;;  %2732 = vst.msk [vmem:[%s5539_s4 + $0x108] sm:$0xff] %vm17_vm0, %v2668_v46  ;;  %v2469_v30 = vmul.f32 %v5011_v12, %v5779_v13  ;;  %v2470_v51 = vmul.f32 %v5011_v12, %v5780_v5  ;;  %v2471_v4 = vmul.f32 %v5011_v12, %v5781_v10 }
 0x25c   :  { %2733 = vst.msk [vmem:[%s5539_s4 + $0x110] sm:$0xff] %vm17_vm0, %v2669_v29  ;;  %2734 = vst.msk [vmem:[%s5539_s4 + $0x118] sm:$0xff] %vm17_vm0, %v2670_v44  ;;  %v2472_v26 = vmul.f32 %v5011_v12, %v5782_v20  ;;  %v2473_v24 = vmul.f32 %v5011_v12, %v4865_v14  ;;  %v2474_v54 = vmul.f32 %v5011_v12, %v4872_v22 }
 0x25d   :  { %2735 = vst.msk [vmem:[%s5539_s4 + $0x120] sm:$0xff] %vm17_vm0, %v2671_v38  ;;  %2736 = vst.msk [vmem:[%s5539_s4 + $0x128] sm:$0xff] %vm17_vm0, %v2672_v28  ;;  %v2475_v15 = vmul.f32 %v5011_v12, %v4879_v6  ;;  %v2476_v2 = vmul.f32 %v5011_v12, %v4886_v11  ;;  %v2540_v21 = vmul.f32 %v5016_v25, %v2469_v30 }
 0x25e   :  { %2737 = vst.msk [vmem:[%s5539_s4 + $0x130] sm:$0xff] %vm17_vm0, %v2673_v19  ;;  %2738 = vst.msk [vmem:[%s5539_s4 + $0x138] sm:$0xff] %vm17_vm0, %v2674_v18  ;;  %v2541_v9 = vmul.f32 %v5016_v25, %v2470_v51  ;;  %v2542_v43 = vmul.f32 %v5016_v25, %v2471_v4  ;;  %v2543_v33 = vmul.f32 %v5016_v25, %v2472_v26 }
 0x25f   :  { %v2544_v63 = vmul.f32 %v5016_v25, %v2473_v24  ;;  %v2545_v14 = vmul.f32 %v5016_v25, %v2474_v54  ;;  %v2546_v22 = vmul.f32 %v5016_v25, %v2475_v15  ;;  %v2547_v59 = vmul.f32 %v5016_v25, %v2476_v2  ;;  %v5783_v15 = vld [vmem:[#allocation57_spill] sm:$0xff] }
 0x260   :  { %v2611_v6 = vadd.f32 %v5029_v32, %v2540_v21  ;;  %v2612_v11 = vadd.f32 %v5029_v32, %v2541_v9  ;;  %v2613_v23 = vadd.f32 %v5029_v32, %v2542_v43  ;;  %v2614_v35 = vadd.f32 %v5029_v32, %v2543_v33  ;;  %v5784_v21 = vld [vmem:[#allocation59_spill] sm:$0xff]  ;;  %v5785_v43 = vld [vmem:[#allocation5_spill] sm:$0xff] }
 0x261   :  { %v2615_v36 = vadd.f32 %v5029_v32, %v2544_v63  ;;  %v2616_v1 = vadd.f32 %v5029_v32, %v2545_v14  ;;  %v2617_v7 = vadd.f32 %v5029_v32, %v2546_v22  ;;  %v2618_v0 = vadd.f32 %v5029_v32, %v2547_v59  ;;  %v5787_v14 = vld [vmem:[#allocation7_spill] sm:$0xff]  ;;  %v5788_v59 = vld [vmem:[#allocation10_spill] sm:$0xff] }
 0x262   :  { %v2675_v34 = vmax.f32 %v2611_v6, 0.0  ;;  %v2676_v37 = vmax.f32 %v2612_v11, 0.0  ;;  %v2677_v55 = vmax.f32 %v2613_v23, 0.0  ;;  %v2678_v8 = vmax.f32 %v2614_v35, 0.0 }
 0x263   :  { %v2679_v62 = vmax.f32 %v2615_v36, 0.0  ;;  %v2680_v49 = vmax.f32 %v2616_v1, 0.0  ;;  %v2681_v39 = vmax.f32 %v2617_v7, 0.0  ;;  %v2682_v17 = vmax.f32 %v2618_v0, 0.0 }
 0x264   :  { %2739 = vst.msk [vmem:[%s5539_s4 + $0x140] sm:$0xff] %vm17_vm0, %v2675_v34  ;;  %2740 = vst.msk [vmem:[%s5539_s4 + $0x148] sm:$0xff] %vm17_vm0, %v2676_v37  ;;  %v2477_v27 = vmul.f32 %v5011_v12, %v4893_v61  ;;  %v2478_v45 = vmul.f32 %v5011_v12, %v4900_v41  ;;  %v2479_v16 = vmul.f32 %v5011_v12, %v4907_v52 }
 0x265   :  { %2741 = vst.msk [vmem:[%s5539_s4 + $0x150] sm:$0xff] %vm17_vm0, %v2677_v55  ;;  %2742 = vst.msk [vmem:[%s5539_s4 + $0x158] sm:$0xff] %vm17_vm0, %v2678_v8  ;;  %v2480_v48 = vmul.f32 %v5011_v12, %v4914_v3  ;;  %v2481_v61 = vmul.f32 %v5011_v12, %v4921_v58  ;;  %v2482_v41 = vmul.f32 %v5011_v12, %v4928_v53 }
 0x266   :  { %2743 = vst.msk [vmem:[%s5539_s4 + $0x160] sm:$0xff] %vm17_vm0, %v2679_v62  ;;  %2744 = vst.msk [vmem:[%s5539_s4 + $0x168] sm:$0xff] %vm17_vm0, %v2680_v49  ;;  %v2483_v52 = vmul.f32 %v5011_v12, %v4935_v56  ;;  %v2484_v3 = vmul.f32 %v5011_v12, %v4942_v42  ;;  %v2548_v40 = vmul.f32 %v5016_v25, %v2477_v27 }
 0x267   :  { %2745 = vst.msk [vmem:[%s5539_s4 + $0x170] sm:$0xff] %vm17_vm0, %v2681_v39  ;;  %2746 = vst.msk [vmem:[%s5539_s4 + $0x178] sm:$0xff] %vm17_vm0, %v2682_v17  ;;  %v2549_v31 = vmul.f32 %v5016_v25, %v2478_v45  ;;  %v2550_v50 = vmul.f32 %v5016_v25, %v2479_v16  ;;  %v2551_v60 = vmul.f32 %v5016_v25, %v2480_v48 }
 0x268   :  { %v2552_v46 = vmul.f32 %v5016_v25, %v2481_v61  ;;  %v2553_v58 = vmul.f32 %v5016_v25, %v2482_v41  ;;  %v2554_v53 = vmul.f32 %v5016_v25, %v2483_v52  ;;  %v2555_v29 = vmul.f32 %v5016_v25, %v2484_v3 }
 0x269   :  { %v2619_v56 = vadd.f32 %v5029_v32, %v2548_v40  ;;  %v2620_v42 = vadd.f32 %v5029_v32, %v2549_v31  ;;  %v2621_v44 = vadd.f32 %v5029_v32, %v2550_v50  ;;  %v2622_v38 = vadd.f32 %v5029_v32, %v2551_v60 }
 0x26a   :  { %v2623_v28 = vadd.f32 %v5029_v32, %v2552_v46  ;;  %v2624_v19 = vadd.f32 %v5029_v32, %v2553_v58  ;;  %v2625_v18 = vadd.f32 %v5029_v32, %v2554_v53  ;;  %v2626_v13 = vadd.f32 %v5029_v32, %v2555_v29 }
 0x26b   :  { %v2683_v30 = vmax.f32 %v2619_v56, 0.0  ;;  %v2684_v5 = vmax.f32 %v2620_v42, 0.0  ;;  %v2685_v51 = vmax.f32 %v2621_v44, 0.0  ;;  %v2686_v10 = vmax.f32 %v2622_v38, 0.0 }
 0x26c   :  { %v2687_v4 = vmax.f32 %v2623_v28, 0.0  ;;  %v2688_v20 = vmax.f32 %v2624_v19, 0.0  ;;  %v2689_v26 = vmax.f32 %v2625_v18, 0.0  ;;  %v2690_v24 = vmax.f32 %v2626_v13, 0.0 }
 0x26d   :  { %2747 = vst.msk [vmem:[%s5539_s4 + $0x180] sm:$0xff] %vm17_vm0, %v2683_v30  ;;  %2748 = vst.msk [vmem:[%s5539_s4 + $0x188] sm:$0xff] %vm17_vm0, %v2684_v5  ;;  %v2485_v54 = vmul.f32 %v5011_v12, %v4949_v57  ;;  %v2486_v2 = vmul.f32 %v5011_v12, %v5783_v15  ;;  %v2487_v9 = vmul.f32 %v5011_v12, %v5784_v21  ;;  %v5786_v57 = vld [vmem:[#allocation6_spill] sm:$0xff] }
 0x26e   :  { %2749 = vst.msk [vmem:[%s5539_s4 + $0x190] sm:$0xff] %vm17_vm0, %v2685_v51  ;;  %2750 = vst.msk [vmem:[%s5539_s4 + $0x198] sm:$0xff] %vm17_vm0, %v2686_v10  ;;  %v2488_v33 = vmul.f32 %v5011_v12, %v5785_v43  ;;  %v2489_v63 = vmul.f32 %v5011_v12, %v5786_v57  ;;  %v2490_v22 = vmul.f32 %v5011_v12, %v5787_v14 }
 0x26f   :  { %2751 = vst.msk [vmem:[%s5539_s4 + $0x1a0] sm:$0xff] %vm17_vm0, %v2687_v4  ;;  %2752 = vst.msk [vmem:[%s5539_s4 + $0x1a8] sm:$0xff] %vm17_vm0, %v2688_v20  ;;  %v2491_v6 = vmul.f32 %v5011_v12, %v5788_v59  ;;  %v2492_v11 = vmul.f32 %v5011_v12, %v5000_v47  ;;  %v2556_v23 = vmul.f32 %v5016_v25, %v2485_v54 }
 0x270   :  { %2753 = vst.msk [vmem:[%s5539_s4 + $0x1b0] sm:$0xff] %vm17_vm0, %v2689_v26  ;;  %2754 = vst.msk [vmem:[%s5539_s4 + $0x1b8] sm:$0xff] %vm17_vm0, %v2690_v24  ;;  %v2557_v35 = vmul.f32 %v5016_v25, %v2486_v2  ;;  %v2558_v36 = vmul.f32 %v5016_v25, %v2487_v9  ;;  %v2559_v1 = vmul.f32 %v5016_v25, %v2488_v33 }
 0x271   :  { %v2560_v7 = vmul.f32 %v5016_v25, %v2489_v63  ;;  %v2561_v0 = vmul.f32 %v5016_v25, %v2490_v22  ;;  %v2562_v34 = vmul.f32 %v5016_v25, %v2491_v6  ;;  %v2563_v37 = vmul.f32 %v5016_v25, %v2492_v11 }
 0x272   :  { %v2627_v55 = vadd.f32 %v5029_v32, %v2556_v23  ;;  %v2628_v47 = vadd.f32 %v5029_v32, %v2557_v35  ;;  %v2629_v12 = vadd.f32 %v5029_v32, %v2558_v36  ;;  %v2630_v8 = vadd.f32 %v5029_v32, %v2559_v1 }
 0x273   :  { %v2631_v62 = vadd.f32 %v5029_v32, %v2560_v7  ;;  %v2632_v49 = vadd.f32 %v5029_v32, %v2561_v0  ;;  %v2633_v39 = vadd.f32 %v5029_v32, %v2562_v34  ;;  %v2634_v17 = vadd.f32 %v5029_v32, %v2563_v37 }
 0x274   :  { %v2691_v27 = vmax.f32 %v2627_v55, 0.0  ;;  %v2692_v45 = vmax.f32 %v2628_v47, 0.0  ;;  %v2693_v16 = vmax.f32 %v2629_v12, 0.0  ;;  %v2694_v25 = vmax.f32 %v2630_v8, 0.0 }
 0x275   :  { %v2695_v48 = vmax.f32 %v2631_v62, 0.0  ;;  %v2696_v61 = vmax.f32 %v2632_v49, 0.0  ;;  %v2697_v41 = vmax.f32 %v2633_v39, 0.0  ;;  %v2698_v52 = vmax.f32 %v2634_v17, 0.0 }
 0x276   :  { %2755 = vst.msk [vmem:[%s5539_s4 + $0x1c0] sm:$0xff] %vm17_vm0, %v2691_v27  ;;  %2756 = vst.msk [vmem:[%s5539_s4 + $0x1c8] sm:$0xff] %vm17_vm0, %v2692_v45 }
 0x277   :  { %2757 = vst.msk [vmem:[%s5539_s4 + $0x1d0] sm:$0xff] %vm17_vm0, %v2693_v16  ;;  %2758 = vst.msk [vmem:[%s5539_s4 + $0x1d8] sm:$0xff] %vm17_vm0, %v2694_v25 }
 0x278   :  { %2759 = vst.msk [vmem:[%s5539_s4 + $0x1e0] sm:$0xff] %vm17_vm0, %v2695_v48  ;;  %2760 = vst.msk [vmem:[%s5539_s4 + $0x1e8] sm:$0xff] %vm17_vm0, %v2696_v61 }
 0x279   :  { %2761 = vst.msk [vmem:[%s5539_s4 + $0x1f0] sm:$0xff] %vm17_vm0, %v2697_v41  ;;  %2762 = vst.msk [vmem:[%s5539_s4 + $0x1f8] sm:$0xff] %vm17_vm0, %v2698_v52 }

</bundles_post_ra>
